<compile_context>
chip_gen: v7x
topology: tpu7x:2x2x1
jax: 0.10.0
libtpu: 0.0.40
codegen_flags: <defaults>
</compile_context>

<pallas_src>
from functools import partial

import jax
import jax.numpy as jnp
from jax import lax
from jax.experimental import pallas as pl
from jax.experimental.pallas import tpu as pltpu


# --------------------------------------------------------------------------- #
# Kernels
# --------------------------------------------------------------------------- #
def _ln_xhat(x_ref, eps):
    """One-pass LayerNorm over the in_feat axis (axis 0 of the block)."""
    x = x_ref[0]
    if x.dtype != jnp.float32:
        x = x.astype(jnp.float32)               # LN stats in f32 (bf16 inputs ok)
    mu = jnp.mean(x, axis=0, keepdims=True)     # (1, N, Pt)
    ms = jnp.mean(x * x, axis=0, keepdims=True)
    var = ms - mu * mu                          # one-pass variance (f32)
    return (x - mu) * lax.rsqrt(var + eps)      # (M, N, Pt)


def _spect_block_blockdiag_kernel(x_ref, w_ref, bias_ref, o_ref, *, eps):
    # x_ref:    (1, M, N, Pt)   input tile, native layout
    # w_ref:    (M*L, M*N)      block-diagonal folded operator (gamma folded in)
    # bias_ref: (M*L, Pt)       beta[m] * sum_n op[n,t], pre-broadcast over lanes
    # o_ref:    (1, M*L, Pt)
    xhat = _ln_xhat(x_ref, eps)                               # (M, N, Pt)
    M, N, Pt = xhat.shape
    xf = xhat.reshape(M * N, Pt)
    out = jnp.dot(w_ref[...], xf, preferred_element_type=jnp.float32)  # (M*L, Pt)
    # TODO(synk): training-mode stochastic dropout (p=0.1) not implemented
    # (reference evaluated in eval mode -> identity).
    o_ref[0] = (out + bias_ref[...]).astype(o_ref.dtype)


def _spect_block_batched_kernel(x_ref, wg_ref, bias_ref, o_ref, *, eps):
    # x_ref:    (1, M, N, Pt)
    # wg_ref:   (M, N, L)       gamma[m] * spectral_op[n, t]   (f32, resident)
    # bias_ref: (M*L, Pt)
    # o_ref:    (1, M*L, Pt)
    xhat = _ln_xhat(x_ref, eps)                               # (M, N, Pt)
    out = jnp.einsum('mnt,mnp->mtp', wg_ref[...], xhat,
                     preferred_element_type=jnp.float32)      # (M, L, Pt)
    M, L, Pt = out.shape
    o_ref[0] = (out.reshape(M * L, Pt) + bias_ref[...]).astype(o_ref.dtype)


# --------------------------------------------------------------------------- #
# Tiling
# --------------------------------------------------------------------------- #
def _pick_p_tile(M, N, L, P, B, x_bytes, out_bytes, vmem_cap):
    """Lane tile along P: VMEM-budgeted, then capped for pipeline/megacore."""
    if P <= 128:
        return P                                  # full-dim block is always legal

    small_part = vmem_cap <= (64 << 20)           # v7x: 64 MiB VMEM per TC
    lane_cap = 512 if small_part else 2048        # bigger blocks on 128-MiB parts
    budget = (18 << 20) if small_part else (44 << 20)

    # Live VMEM per lane of pt: 2x double-buffered input blocks + ~3 f32
    # block-sized intermediates (cast x, xhat, contraction output) +
    # 2x double-buffered output blocks.  Resident weights are tiny and ignored.
    per_lane = M * N * (2 * x_bytes + 3 * 4) + 2 * M * L * out_bytes
    pt = min(lane_cap, P, max(128, budget // per_lane))
    pt = max(128, (pt // 128) * 128)              # keep lane-dense

    # (a) hard: >= 2 total grid steps so both v7x TensorCores get work and the
    #     pipeline has something to overlap even when B == 1.
    if B * (-(-P // pt)) < 2:
        pt = min(pt, max(128, ((-(-P // 2)) // 128) * 128))

    # (b) soft: aim for ~4 total grid steps (DMA/compute/writeback overlap),
    #     but never shrink blocks below a ~512 KiB (f32) / 128-lane floor.
    want_tiles = -(-4 // B)
    if -(-P // pt) < want_tiles:
        floor = max(128, min(512, (((512 << 10) // (M * N * 4)) // 128) * 128))
        split = max(128, ((-(-P // want_tiles)) // 128) * 128)
        cand = max(split, floor)
        if cand < pt:
            pt = cand
    return pt
    # TODO(synk): for very large in_feat*freq_len even a 128-lane slab may not
    # fit VMEM; that would need in_feat tiling with a two-pass LayerNorm.


# --------------------------------------------------------------------------- #
# Wrapper
# --------------------------------------------------------------------------- #
def spect_block_forward(x, gamma, beta, weight_r, weight_i, *, adapter_len,
                        eps=1e-5):
    """x: (B, in_feat, freq_len, P) -> (B, in_feat, adapter_len, P)."""
    B, M, N, P = x.shape
    K = N // 2 + 1
    L = adapter_len
    D = L // 2
    assert weight_r.shape == (K, D) and weight_i.shape == (K, D)
    assert gamma.shape == (M,) and beta.shape == (M,)

    f32 = jnp.float32
    # rfft / irfft are linear maps, so fold rfft -> (Re @ W_r, Im @ W_i) -> irfft
    # into a single real (N, L) operator (exact, no approximation).
    F = jnp.fft.rfft(jnp.eye(N, dtype=f32), axis=-1)                        # (N, K)
    Gr = jnp.fft.irfft(jnp.eye(D, dtype=jnp.complex64), n=L, axis=-1)       # (D, L)
    Gi = jnp.fft.irfft(1j * jnp.eye(D, dtype=jnp.complex64), n=L, axis=-1)  # (D, L)
    spect_op = (jnp.real(F) @ (weight_r.astype(f32) @ Gr)
                + jnp.imag(F) @ (weight_i.astype(f32) @ Gi))                # (N, L)

    # Fold the LayerNorm affine: LN(x)[m] = xhat[m]*gamma[m] + beta[m], so
    #   out[m,t,p] = sum_n xhat[m,n,p]*(gamma[m]*op[n,t]) + beta[m]*sum_n op[n,t]
    g = gamma.astype(f32)
    bias_flat = (beta.astype(f32)[:, None]
                 * jnp.sum(spect_op, axis=0)[None, :]).reshape(M * L)       # (M*L,)

    # Generation-aware VMEM budgeting.
    try:
        vmem_cap = int(getattr(pltpu.get_tpu_info(), "vmem_capacity_bytes",
                               128 << 20))
    except Exception:
        vmem_cap = 128 << 20

    itemsize = jnp.dtype(x.dtype).itemsize
    pt = _pick_p_tile(M, N, L, P, B, itemsize, itemsize, vmem_cap)

    # Pre-broadcast bias so the in-kernel add is a plain, vreg-aligned VPU add.
    bias = jnp.broadcast_to(bias_flat[:, None], (M * L, pt))

    use_blockdiag = (M * N <= 1024) and (M * L <= 1024)
    if use_blockdiag:
        # One block-diagonal (M*L, M*N) operator -> single MXU matmul per tile.
        W = ((jnp.eye(M, dtype=f32) * g[:, None])[:, None, :, None]
             * spect_op.T[None, :, None, :]).reshape(M * L, M * N)
        kernel = partial(_spect_block_blockdiag_kernel, eps=eps)
        w_spec = pl.BlockSpec((M * L, M * N), lambda b, j: (0, 0))
        w_arg = W
    else:
        # Batched per-m contraction; weight stored (M, N, L) so the contraction
        # dim N sits on the sublane axis of both operands.
        wg = g[:, None, None] * spect_op[None, :, :]                        # (M, N, L)
        kernel = partial(_spect_block_batched_kernel, eps=eps)
        w_spec = pl.BlockSpec((M, N, L), lambda b, j: (0, 0, 0))
        w_arg = wg

    grid = (B, pl.cdiv(P, pt))
    vmem_limit = (52 << 20) if vmem_cap <= (64 << 20) else (64 << 20)

    out_flat = pl.pallas_call(
        kernel,
        out_shape=jax.ShapeDtypeStruct((B, M * L, P), x.dtype),
        grid_spec=pltpu.PrefetchScalarGridSpec(
            num_scalar_prefetch=0,
            grid=grid,
            in_specs=[
                pl.BlockSpec((1, M, N, pt), lambda b, j: (b, 0, 0, j)),
                w_spec,                                       # resident weights
                pl.BlockSpec((M * L, pt), lambda b, j: (0, 0)),
            ],
            out_specs=pl.BlockSpec((1, M * L, pt), lambda b, j: (b, 0, j)),
        ),
        compiler_params=pltpu.CompilerParams(
            dimension_semantics=("parallel", "parallel"),
            vmem_limit_bytes=vmem_limit,
        ),
    )(x, w_arg, bias)

    # Splitting the contiguous (M*L) dim back to (M, L) is free.
    return out_flat.reshape(B, M, L, P)


# --------------------------------------------------------------------------- #
# Params / reference / test
# --------------------------------------------------------------------------- #
def init_spect_block_params(key, in_feat, freq_len, adapter_len,
                            dtype=jnp.float32):
    K = freq_len // 2 + 1
    D = adapter_len // 2
    k1, k2, k3, k4 = jax.random.split(key, 4)
    weight_r = jax.random.uniform(k1, (K, D), dtype)        # mirrors torch.rand
    weight_i = jax.random.uniform(k2, (K, D), dtype)
    gamma = 1.0 + 0.1 * jax.random.normal(k3, (in_feat,), dtype)  # ln_1.weight
    beta = 0.1 * jax.random.normal(k4, (in_feat,), dtype)         # ln_1.bias
    return gamma, beta, weight_r, weight_i


def _reference(x, gamma, beta, w_r, w_i, adapter_len, eps=1e-5):
    # Pure-JAX mirror of the torch forward (dropout eval = identity).
    xp = jnp.transpose(x, (0, 2, 3, 1))                     # b m n p -> b n p m
    mu = jnp.mean(xp, axis=-1, keepdims=True)
    var = jnp.mean((xp - mu) ** 2, axis=-1, keepdims=True)
    ln = (xp - mu) / jnp.sqrt(var + eps) * gamma + beta
    ln = jnp.transpose(ln, (0, 3, 1, 2))                    # back to b m n p
    y = jnp.transpose(ln, (0, 1, 3, 2))                     # b m n p -> b m p n
    y_ft = jnp.fft.rfft(y, axis=-1)
    a = jnp.einsum('bmpn,nd->bmpd', jnp.real(y_ft), w_r)
    b_ = jnp.einsum('bmpn,nd->bmpd', jnp.imag(y_ft), w_i)
    res = jnp.fft.irfft(a + 1j * b_, n=adapter_len, axis=-1)
    return jnp.transpose(res, (0, 1, 3, 2))                 # (B, M, L, P)


if __name__ == "__main__":
    key = jax.random.PRNGKey(0)

    configs = [
        # (B, in_feat M, freq_len N, P, adapter_len L)
        (2, 32, 16, 512, 8),    # block-diagonal MXU path; grid splits P -> 4 steps
        (1, 16, 128, 256, 8),   # batched-einsum path (M*N > 1024); >= 2 steps
    ]
    for cfg_idx, (B, M, N, P, L) in enumerate(configs):
        kx, kp, key = jax.random.split(key, 3)
        x = jax.random.normal(kx, (B, M, N, P), jnp.float32)
        gamma, beta, w_r, w_i = init_spect_block_params(kp, M, N, L)

        out = spect_block_forward(x, gamma, beta, w_r, w_i, adapter_len=L)
        jax.block_until_ready(out)
        assert out.shape == (B, M, L, P)
        assert out.dtype == x.dtype

        ref = _reference(x, gamma, beta, w_r, w_i, L)
        err = float(jnp.max(jnp.abs(out - ref)))
        assert jnp.allclose(out, ref, atol=2e-3, rtol=2e-3), (cfg_idx, err)

    print("KERNEL_OK")
</pallas_src>

<mosaic_0001>
module attributes {stable_mosaic.version = 11 : i64} {
  func.func @_spect_block_blockdiag_kernel(%arg0: i32, %arg1: i32, %arg2: memref<1x32x16x256xf32, #tpu.memory_space<vmem>>, %arg3: memref<256x512xf32, #tpu.memory_space<vmem>>, %arg4: memref<256x256xf32, #tpu.memory_space<vmem>>, %arg5: memref<1x256x256xf32, #tpu.memory_space<vmem>>) attributes {dimension_semantics = [#tpu.dimension_semantics<parallel>, #tpu.dimension_semantics<parallel>], iteration_bounds = array<i64: 2, 2>, scalar_prefetch = 0 : i64, scratch_operands = 0 : i64, tpu.core_type = #tpu.core_type<tc>, window_params = [{transform_indices = @transform_0, window_bounds = array<i64: 1, 32, 16, 256>}, {pipeline_mode = #tpu.pipeline_mode<synchronous>, transform_indices = @transform_1, window_bounds = array<i64: 256, 512>}, {pipeline_mode = #tpu.pipeline_mode<synchronous>, transform_indices = @transform_2, window_bounds = array<i64: 256, 256>}, {transform_indices = @transform_3, window_bounds = array<i64: 1, 256, 256>}]} {
    %c0 = arith.constant 0 : index
    %c0_0 = arith.constant 0 : index
    %c0_1 = arith.constant 0 : index
    %c0_2 = arith.constant 0 : index
    %0 = vector.load %arg2[%c0, %c0_0, %c0_1, %c0_2] : memref<1x32x16x256xf32, #tpu.memory_space<vmem>>, vector<1x32x16x256xf32>
    %1 = vector.shape_cast %0 : vector<1x32x16x256xf32> to vector<32x16x256xf32>
    %cst = arith.constant dense<0.000000e+00> : vector<16x256xf32>
    %2 = vector.multi_reduction <add>, %1, %cst [0] : vector<32x16x256xf32> to vector<16x256xf32>
    %3 = vector.shape_cast %2 : vector<16x256xf32> to vector<1x16x256xf32>
    %cst_3 = arith.constant 3.200000e+01 : f32
    %4 = vector.broadcast %cst_3 : f32 to vector<1x16x256xf32>
    %5 = arith.divf %3, %4 : vector<1x16x256xf32>
    %6 = arith.mulf %1, %1 : vector<32x16x256xf32>
    %cst_4 = arith.constant dense<0.000000e+00> : vector<16x256xf32>
    %7 = vector.multi_reduction <add>, %6, %cst_4 [0] : vector<32x16x256xf32> to vector<16x256xf32>
    %8 = vector.shape_cast %7 : vector<16x256xf32> to vector<1x16x256xf32>
    %cst_5 = arith.constant 3.200000e+01 : f32
    %9 = vector.broadcast %cst_5 : f32 to vector<1x16x256xf32>
    %10 = arith.divf %8, %9 : vector<1x16x256xf32>
    %11 = arith.mulf %5, %5 : vector<1x16x256xf32>
    %12 = arith.subf %10, %11 : vector<1x16x256xf32>
    %13 = vector.broadcast %5 : vector<1x16x256xf32> to vector<32x16x256xf32>
    %14 = arith.subf %1, %13 : vector<32x16x256xf32>
    %cst_6 = arith.constant 9.99999974E-6 : f32
    %15 = vector.broadcast %cst_6 : f32 to vector<1x16x256xf32>
    %16 = arith.addf %12, %15 : vector<1x16x256xf32>
    %17 = math.rsqrt %16 : vector<1x16x256xf32>
    %18 = vector.broadcast %17 : vector<1x16x256xf32> to vector<32x16x256xf32>
    %19 = arith.mulf %14, %18 : vector<32x16x256xf32>
    %20 = vector.shape_cast %19 : vector<32x16x256xf32> to vector<512x256xf32>
    %c0_7 = arith.constant 0 : index
    %c0_8 = arith.constant 0 : index
    %21 = vector.load %arg3[%c0_7, %c0_8] : memref<256x512xf32, #tpu.memory_space<vmem>>, vector<256x512xf32>
    %cst_9 = arith.constant dense<0.000000e+00> : vector<256x256xf32>
    %22 = tpu.matmul %21, %20, %cst_9 {dimension_numbers = #tpu.dot_dimension_numbers<[1], [0], [0], [1], [0, 0, 1, 1], [], []>} : vector<256x512xf32>, vector<512x256xf32>, vector<256x256xf32> -> vector<256x256xf32>
    %c0_10 = arith.constant 0 : index
    %c0_11 = arith.constant 0 : index
    %23 = vector.load %arg4[%c0_10, %c0_11] : memref<256x256xf32, #tpu.memory_space<vmem>>, vector<256x256xf32>
    %24 = arith.addf %22, %23 : vector<256x256xf32>
    %c0_12 = arith.constant 0 : index
    %c0_13 = arith.constant 0 : index
    %c0_14 = arith.constant 0 : index
    %25 = vector.load %arg5[%c0_12, %c0_13, %c0_14] : memref<1x256x256xf32, #tpu.memory_space<vmem>>, vector<1x256x256xf32>
    %26 = vector.shape_cast %25 : vector<1x256x256xf32> to vector<256x256xf32>
    %27 = vector.shape_cast %24 : vector<256x256xf32> to vector<1x256x256xf32>
    tpu.vector_store %arg5[%c0_12, %c0_13, %c0_14], %27 {strides = array<i32>} : memref<1x256x256xf32, #tpu.memory_space<vmem>>, vector<1x256x256xf32>,
    return
  }
  func.func @transform_0(%arg0: i32, %arg1: i32) -> (i32, i32, i32, i32) {
    %c0_i32 = arith.constant 0 : i32
    %c0_i32_0 = arith.constant 0 : i32
    %c0_i32_1 = arith.constant 0 : i32
    return %arg0, %c0_i32, %c0_i32_0, %arg1 : i32, i32, i32, i32
  }
  func.func @transform_1(%arg0: i32, %arg1: i32) -> (i32, i32) {
    %c0_i32 = arith.constant 0 : i32
    %c0_i32_0 = arith.constant 0 : i32
    %c0_i32_1 = arith.constant 0 : i32
    return %c0_i32, %c0_i32_0 : i32, i32
  }
  func.func @transform_2(%arg0: i32, %arg1: i32) -> (i32, i32) {
    %c0_i32 = arith.constant 0 : i32
    %c0_i32_0 = arith.constant 0 : i32
    %c0_i32_1 = arith.constant 0 : i32
    return %c0_i32, %c0_i32_0 : i32, i32
  }
  func.func @transform_3(%arg0: i32, %arg1: i32) -> (i32, i32, i32) {
    %c0_i32 = arith.constant 0 : i32
    %c0_i32_0 = arith.constant 0 : i32
    return %arg0, %c0_i32, %arg1 : i32, i32, i32
  }
}

</mosaic_0001>

<bundles_post_ra>
// kernel: tpu_custom_call.1
= control target key start
LH: loop header
LB: loop body
LE: loop exit
PB: predicated region body
PF: predicated region fallthrough
CT: control target
= control target key end

     0   :  { %s4525_s0 = inlined_call_operand.hbm [shape: f32[2,32,16,512], index: 0, kind: input, shape index: {}]   ;;  %s4526_s1 = inlined_call_operand.hbm [shape: f32[256,512], index: 1, kind: input, shape index: {}]   ;;  %s4527_s2 = inlined_call_operand.hbm [shape: f32[256,256], index: 2, kind: input, shape index: {}]   ;;  %s4528_s3 = inlined_call_operand.hbm [shape: f32[2,256,512], index: 3, kind: output, shape index: {}]  }
   0x1   :  { %4643 = sst [smem:[#allocation64_spill]] %s4526_s1 }
   0x2   :  { %4644 = sst [smem:[#allocation65_spill]] %s4527_s2 }
   0x3   :  { %8 = vsyncpa [#allocation3], 0 }
   0x4   :  { %10 = vsyncpa [#allocation3 + $0x1], 0 }
   0x5   :  { %11 = vsyncpa [#allocation6], 0 }
   0x6   :  { %12 = vsyncpa [#allocation4], 0 }
   0x7   :  { %14 = vsyncpa [#allocation4 + $0x1], 0  ;;  %s2590_s12 = smov 0   ;;  %s2592_s13 = smov 0  }
   0x8   :  { %s2594_s14 = smov 0   ;;  %s2596_s15 = smov 0  }
   0x9   :  { %s2598_s16 = smov 0   ;;  %s2600_s17 = smov 0  }
   0xa   :  { %s2602_s18 = smov 0   ;;  %s2604_s19 = smov 0  }
   0xb LB: > { %s1918_s20 = sadd.s32 4294967295, %s2557_s19   ;;  %s1919_s21 = sadd.s32 4294967294, %s2557_s19   ;;  %s2557_s19 = sphi %s2604_s19, %s20_s19   ;;  %s2553_s18 = sphi %s2602_s18, %s4913_s18   ;;  %s2549_s17 = sphi %s2600_s17, %s4912_s17   ;;  %s2545_s16 = sphi %s2598_s16, %s4911_s16   ;;  %s2541_s15 = sphi %s2596_s15, %s4910_s15   ;;  %s2537_s14 = sphi %s2594_s14, %s4909_s14   ;;  %s2533_s13 = sphi %s2592_s13, %s4908_s13   ;;  %s2529_s12 = sphi %s2590_s12, %s4907_s12  }
   0xc   : > { %p48_p0 = scmp.ne.s32.totalorder %s2537_s14, %s2533_s13  ;;  %p49_p1 = scmp.eq.s32.totalorder %s2557_s19, 0 }
   0xd   : > { %p54_p2 = scmp.ne.s32.totalorder %s2533_s13, %s2529_s12  ;;  %p2638_p3 = scmp.eq.s32.totalorder %s1918_s20, 0 }
   0xe   : > { %p122_p4 = scmp.eq.s32.totalorder %s1918_s20, 3  ;;  %p2642_p5 = por %p49_p1, %p48_p0 }
   0xf   : > { %s4645_s23 = scalar_select %p2638_p3, 1, 0 }
  0x10   : > { %p128_p6 = scmp.eq.s32.totalorder %s1919_s21, 3  ;;  %p2648_p7 = por %p2638_p3, %p54_p2 }
  0x11   : > { %p2652_p8 = por %p122_p4, %p48_p0  ;;  %p1920_p10 = scmp.ge.s32.totalorder %s2557_s19, 1 }
  0x12   : > { %s4647_s25 = scalar_select %p2648_p7, 1, 0 }
  0x13   : > { %s4648_s26 = scalar_select %p2652_p8, 1, 0 }
  0x14   : > { %p2656_p9 = por %p128_p6, %p54_p2  ;;  %p135_p11 = scmp.lt.s32.totalorder %s2557_s19, 5 }
  0x15   : > { %s2559_s29 = smov [#allocation5]   ;;  %p2224_p0 = scmp.lt.s32.totalorder %s2557_s19, 4 }
  0x16   : > { %s4649_s27 = scalar_select %p2656_p9, 1, 0 }
  0x17   : > { %p2662_p12 = pnand %p1920_p10, %p135_p11  ;;  %s147_s30 = sshll.u32 %s2559_s29, 4  ;;  %s2666_s30 = int_to_ptr.vmem [resolvable:$true] %s147_s30 }
  0x18   : > { %4650 = sst [smem:[#allocation12_spill]] %s4649_s27  ;;  %s2560_s5 = smov [#allocation7]  }
  0x19   : > { %p2207_p13 = pneg %p2662_p12  ;;  %s160_s6 = sshll.u32 %s2560_s5, 4  ;;  %s2683_s6 = int_to_ptr.vmem [resolvable:$true] %s160_s6 }
  0x1a   : > { %p2679_p2 = pnand %p2224_p0, %p2642_p5  ;;  %s4654_s1 = sld [smem:[#allocation64_spill]] }
  0x1b   : > { %p2673_p1 = pnand %p2207_p13, %p2638_p3 }
  0x1d   : > { %p2371_p6 = pneg %p2673_p1 }
  0x20   : > { %s2369_s10 = scalar_lea.hbm %s4654_s1, 16384 }
  0x21   : > { %p2370_p4 = scmp.ne.s32.totalorder %s4654_s1, %s2369_s10  ;;  %p2376_p5 = scmp.lt.u32.totalorder %s2369_s10, %s4654_s1 }
  0x23   : > { %p2372_p10 = pnand %p2371_p6, %p2370_p4 }
  0x25   : > { %p2373_p11 = pneg %p2372_p10 }
  0x27   : > { %p2378_p13 = pnand %p2376_p5, %p2373_p11 }
  0x29   : > { %2381 = shalt.err (!%p2378_p13)
}
  0x2a   : > { %s2382_s29 = scalar_lea.vmem %s2666_s30, 16384  ;;  %p2390_p3 = scmp.lt.s32.totalorder %s2666_s30, %s2666_s30 }
  0x2b   : > { %p2383_p0 = scmp.ne.s32.totalorder %s2666_s30, %s2382_s29  ;;  %p2391_p4 = scmp.lt.s32.totalorder %s2382_s29, %s2382_s29 }
  0x2d   : > { %p2385_p9 = pnand %p2383_p0, %p2371_p6  ;;  %p2392_p10 = por %p2391_p4, %p2390_p3 }
  0x2f   : > { %p2386_p8 = pneg %p2385_p9 }
  0x31   : > { %p2393_p7 = pnand %p2392_p10, %p2386_p8 }
  0x33   : > { %2396 = shalt.err (!%p2393_p7)
}
  0x34   : > { %s4534_s5 = smov 512   ;;  %s2562_s8 = smov 32  }
  0x35   : > { %2210 = dma.hbm_to_vmem [thread:$0]  (!%p2673_p1), %s4654_s1, 16384, %s2666_s30, [#allocation6], %s4534_s5, %s4534_s5, %s2562_s8  }
  0x36   : > { %s4655_s2 = sld [smem:[#allocation65_spill]] }
  0x3c   : > { %s2397_s21 = scalar_lea.hbm %s4655_s2, 8192 }
  0x3d   : > { %p2398_p3 = scmp.ne.s32.totalorder %s4655_s2, %s2397_s21  ;;  %p2404_p9 = scmp.lt.u32.totalorder %s2397_s21, %s4655_s2 }
  0x3f   : > { %p2400_p7 = pnand %p2398_p3, %p2371_p6 }
  0x41   : > { %p2401_p8 = pneg %p2400_p7 }
  0x43   : > { %p2406_p11 = pnand %p2404_p9, %p2401_p8 }
  0x45   : > { %2409 = shalt.err (!%p2406_p11)
}
  0x46   : > { %s2410_s30 = scalar_lea.vmem %s2683_s6, 8192  ;;  %p2418_p4 = scmp.lt.s32.totalorder %s2683_s6, %s2683_s6 }
  0x47   : > { %p2411_p5 = scmp.ne.s32.totalorder %s2683_s6, %s2410_s30  ;;  %p2419_p10 = scmp.lt.s32.totalorder %s2410_s30, %s2410_s30 }
  0x49   : > { %p2413_p13 = pnand %p2411_p5, %p2371_p6  ;;  %p2420_p3 = por %p2419_p10, %p2418_p4 }
  0x4b   : > { %p2414_p0 = pneg %p2413_p13 }
  0x4d   : > { %p2421_p7 = pnand %p2420_p3, %p2414_p0 }
  0x4f   : > { %2424 = shalt.err (!%p2421_p7)
}
  0x50   : > { %s4535_s22 = smov 256   ;;  %s4536_s27 = smov 16  }
  0x51   : > { %2213 = dma.hbm_to_vmem [thread:$0]  (!%p2673_p1), %s4655_s2, 8192, %s2683_s6, [#allocation6], %s4535_s22, %s4535_s22, %s4536_s27  }
  0x52   : > { %s29_s10 = sadd.s32 1, %s2549_s17  ;;  %s32_s11 = sadd.s32 1, %s2553_s18 }
  0x53   : > { %p30_p6 = scmp.ge.s32.totalorder %s29_s10, 2  ;;  %s174_s20 = sand.u32 1, %s2537_s14  }
  0x54   : > { %s1924_s21 = sshll.u32 %s174_s20, 10  ;;  %s1925_s4 = sshll.u32 %s2549_s17, 1 }
  0x55   : > { %s4915_s10 = smov (%p30_p6, %s29_s10), 0  ;;  %s4917_s11 = smov (!%p30_p6, %s32_s11), %s2553_s18 }
  0x56   : > { %s37_s24 = ssub.s32 %s2549_s17, %s4915_s10  ;;  %p34_p8 = scmp.ge.s32.totalorder %s4917_s11, 2 }
  0x57   : > { %s1926_s29 = sshll.u32 %s2553_s18, 8  ;;  %s178_s30 = scalar_lea.vmem [#allocation2], %s1924_s21 }
  0x58   : > { %s187_s5 = sshll.u32 %s178_s30, 4  ;;  %s4919_s11 = smov (%p34_p8, %s4917_s11), 0  ;;  %s2754_s5 = int_to_ptr.vmem [resolvable:$true] %s187_s5 }
  0x59   : > { %s184_s6 = sadd.s32 %s1926_s29, %s1925_s4  ;;  %s36_s8 = ssub.s32 %s2553_s18, %s4919_s11 }
  0x5a   : > { %s1927_s9 = sshll.u32 %s184_s6, 7  ;;  %s2758_s22 = sor.u32 %s37_s24, %s36_s8 }
  0x5b   : > { %s2763_s2 = scalar_lea.hbm %s4525_s0, %s1927_s9  ;;  %s2766_s21 = scalar_lea.sflag [#allocation3], %s174_s20 }
  0x5c   : > { %s2425_s4 = scalar_lea.hbm %s2763_s2, 16384  ;;  %p2427_p11 = pneg %p2679_p2 }
  0x5d   : > { %p2426_p9 = scmp.ne.s32.totalorder %s2763_s2, %s2425_s4  ;;  %s2430_s27 = scalar_lea.hbm %s4525_s0, 65536 }
  0x5e   : > { %p2431_p0 = scmp.lt.u32.totalorder %s2763_s2, %s4525_s0  ;;  %p2432_p4 = scmp.lt.u32.totalorder %s2430_s27, %s2425_s4 }
  0x5f   : > { %p2428_p5 = pnand %p2427_p11, %p2426_p9  ;;  %p2434_p3 = scmp.lt.u32.totalorder %s2425_s4, %s2763_s2 }
  0x60   : > { %p2433_p10 = por %p2432_p4, %p2431_p0 }
  0x61   : > { %p2429_p13 = pneg %p2428_p5 }
  0x62   : > { %p2435_p7 = por %p2434_p3, %p2433_p10 }
  0x64   : > { %p2436_p6 = pnand %p2435_p7, %p2429_p13 }
  0x66   : > { %2439 = shalt.err (!%p2436_p6)
}
  0x67   : > { %s2440_s20 = scalar_lea.vmem %s2754_s5, 16384  ;;  %s2565_s6 = smov [#allocation2]  }
  0x68   : > { %p2441_p8 = scmp.ne.s32.totalorder %s2754_s5, %s2440_s20  ;;  %s2445_s8 = sshll.u32 %s2565_s6, 4  ;;  %s2446_s8 = int_to_ptr.vmem [resolvable:$false] %s2445_s8 }
  0x69   : > { %s2447_s9 = scalar_lea.vmem %s2446_s8, 32768  ;;  %p2448_p1 = scmp.lt.s32.totalorder %s2754_s5, %s2446_s8 }
  0x6a   : > { %p2443_p9 = pnand %p2441_p8, %p2427_p11  ;;  %p2449_p0 = scmp.lt.s32.totalorder %s2447_s9, %s2440_s20 }
  0x6c   : > { %p2444_p5 = pneg %p2443_p9  ;;  %p2450_p4 = por %p2449_p0, %p2448_p1 }
  0x6e   : > { %p2451_p10 = pnand %p2450_p4, %p2444_p5 }
  0x70   : > { %2454 = shalt.err (!%p2451_p10)
}
  0x71   : > { %s4656_s4 = smov 16   ;;  %s4657_s24 = smov 256  }
  0x72   : > { %s4658_s1 = smov 512   ;;  %s4659_s27 = sadd.s32 1, %s2537_s14 }
  0x73   : > { %2217 = dma.hbm_to_vmem [thread:$0]  (!%p2679_p2), %s2763_s2, 16384, %s2754_s5, %s2766_s21, %s4658_s1, %s4657_s24, %s4656_s4  }
  0x74   : > { %p4660_p11 = scmp.eq.s32.totalorder %s2758_s22, 0  ;;  %199 = sbr.rel (%p2662_p12) target bundleno = 716 (0x2cc), region = 32 }
  0x76   : > { %s2802_s29 = scalar_select %p4660_p11, %s2537_s14, %s4659_s27  }
  0x7b   : > { %s2807_s7 = sand.u32 1, %s2533_s13   ;;  %p4661_p1 = scmp.ne.s32.totalorder %s4647_s25, 0 }
  0x7c   : > { %s1929_s30 = sshll.u32 %s2807_s7, 10  ;;  %s202_s20 = scalar_lea.sflag [#allocation3], %s2807_s7 }
  0x7d   : > { %s2811_s6 = scalar_lea.vmem [#allocation2], %s1929_s30 }
  0x7e   : > { %2516 = dma.done.wait (%p4661_p1), %s202_s20, 16384  }
  0x7f   : > { %2518 = vsyncadd (%p4661_p1), %s202_s20, 4294950912  ;;  %p4662_p2 = scmp.ne.s32.totalorder %s4645_s23, 0 }
  0x81   : > { %2520 = dma.done.wait (%p4662_p2), [#allocation6], 24576  }
  0x82   : > { %2522 = vsyncadd (%p4662_p2), [#allocation6], 4294942720  ;;  %v2822_v0 = vld [vmem:[%s2811_s6 + $0x8] sm:$0xff]  ;;  %v2825_v1 = vld [vmem:[%s2811_s6 + $0x18] sm:$0xff]  ;;  %s1932_s2 = sshll.u32 %s2807_s7, 9  ;;  %s1934_s25 = sshll.u32 %s2541_s15, 1 }
  0x83   : > { %4663 = vst [vmem:[#allocation13_spill] sm:$0xff] %v2822_v0  ;;  %4664 = vst [vmem:[#allocation14_spill] sm:$0xff] %v2825_v1  ;;  %v243_v2 = vld [vmem:[%s2811_s6 + $0x28] sm:$0xff]  ;;  %v245_v3 = vld [vmem:[%s2811_s6 + $0x38] sm:$0xff]  ;;  %v496_v39 = vmul.f32 %v2822_v0, %v2822_v0  ;;  %v498_v42 = vmul.f32 %v2825_v1, %v2825_v1  ;;  %s4397_s23 = scalar_lea.vmem [#allocation8], %s1932_s2  ;;  %s1935_s28 = sshll.u32 %s2545_s16, 7 }
  0x84   : > { %v247_v4 = vld [vmem:[%s2811_s6 + $0x48] sm:$0xff]  ;;  %v249_v5 = vld [vmem:[%s2811_s6 + $0x58] sm:$0xff]  ;;  %v397_v6 = vadd.f32 %v243_v2, %v2822_v0  ;;  %v459_v8 = vadd.f32 %v245_v3, %v2825_v1  ;;  %v500_v43 = vmul.f32 %v243_v2, %v243_v2  ;;  %v502_v44 = vmul.f32 %v245_v3, %v245_v3  ;;  %v2906_v55 = vld [vmem:[%s2811_s6] sm:$0xff]  ;;  %s1806_s5 = sadd.s32 %s1935_s28, %s1934_s25  ;;  %s1809_s16 = sshll.u32 %s4397_s23, 4  ;;  %s4469_s16 = int_to_ptr.vmem [resolvable:$true] %s1809_s16 }
  0x85   : > { %v251_v7 = vld [vmem:[%s2811_s6 + $0x68] sm:$0xff]  ;;  %v253_v9 = vld [vmem:[%s2811_s6 + $0x78] sm:$0xff]  ;;  %v504_v50 = vmul.f32 %v247_v4, %v247_v4  ;;  %v506_v51 = vmul.f32 %v249_v5, %v249_v5  ;;  %v2909_v56 = vld [vmem:[%s2811_s6 + $0x10] sm:$0xff]  ;;  %s1936_s15 = sshll.u32 %s1806_s5, 7  ;;  %s1794_s9 = scalar_lea.sflag [#allocation4], %s2807_s7 }
  0x86   : > { %v398_v10 = vadd.f32 %v397_v6, %v247_v4  ;;  %v255_v11 = vld [vmem:[%s2811_s6 + $0x88] sm:$0xff]  ;;  %v460_v12 = vadd.f32 %v459_v8, %v249_v5  ;;  %v257_v13 = vld [vmem:[%s2811_s6 + $0x98] sm:$0xff]  ;;  %v508_v54 = vmul.f32 %v251_v7, %v251_v7  ;;  %v510_v58 = vmul.f32 %v253_v9, %v253_v9  ;;  %v2913_v61 = vld [vmem:[%s2811_s6 + $0x20] sm:$0xff]  ;;  %s4467_s8 = scalar_lea.hbm %s4528_s3, %s1936_s15  ;;  %s2455_s4 = scalar_lea.vmem %s4469_s16, 8192 }
  0x87   : > { %v2838_v15 = vld [vmem:[%s2811_s6 + $0xa8] sm:$0xff]  ;;  %v2841_v17 = vld [vmem:[%s2811_s6 + $0xb8] sm:$0xff]  ;;  %v654_v59 = vadd.f32 %v500_v43, %v496_v39  ;;  %v716_v60 = vadd.f32 %v502_v44, %v498_v42  ;;  %v2916_v62 = vld [vmem:[%s2811_s6 + $0x30] sm:$0xff]  ;;  %v512_v4 = vmul.f32 %v255_v11, %v255_v11  ;;  %v366_v6 = vadd.f32 %v2913_v61, %v2906_v55  ;;  %p2456_p12 = scmp.ne.s32.totalorder %s4469_s16, %s2455_s4  ;;  %p4904_p13 = scmp.ne.s32.totalorder %s4648_s26, 0 }
  0x88   : > { %v399_v14 = vadd.f32 %v398_v10, %v251_v7  ;;  %v461_v16 = vadd.f32 %v460_v12, %v253_v9  ;;  %v2844_v19 = vld [vmem:[%s2811_s6 + $0xc8] sm:$0xff]  ;;  %v2847_v21 = vld [vmem:[%s2811_s6 + $0xd8] sm:$0xff]  ;;  %v2919_v63 = vld [vmem:[%s2811_s6 + $0x40] sm:$0xff]  ;;  %v428_v7 = vadd.f32 %v2916_v62, %v2909_v56  ;;  %v514_v10 = vmul.f32 %v257_v13, %v257_v13  ;;  %s2566_s24 = smov [#allocation8]  }
  0x89   : > { %v2851_v23 = vld [vmem:[%s2811_s6 + $0xe8] sm:$0xff]  ;;  %v2855_v25 = vld [vmem:[%s2811_s6 + $0xf8] sm:$0xff]  ;;  %v2926_v5 = vld [vmem:[%s2811_s6 + $0x50] sm:$0xff]  ;;  %v655_v12 = vadd.f32 %v654_v59, %v504_v50  ;;  %p2457_p3 = pnand %p2456_p12, %p4904_p13  ;;  %s2459_s1 = sshll.u32 %s2566_s24, 4  ;;  %s2460_s1 = int_to_ptr.vmem [resolvable:$false] %s2459_s1 }
  0x8a   : > { %v400_v18 = vadd.f32 %v399_v14, %v255_v11  ;;  %v462_v20 = vadd.f32 %v461_v16, %v257_v13  ;;  %v2859_v27 = vld [vmem:[%s2811_s6 + $0x108] sm:$0xff]  ;;  %v2863_v29 = vld [vmem:[%s2811_s6 + $0x118] sm:$0xff]  ;;  %v717_v14 = vadd.f32 %v716_v60, %v506_v51  ;;  %v2937_v11 = vld [vmem:[%s2811_s6 + $0x60] sm:$0xff]  ;;  %v429_v13 = vadd.f32 %v428_v7, %v2926_v5  ;;  %s2461_s27 = scalar_lea.vmem %s2460_s1, 16384  ;;  %p2462_p6 = scmp.lt.s32.totalorder %s4469_s16, %s2460_s1 }
  0x8b   : > { %v2867_v31 = vld [vmem:[%s2811_s6 + $0x128] sm:$0xff]  ;;  %v2871_v33 = vld [vmem:[%s2811_s6 + $0x138] sm:$0xff]  ;;  %v2940_v16 = vld [vmem:[%s2811_s6 + $0x70] sm:$0xff]  ;;  %p2458_p7 = pneg %p2457_p3  ;;  %p2463_p8 = scmp.lt.s32.totalorder %s2461_s27, %s2455_s4 }
  0x8c   : > { %v401_v22 = vadd.f32 %v400_v18, %v2838_v15  ;;  %v463_v24 = vadd.f32 %v462_v20, %v2841_v17  ;;  %v2875_v35 = vld [vmem:[%s2811_s6 + $0x148] sm:$0xff]  ;;  %v2879_v37 = vld [vmem:[%s2811_s6 + $0x158] sm:$0xff]  ;;  %v2977_v51 = vld [vmem:[%s2811_s6 + $0xa0] sm:$0xff] }
  0x8d   : > { %v2885_v40 = vld [vmem:[%s2811_s6 + $0x168] sm:$0xff]  ;;  %v2891_v45 = vld [vmem:[%s2811_s6 + $0x178] sm:$0xff]  ;;  %4667 = vst [vmem:[#allocation17_spill] sm:$0xff] %v2977_v51  ;;  %v2997_v7 = vld [vmem:[%s2811_s6 + $0xc0] sm:$0xff]  ;;  %p2464_p9 = por %p2463_p8, %p2462_p6 }
  0x8e   : > { %v402_v26 = vadd.f32 %v401_v22, %v2844_v19  ;;  %v464_v28 = vadd.f32 %v463_v24, %v2847_v21  ;;  %v2895_v47 = vld [vmem:[%s2811_s6 + $0x188] sm:$0xff]  ;;  %v2898_v48 = vld [vmem:[%s2811_s6 + $0x198] sm:$0xff]  ;;  %v516_v22 = vmul.f32 %v2838_v15, %v2838_v15  ;;  %v367_v24 = vadd.f32 %v366_v6, %v2919_v63  ;;  %v3120_v0 = vld [vmem:[%s2811_s6 + $0x190] sm:$0xff] }
  0x8f   : > { %v2902_v52 = vld [vmem:[%s2811_s6 + $0x1a8] sm:$0xff]  ;;  %v2922_v2 = vld [vmem:[%s2811_s6 + $0x1b8] sm:$0xff]  ;;  %4688 = vst [vmem:[#allocation38_spill] sm:$0xff] %v3120_v0  ;;  %p2465_p5 = pnand %p2464_p9, %p2458_p7 }
  0x90   : > { %v403_v30 = vadd.f32 %v402_v26, %v2851_v23  ;;  %v465_v32 = vadd.f32 %v464_v28, %v2855_v25  ;;  %v2933_v8 = vld [vmem:[%s2811_s6 + $0x1c8] sm:$0xff]  ;;  %v2943_v18 = vld [vmem:[%s2811_s6 + $0x1d8] sm:$0xff]  ;;  %v368_v42 = vadd.f32 %v367_v24, %v2937_v11  ;;  %v530_v24 = vmul.f32 %v2863_v29, %v2863_v29 }
  0x91   : > { %v2951_v26 = vld [vmem:[%s2811_s6 + $0x1e8] sm:$0xff]  ;;  %v2963_v15 = vld [vmem:[%s2811_s6 + $0x1f8] sm:$0xff] }
  0x92   : > { %v404_v34 = vadd.f32 %v403_v30, %v2859_v27  ;;  %v466_v36 = vadd.f32 %v465_v32, %v2863_v29  ;;  %v518_v30 = vmul.f32 %v2841_v17, %v2841_v17  ;;  %v656_v32 = vadd.f32 %v655_v12, %v508_v54  ;;  %v2971_v43 = vld [vmem:[%s2811_s6 + $0x208] sm:$0xff] }
  0x93   : > { %v430_v17 = vadd.f32 %v429_v13, %v2940_v16  ;;  %4666 = vst [vmem:[#allocation16_spill] sm:$0xff] %v2971_v43  ;;  %v2991_v59 = vld [vmem:[%s2811_s6 + $0x228] sm:$0xff]  ;;  %v528_v12 = vmul.f32 %v2859_v27, %v2859_v27  ;;  %v3023_v27 = vld [vmem:[%s2811_s6 + $0x258] sm:$0xff] }
  0x94   : > { %v405_v38 = vadd.f32 %v404_v34, %v2867_v31  ;;  %v467_v41 = vadd.f32 %v466_v36, %v2871_v33  ;;  %v718_v34 = vadd.f32 %v717_v14, %v510_v58  ;;  %v2957_v36 = vld [vmem:[%s2811_s6 + $0x80] sm:$0xff]  ;;  %4670 = vst [vmem:[#allocation20_spill] sm:$0xff] %v2991_v59  ;;  %4673 = vst [vmem:[#allocation23_spill] sm:$0xff] %v3023_v27  ;;  %v3111_v1 = vld [vmem:[%s2811_s6 + $0x2e8] sm:$0xff] }
  0x95   : > { %v369_v58 = vadd.f32 %v368_v42, %v2957_v36  ;;  %4686 = vst [vmem:[#allocation36_spill] sm:$0xff] %v3111_v1 }
  0x96   : > { %v406_v46 = vadd.f32 %v405_v38, %v2875_v35  ;;  %v468_v49 = vadd.f32 %v467_v41, %v2879_v37  ;;  %v2960_v38 = vld [vmem:[%s2811_s6 + $0x90] sm:$0xff]  ;;  %v520_v41 = vmul.f32 %v2844_v19, %v2844_v19  ;;  %v719_v50 = vadd.f32 %v718_v34, %v514_v10  ;;  %v2983_v19 = vld [vmem:[%s2811_s6 + $0x218] sm:$0xff] }
  0x97   : > { %4665 = vst [vmem:[#allocation15_spill] sm:$0xff] %v2960_v38  ;;  %4669 = vst [vmem:[#allocation19_spill] sm:$0xff] %v2983_v19  ;;  %v370_v14 = vadd.f32 %v369_v58, %v2977_v51 }
  0x98   : > { %v407_v53 = vadd.f32 %v406_v46, %v2885_v40  ;;  %v469_v57 = vadd.f32 %v468_v49, %v2891_v45  ;;  %v522_v46 = vmul.f32 %v2847_v21, %v2847_v21  ;;  %v657_v49 = vadd.f32 %v656_v32, %v512_v4  ;;  %v3020_v32 = vld [vmem:[%s2811_s6 + $0xf0] sm:$0xff] }
  0x99   : > { %v431_v21 = vadd.f32 %v430_v17, %v2960_v38  ;;  %v720_v6 = vadd.f32 %v719_v50, %v518_v30  ;;  %v3017_v30 = vld [vmem:[%s2811_s6 + $0xe0] sm:$0xff]  ;;  %v371_v42 = vadd.f32 %v370_v14, %v2997_v7  ;;  %v3031_v17 = vld [vmem:[%s2811_s6 + $0x268] sm:$0xff] }
  0x9a   : > { %v408_v3 = vadd.f32 %v407_v53, %v2895_v47  ;;  %v470_v9 = vadd.f32 %v469_v57, %v2898_v48  ;;  %v2980_v53 = vld [vmem:[%s2811_s6 + $0xb0] sm:$0xff]  ;;  %v524_v57 = vmul.f32 %v2851_v23, %v2851_v23  ;;  %v658_v4 = vadd.f32 %v657_v49, %v516_v22  ;;  %v3003_v23 = vld [vmem:[%s2811_s6 + $0x238] sm:$0xff]  ;;  %4674 = vst [vmem:[#allocation24_spill] sm:$0xff] %v3031_v17  ;;  %v3037_v50 = vld [vmem:[%s2811_s6 + $0x100] sm:$0xff] }
  0x9b   : > { %4668 = vst [vmem:[#allocation18_spill] sm:$0xff] %v2980_v53  ;;  %4671 = vst [vmem:[#allocation21_spill] sm:$0xff] %v3003_v23  ;;  %v3057_v14 = vld [vmem:[%s2811_s6 + $0x120] sm:$0xff] }
  0x9c   : > { %v409_v20 = vadd.f32 %v408_v3, %v2902_v52  ;;  %v471_v28 = vadd.f32 %v470_v9, %v2922_v2  ;;  %v526_v3 = vmul.f32 %v2855_v25, %v2855_v25  ;;  %v3000_v9 = vld [vmem:[%s2811_s6 + $0xd0] sm:$0xff]  ;;  %v432_v25 = vadd.f32 %v431_v21, %v2980_v53 }
  0x9d   : > { %v659_v13 = vadd.f32 %v658_v4, %v520_v41  ;;  %v536_v21 = vmul.f32 %v2875_v35, %v2875_v35  ;;  %v3051_v4 = vld [vmem:[%s2811_s6 + $0x288] sm:$0xff]  ;;  %v3063_v35 = vld [vmem:[%s2811_s6 + $0x298] sm:$0xff] }
  0x9e   : > { %v410_v39 = vadd.f32 %v409_v20, %v2933_v8  ;;  %v472_v44 = vadd.f32 %v471_v28, %v2943_v18  ;;  %v3011_v20 = vld [vmem:[%s2811_s6 + $0x248] sm:$0xff]  ;;  %v721_v28 = vadd.f32 %v720_v6, %v522_v46  ;;  %v433_v29 = vadd.f32 %v432_v25, %v3000_v9  ;;  %4676 = vst [vmem:[#allocation26_spill] sm:$0xff] %v3051_v4  ;;  %v3060_v25 = vld [vmem:[%s2811_s6 + $0x130] sm:$0xff] }
  0x9f   : > { %4672 = vst [vmem:[#allocation22_spill] sm:$0xff] %v3011_v20  ;;  %v660_v46 = vadd.f32 %v659_v13, %v524_v57  ;;  %4677 = vst [vmem:[#allocation27_spill] sm:$0xff] %v3063_v35  ;;  %v540_v13 = vmul.f32 %v2885_v40, %v2885_v40  ;;  %v3083_v40 = vld [vmem:[%s2811_s6 + $0x2b8] sm:$0xff] }
  0xa0   : > { %v411_v54 = vadd.f32 %v410_v39, %v2951_v26  ;;  %v473_v60 = vadd.f32 %v472_v44, %v2963_v15  ;;  %v532_v39 = vmul.f32 %v2867_v31, %v2867_v31  ;;  %v534_v44 = vmul.f32 %v2871_v33, %v2871_v33  ;;  %v3043_v31 = vld [vmem:[%s2811_s6 + $0x278] sm:$0xff]  ;;  %4681 = vst [vmem:[#allocation31_spill] sm:$0xff] %v3083_v40 }
  0xa1   : > { %v722_v49 = vadd.f32 %v721_v28, %v526_v3  ;;  %4675 = vst [vmem:[#allocation25_spill] sm:$0xff] %v3043_v31  ;;  %v434_v33 = vadd.f32 %v433_v29, %v3020_v32  ;;  %v538_v3 = vmul.f32 %v2879_v37, %v2879_v37  ;;  %v661_v6 = vadd.f32 %v660_v46, %v528_v12  ;;  %v3080_v46 = vld [vmem:[%s2811_s6 + $0x150] sm:$0xff] }
  0xa2   : > { %v412_v10 = vadd.f32 %v411_v54, %v2971_v43  ;;  %v474_v22 = vadd.f32 %v473_v60, %v2983_v19  ;;  %v3040_v54 = vld [vmem:[%s2811_s6 + $0x110] sm:$0xff]  ;;  %v372_v60 = vadd.f32 %v371_v42, %v3017_v30  ;;  %4680 = vst [vmem:[#allocation30_spill] sm:$0xff] %v3080_v46 }
  0xa3   : > { %v435_v37 = vadd.f32 %v434_v33, %v3040_v54  ;;  %v662_v42 = vadd.f32 %v661_v6, %v532_v39  ;;  %v3091_v33 = vld [vmem:[%s2811_s6 + $0x2c8] sm:$0xff] }
  0xa4   : > { %v413_v34 = vadd.f32 %v412_v10, %v2991_v59  ;;  %v475_v41 = vadd.f32 %v474_v22, %v3003_v23  ;;  %v723_v10 = vadd.f32 %v722_v49, %v530_v24  ;;  %v373_v28 = vadd.f32 %v372_v60, %v3037_v50  ;;  %4682 = vst [vmem:[#allocation32_spill] sm:$0xff] %v3091_v33 }
  0xa5   : > { %v542_v24 = vmul.f32 %v2891_v45, %v2891_v45  ;;  %v436_v45 = vadd.f32 %v435_v37, %v3060_v25  ;;  %v548_v37 = vmul.f32 %v2902_v52, %v2902_v52  ;;  %v3123_v52 = vld [vmem:[%s2811_s6 + $0x2f8] sm:$0xff] }
  0xa6   : > { %v414_v58 = vadd.f32 %v413_v34, %v3011_v20  ;;  %v476_v57 = vadd.f32 %v475_v41, %v3023_v27  ;;  %v3071_v34 = vld [vmem:[%s2811_s6 + $0x2a8] sm:$0xff]  ;;  %v724_v29 = vadd.f32 %v723_v10, %v534_v44  ;;  %v3077_v41 = vld [vmem:[%s2811_s6 + $0x140] sm:$0xff]  ;;  %v374_v60 = vadd.f32 %v373_v28, %v3057_v14  ;;  %4689 = vst [vmem:[#allocation39_spill] sm:$0xff] %v3123_v52 }
  0xa7   : > { %4678 = vst [vmem:[#allocation28_spill] sm:$0xff] %v3071_v34  ;;  %4679 = vst [vmem:[#allocation29_spill] sm:$0xff] %v3077_v41  ;;  %v546_v44 = vmul.f32 %v2898_v48, %v2898_v48  ;;  %v3097_v10 = vld [vmem:[%s2811_s6 + $0x160] sm:$0xff]  ;;  %v437_v48 = vadd.f32 %v436_v45, %v3080_v46  ;;  %v552_v45 = vmul.f32 %v2933_v8, %v2933_v8  ;;  %v3131_v46 = vld [vmem:[%s2811_s6 + $0x308] sm:$0xff] }
  0xa8   : > { %v415_v22 = vadd.f32 %v414_v58, %v3031_v17  ;;  %v477_v12 = vadd.f32 %v476_v57, %v3043_v31  ;;  %v544_v58 = vmul.f32 %v2895_v47, %v2895_v47  ;;  %v663_v57 = vadd.f32 %v662_v42, %v536_v21  ;;  %4683 = vst [vmem:[#allocation33_spill] sm:$0xff] %v3097_v10  ;;  %v3103_v47 = vld [vmem:[%s2811_s6 + $0x2d8] sm:$0xff] }
  0xa9   : > { %v725_v6 = vadd.f32 %v724_v29, %v538_v3  ;;  %4685 = vst [vmem:[#allocation35_spill] sm:$0xff] %v3103_v47  ;;  %v550_v3 = vmul.f32 %v2922_v2, %v2922_v2  ;;  %4690 = vst [vmem:[#allocation40_spill] sm:$0xff] %v3131_v46  ;;  %v3143_v8 = vld [vmem:[%s2811_s6 + $0x318] sm:$0xff] }
  0xaa   : > { %v416_v49 = vadd.f32 %v415_v22, %v3051_v4  ;;  %v478_v39 = vadd.f32 %v477_v12, %v3063_v35  ;;  %v3100_v22 = vld [vmem:[%s2811_s6 + $0x170] sm:$0xff]  ;;  %v375_v12 = vadd.f32 %v374_v60, %v3077_v41  ;;  %v664_v42 = vadd.f32 %v663_v57, %v540_v13  ;;  %4692 = vst [vmem:[#allocation42_spill] sm:$0xff] %v3143_v8 }
  0xab   : > { %4684 = vst [vmem:[#allocation34_spill] sm:$0xff] %v3100_v22  ;;  %v726_v29 = vadd.f32 %v725_v6, %v542_v24  ;;  %v438_v2 = vadd.f32 %v437_v48, %v3100_v22  ;;  %v554_v24 = vmul.f32 %v2943_v18, %v2943_v18  ;;  %v3140_v41 = vld [vmem:[%s2811_s6 + $0x1b0] sm:$0xff]  ;;  %v556_v48 = vmul.f32 %v2951_v26, %v2951_v26  ;;  %v3151_v18 = vld [vmem:[%s2811_s6 + $0x328] sm:$0xff]  ;;  %v3163_v26 = vld [vmem:[%s2811_s6 + $0x338] sm:$0xff] }
  0xac   : > { %v417_v28 = vadd.f32 %v416_v49, %v3071_v34  ;;  %v479_v21 = vadd.f32 %v478_v39, %v3083_v40  ;;  %v3117_v49 = vld [vmem:[%s2811_s6 + $0x180] sm:$0xff]  ;;  %v376_v39 = vadd.f32 %v375_v12, %v3097_v10  ;;  %v665_v57 = vadd.f32 %v664_v42, %v544_v58  ;;  %4691 = vst [vmem:[#allocation41_spill] sm:$0xff] %v3140_v41  ;;  %v3160_v10 = vld [vmem:[%s2811_s6 + $0x1d0] sm:$0xff] }
  0xad   : > { %4687 = vst [vmem:[#allocation37_spill] sm:$0xff] %v3117_v49  ;;  %v727_v6 = vadd.f32 %v726_v29, %v546_v44  ;;  %v439_v22 = vadd.f32 %v438_v2, %v3120_v0  ;;  %4693 = vst [vmem:[#allocation43_spill] sm:$0xff] %v3151_v18  ;;  %v558_v44 = vmul.f32 %v2963_v15, %v2963_v15 }
  0xae   : > { %v418_v60 = vadd.f32 %v417_v28, %v3091_v33  ;;  %v480_v13 = vadd.f32 %v479_v21, %v3103_v47  ;;  %v3137_v28 = vld [vmem:[%s2811_s6 + $0x1a0] sm:$0xff]  ;;  %v377_v21 = vadd.f32 %v376_v39, %v3117_v49  ;;  %v666_v42 = vadd.f32 %v665_v57, %v548_v37  ;;  %4694 = vst [vmem:[#allocation44_spill] sm:$0xff] %v3160_v10  ;;  %v3177_v49 = vld [vmem:[%s2811_s6 + $0x1f0] sm:$0xff] }
  0xaf   : > { %v728_v29 = vadd.f32 %v727_v6, %v550_v3  ;;  %4695 = vst [vmem:[#allocation45_spill] sm:$0xff] %v3163_v26  ;;  %v560_v2 = vmul.f32 %v2971_v43, %v2971_v43  ;;  %v440_v0 = vadd.f32 %v439_v22, %v3140_v41  ;;  %v562_v37 = vmul.f32 %v2983_v19, %v2983_v19  ;;  %v3174_v6 = vld [vmem:[%s2811_s6 + $0x1e0] sm:$0xff]  ;;  %v3188_v19 = vld [vmem:[%s2811_s6 + $0x358] sm:$0xff] }
  0xb0   : > { %v419_v12 = vadd.f32 %v418_v60, %v3111_v1  ;;  %v481_v58 = vadd.f32 %v480_v13, %v3123_v52  ;;  %v3157_v60 = vld [vmem:[%s2811_s6 + $0x1c0] sm:$0xff]  ;;  %v378_v13 = vadd.f32 %v377_v21, %v3137_v28  ;;  %v667_v3 = vadd.f32 %v666_v42, %v552_v45  ;;  %4697 = vst [vmem:[#allocation47_spill] sm:$0xff] %v3188_v19 }
  0xb1   : > { %v729_v57 = vadd.f32 %v728_v29, %v554_v24  ;;  %v564_v22 = vmul.f32 %v2991_v59, %v2991_v59  ;;  %v566_v24 = vmul.f32 %v3003_v23, %v3003_v23  ;;  %v3194_v41 = vld [vmem:[%s2811_s6 + $0x200] sm:$0xff] }
  0xb2   : > { %v420_v39 = vadd.f32 %v419_v12, %v3131_v46  ;;  %v482_v15 = vadd.f32 %v481_v58, %v3143_v8  ;;  %v3180_v12 = vld [vmem:[%s2811_s6 + $0x348] sm:$0xff]  ;;  %v379_v21 = vadd.f32 %v378_v13, %v3157_v60  ;;  %v441_v58 = vadd.f32 %v440_v0, %v3160_v10  ;;  %4698 = vst [vmem:[#allocation48_spill] sm:$0xff] %v3194_v41 }
  0xb3   : > { %4696 = vst [vmem:[#allocation46_spill] sm:$0xff] %v3180_v12  ;;  %v668_v42 = vadd.f32 %v667_v3, %v556_v48  ;;  %v730_v29 = vadd.f32 %v729_v57, %v558_v44  ;;  %v568_v0 = vmul.f32 %v3011_v20, %v3011_v20  ;;  %v347_v48 = vld [vmem:[%s2811_s6 + $0x368] sm:$0xff]  ;;  %v572_v20 = vmul.f32 %v3031_v17, %v3031_v17 }
  0xb4   : > { %v421_v43 = vadd.f32 %v420_v39, %v3151_v18  ;;  %v483_v45 = vadd.f32 %v482_v15, %v3163_v26  ;;  %v3197_v39 = vld [vmem:[%s2811_s6 + $0x210] sm:$0xff]  ;;  %v380_v59 = vadd.f32 %v379_v21, %v3174_v6  ;;  %v442_v13 = vadd.f32 %v441_v58, %v3177_v49  ;;  %v349_v58 = vld [vmem:[%s2811_s6 + $0x378] sm:$0xff]  ;;  %v351_v17 = vld [vmem:[%s2811_s6 + $0x388] sm:$0xff] }
  0xb5   : > { %4699 = vst [vmem:[#allocation49_spill] sm:$0xff] %v3197_v39  ;;  %v570_v15 = vmul.f32 %v3023_v27, %v3023_v27  ;;  %v669_v23 = vadd.f32 %v668_v42, %v560_v2  ;;  %v731_v10 = vadd.f32 %v730_v29, %v562_v37  ;;  %v574_v27 = vmul.f32 %v3043_v31, %v3043_v31  ;;  %v3216_v42 = vld [vmem:[%s2811_s6 + $0x220] sm:$0xff] }
  0xb6   : > { %v422_v44 = vadd.f32 %v421_v43, %v3180_v12  ;;  %v484_v3 = vadd.f32 %v483_v45, %v3188_v19  ;;  %v381_v57 = vadd.f32 %v380_v59, %v3194_v41  ;;  %v443_v21 = vadd.f32 %v442_v13, %v3197_v39  ;;  %v3219_v43 = vld [vmem:[%s2811_s6 + $0x230] sm:$0xff] }
  0xb7   : > { %v670_v2 = vadd.f32 %v669_v23, %v564_v22  ;;  %v732_v37 = vadd.f32 %v731_v10, %v566_v24  ;;  %v576_v59 = vmul.f32 %v3051_v4, %v3051_v4  ;;  %v578_v45 = vmul.f32 %v3063_v35, %v3063_v35  ;;  %v353_v22 = vld [vmem:[%s2811_s6 + $0x398] sm:$0xff] }
  0xb8   : > { %v423_v39 = vadd.f32 %v422_v44, %v347_v48  ;;  %v485_v31 = vadd.f32 %v484_v3, %v349_v58  ;;  %v382_v23 = vadd.f32 %v381_v57, %v3216_v42  ;;  %v444_v10 = vadd.f32 %v443_v21, %v3219_v43 }
  0xb9   : > { %v671_v29 = vadd.f32 %v670_v2, %v568_v0  ;;  %v733_v13 = vadd.f32 %v732_v37, %v570_v15  ;;  %v580_v24 = vmul.f32 %v3071_v34, %v3071_v34  ;;  %v582_v4 = vmul.f32 %v3083_v40, %v3083_v40  ;;  %v3234_v0 = vld [vmem:[%s2811_s6 + $0x240] sm:$0xff]  ;;  %v3237_v15 = vld [vmem:[%s2811_s6 + $0x250] sm:$0xff]  ;;  %v355_v2 = vld [vmem:[%s2811_s6 + $0x3a8] sm:$0xff] }
  0xba   : > { %4700 = vst [vmem:[#allocation50_spill] sm:$0xff] %v3234_v0  ;;  %4701 = vst [vmem:[#allocation51_spill] sm:$0xff] %v3237_v15  ;;  %v584_v44 = vmul.f32 %v3091_v33, %v3091_v33  ;;  %v586_v3 = vmul.f32 %v3103_v47, %v3103_v47  ;;  %v424_v37 = vadd.f32 %v423_v39, %v351_v17 }
  0xbb   : > { %v672_v41 = vadd.f32 %v671_v29, %v572_v20  ;;  %v734_v35 = vadd.f32 %v733_v13, %v574_v27  ;;  %v486_v40 = vadd.f32 %v485_v31, %v353_v22  ;;  %v383_v20 = vadd.f32 %v382_v23, %v3234_v0  ;;  %v357_v29 = vld [vmem:[%s2811_s6 + $0x3b8] sm:$0xff]  ;;  %v359_v23 = vld [vmem:[%s2811_s6 + $0x3c8] sm:$0xff]  ;;  %v3284_v0 = vld [vmem:[%s2811_s6 + $0x2a0] sm:$0xff] }
  0xbc   : > { %v445_v27 = vadd.f32 %v444_v10, %v3237_v15  ;;  %v588_v13 = vmul.f32 %v3111_v1, %v3111_v1  ;;  %v590_v33 = vmul.f32 %v3123_v52, %v3123_v52  ;;  %v592_v31 = vmul.f32 %v3131_v46, %v3131_v46  ;;  %4705 = vst [vmem:[#allocation55_spill] sm:$0xff] %v3284_v0 }
  0xbd   : > { %v673_v57 = vadd.f32 %v672_v41, %v576_v59  ;;  %v735_v21 = vadd.f32 %v734_v35, %v578_v45  ;;  %v3252_v41 = vld [vmem:[%s2811_s6 + $0x260] sm:$0xff]  ;;  %v3255_v35 = vld [vmem:[%s2811_s6 + $0x270] sm:$0xff]  ;;  %v594_v39 = vmul.f32 %v3143_v8, %v3143_v8  ;;  %v425_v10 = vadd.f32 %v424_v37, %v355_v2 }
  0xbe   : > { %4702 = vst [vmem:[#allocation52_spill] sm:$0xff] %v3252_v41  ;;  %4703 = vst [vmem:[#allocation53_spill] sm:$0xff] %v3255_v35  ;;  %v487_v1 = vadd.f32 %v486_v40, %v357_v29  ;;  %v598_v46 = vmul.f32 %v3163_v26, %v3163_v26  ;;  %v600_v40 = vmul.f32 %v3180_v12, %v3180_v12  ;;  %v363_v26 = vld [vmem:[%s2811_s6 + $0x3e8] sm:$0xff] }
  0xbf   : > { %v674_v34 = vadd.f32 %v673_v57, %v580_v24  ;;  %v736_v47 = vadd.f32 %v735_v21, %v582_v4  ;;  %v384_v4 = vadd.f32 %v383_v20, %v3252_v41  ;;  %v446_v24 = vadd.f32 %v445_v27, %v3255_v35  ;;  %v361_v57 = vld [vmem:[%s2811_s6 + $0x3d8] sm:$0xff] }
  0xc0   : > { %v596_v21 = vmul.f32 %v3151_v18, %v3151_v18  ;;  %v606_v37 = vmul.f32 %v349_v58, %v349_v58  ;;  %v426_v18 = vadd.f32 %v425_v10, %v359_v23  ;;  %v608_v35 = vmul.f32 %v351_v17, %v351_v17 }
  0xc1   : > { %v675_v59 = vadd.f32 %v674_v34, %v584_v44  ;;  %v737_v45 = vadd.f32 %v736_v47, %v586_v3  ;;  %v3270_v34 = vld [vmem:[%s2811_s6 + $0x280] sm:$0xff]  ;;  %v3273_v47 = vld [vmem:[%s2811_s6 + $0x290] sm:$0xff]  ;;  %v602_v44 = vmul.f32 %v3188_v19, %v3188_v19  ;;  %v604_v3 = vmul.f32 %v347_v48, %v347_v48 }
  0xc2   : > { %4704 = vst [vmem:[#allocation54_spill] sm:$0xff] %v3273_v47  ;;  %v610_v41 = vmul.f32 %v353_v22, %v353_v22  ;;  %v3287_v19 = vld [vmem:[%s2811_s6 + $0x2b0] sm:$0xff]  ;;  %v616_v48 = vmul.f32 %v359_v23, %v359_v23  ;;  %v618_v58 = vmul.f32 %v361_v57, %v361_v57  ;;  %v497_v17 = vmul.f32 %v2909_v56, %v2909_v56 }
  0xc3   : > { %v676_v52 = vadd.f32 %v675_v59, %v588_v13  ;;  %v738_v8 = vadd.f32 %v737_v45, %v590_v33  ;;  %v488_v13 = vadd.f32 %v487_v1, %v361_v57  ;;  %v385_v33 = vadd.f32 %v384_v4, %v3270_v34  ;;  %v365_v45 = vld [vmem:[%s2811_s6 + $0x3f8] sm:$0xff]  ;;  %4706 = vst [vmem:[#allocation56_spill] sm:$0xff] %v3287_v19 }
  0xc4   : > { %v447_v59 = vadd.f32 %v446_v24, %v3273_v47  ;;  %v427_v22 = vadd.f32 %v426_v18, %v363_v26  ;;  %v620_v18 = vmul.f32 %v363_v26, %v363_v26  ;;  %v622_v23 = vmul.f32 %v365_v45, %v365_v45 }
  0xc5   : > { %v677_v20 = vadd.f32 %v676_v52, %v592_v31  ;;  %v739_v27 = vadd.f32 %v738_v8, %v594_v39  ;;  %v612_v52 = vmul.f32 %v355_v2, %v355_v2  ;;  %v614_v8 = vmul.f32 %v357_v29, %v357_v29  ;;  %v3296_v2 = vld [vmem:[%s2811_s6 + $0x2c0] sm:$0xff]  ;;  %v3299_v29 = vld [vmem:[%s2811_s6 + $0x2d0] sm:$0xff] }
  0xc6   : > { %v495_v39 = vmul.f32 %v2906_v55, %v2906_v55  ;;  %v386_v10 = vadd.f32 %v385_v33, %v3284_v0  ;;  %v448_v4 = vadd.f32 %v447_v59, %v3287_v19  ;;  %4707 = vst [vmem:[#allocation57_spill] sm:$0xff] %v3296_v2  ;;  %4708 = vst [vmem:[#allocation58_spill] sm:$0xff] %v3299_v29 }
  0xc7   : > { %v678_v12 = vadd.f32 %v677_v20, %v596_v21  ;;  %v740_v15 = vadd.f32 %v739_v27, %v598_v46  ;;  %v489_v46 = vadd.f32 %v488_v13, %v365_v45  ;;  %v503_v57 = vmul.f32 %v2919_v63, %v2919_v63 }
  0xc8   : > { %v509_v20 = vmul.f32 %v2940_v16, %v2940_v16  ;;  %v3313_v27 = vmul.f32 0.03125, %v427_v22  ;;  %v387_v26 = vadd.f32 %v386_v10, %v3296_v2  ;;  %v449_v33 = vadd.f32 %v448_v4, %v3299_v29 }
  0xc9   : > { %v679_v1 = vadd.f32 %v678_v12, %v600_v40  ;;  %v741_v31 = vadd.f32 %v740_v15, %v602_v44  ;;  %v499_v12 = vmul.f32 %v2913_v61, %v2913_v61  ;;  %v501_v15 = vmul.f32 %v2916_v62, %v2916_v62 }
  0xca   : > { %v505_v40 = vmul.f32 %v2926_v5, %v2926_v5  ;;  %v3315_v13 = vmul.f32 0.03125, %v489_v46  ;;  %v511_v22 = vmul.f32 %v2957_v36, %v2957_v36  ;;  %v513_v46 = vmul.f32 %v2960_v38, %v2960_v38 }
  0xcb   : > { %v680_v24 = vadd.f32 %v679_v1, %v604_v3  ;;  %v742_v21 = vadd.f32 %v741_v31, %v606_v37  ;;  %v507_v37 = vmul.f32 %v2937_v11, %v2937_v11  ;;  %v3320_v1 = vld [vmem:[%s2811_s6 + $0x2e0] sm:$0xff]  ;;  %v685_v31 = vadd.f32 %v501_v15, %v497_v17 }
  0xcc   : > { %4709 = vst [vmem:[#allocation59_spill] sm:$0xff] %v3320_v1  ;;  %v515_v10 = vmul.f32 %v2977_v51, %v2977_v51  ;;  %v754_v17 = vmul.f32 %v3315_v13, %v3315_v13  ;;  %v3340_v51 = vld [vmem:[%s2811_s6 + $0x300] sm:$0xff] }
  0xcd   : > { %v681_v44 = vadd.f32 %v680_v24, %v608_v35  ;;  %v743_v3 = vadd.f32 %v742_v21, %v610_v41  ;;  %v3323_v35 = vld [vmem:[%s2811_s6 + $0x2f0] sm:$0xff]  ;;  %v623_v41 = vadd.f32 %v499_v12, %v495_v39  ;;  %v686_v21 = vadd.f32 %v685_v31, %v505_v40  ;;  %v3356_v31 = vld [vmem:[%s2811_s6 + $0x320] sm:$0xff] }
  0xce   : > { %4710 = vst [vmem:[#allocation60_spill] sm:$0xff] %v3323_v35  ;;  %v752_v39 = vmul.f32 %v3313_v27, %v3313_v27  ;;  %v388_v12 = vadd.f32 %v387_v26, %v3320_v1  ;;  %v450_v15 = vadd.f32 %v449_v33, %v3323_v35  ;;  %v521_v40 = vmul.f32 %v3000_v9, %v3000_v9  ;;  %v3359_v9 = vld [vmem:[%s2811_s6 + $0x330] sm:$0xff] }
  0xcf   : > { %v682_v59 = vadd.f32 %v681_v44, %v612_v52  ;;  %v744_v45 = vadd.f32 %v743_v3, %v614_v8  ;;  %v517_v52 = vmul.f32 %v2980_v53, %v2980_v53  ;;  %v624_v24 = vadd.f32 %v623_v41, %v503_v57  ;;  %v3343_v53 = vld [vmem:[%s2811_s6 + $0x310] sm:$0xff]  ;;  %4711 = vst [vmem:[#allocation61_spill] sm:$0xff] %v3359_v9 }
  0xd0   : > { %v519_v57 = vmul.f32 %v2997_v7, %v2997_v7  ;;  %v523_v41 = vmul.f32 %v3017_v30, %v3017_v30 }
  0xd1   : > { %v683_v8 = vadd.f32 %v682_v59, %v616_v48  ;;  %v745_v4 = vadd.f32 %v744_v45, %v618_v58  ;;  %v625_v48 = vadd.f32 %v624_v24, %v507_v37  ;;  %v687_v58 = vadd.f32 %v686_v21, %v509_v20 }
  0xd2   : > { %v525_v37 = vmul.f32 %v3020_v32, %v3020_v32 }
  0xd3   : > { %v684_v44 = vadd.f32 %v683_v8, %v620_v18  ;;  %v746_v3 = vadd.f32 %v745_v4, %v622_v23  ;;  %v626_v45 = vadd.f32 %v625_v48, %v511_v22  ;;  %v688_v33 = vadd.f32 %v687_v58, %v513_v46  ;;  %v4715_v48 = vld [vmem:[#allocation30_spill] sm:$0xff] }
  0xd4   : > { %v389_v18 = vadd.f32 %v388_v12, %v3340_v51  ;;  %v451_v23 = vadd.f32 %v450_v15, %v3343_v53  ;;  %v527_v8 = vmul.f32 %v3037_v50, %v3037_v50  ;;  %v529_v4 = vmul.f32 %v3040_v54, %v3040_v54  ;;  %v3373_v50 = vld [vmem:[%s2811_s6 + $0x350] sm:$0xff] }
  0xd5   : > { %v748_v59 = vmul.f32 0.03125, %v684_v44  ;;  %v750_v26 = vmul.f32 0.03125, %v746_v3  ;;  %v627_v22 = vadd.f32 %v626_v45, %v515_v10  ;;  %v689_v46 = vadd.f32 %v688_v33, %v517_v52  ;;  %v3370_v52 = vld [vmem:[%s2811_s6 + $0x340] sm:$0xff]  ;;  %4713 = vst [vmem:[#allocation63_spill] sm:$0xff] %v3373_v50  ;;  %v3387_v45 = vld [vmem:[%s2811_s6 + $0x370] sm:$0xff] }
  0xd6   : > { %v531_v10 = vmul.f32 %v3057_v14, %v3057_v14  ;;  %4712 = vst [vmem:[#allocation62_spill] sm:$0xff] %v3370_v52  ;;  %v533_v54 = vmul.f32 %v3060_v25, %v3060_v25  ;;  %v4714_v44 = vld [vmem:[#allocation29_spill] sm:$0xff]  ;;  %v537_v58 = vmul.f32 %v4715_v48, %v4715_v48  ;;  %4717 = vst [vmem:[#allocation30_spill] sm:$0xff] %v3387_v45  ;;  %v4725_v48 = vld [vmem:[#allocation14_spill] sm:$0xff] }
  0xd7   : > { %v756_v20 = vsub.f32 %v748_v59, %v752_v39  ;;  %v758_v7 = vsub.f32 %v750_v26, %v754_v17  ;;  %v628_v21 = vadd.f32 %v627_v22, %v519_v57  ;;  %v690_v32 = vadd.f32 %v689_v46, %v521_v40  ;;  %v3384_v26 = vld [vmem:[%s2811_s6 + $0x360] sm:$0xff]  ;;  %v4721_v46 = vld [vmem:[#allocation38_spill] sm:$0xff] }
  0xd8   : > { %v390_v39 = vadd.f32 %v389_v18, %v3356_v31  ;;  %v452_v17 = vadd.f32 %v451_v23, %v3359_v9  ;;  %v535_v3 = vmul.f32 %v4714_v44, %v4714_v44  ;;  %4716 = vst [vmem:[#allocation29_spill] sm:$0xff] %v3384_v26  ;;  %v4718_v25 = vld [vmem:[#allocation33_spill] sm:$0xff]  ;;  %v4719_v18 = vld [vmem:[#allocation34_spill] sm:$0xff] }
  0xd9   : > { %v888_v30 = vadd.f32 1e-05, %v756_v20  ;;  %v890_v24 = vadd.f32 1e-05, %v758_v7  ;;  %v629_v12 = vadd.f32 %v628_v21, %v523_v41  ;;  %v691_v15 = vadd.f32 %v690_v32, %v525_v37  ;;  %v1024_v20 = vld [vmem:[#allocation5 + $0x8] sm:$0xff]  ;;  %v4720_v7 = vld [vmem:[#allocation37_spill] sm:$0xff] }
  0xda   : > { %v391_v14 = vadd.f32 %v390_v39, %v3370_v52  ;;  %v453_v59 = vadd.f32 %v452_v17, %v3373_v50  ;;  %v539_v33 = vmul.f32 %v4718_v25, %v4718_v25  ;;  %v541_v23 = vmul.f32 %v4719_v18, %v4719_v18  ;;  %1279 = vmatprep.mubr.f32.mxu1 %v1024_v20  ;;  %v1026_v39 = vld [vmem:[#allocation5 + $0x18] sm:$0xff]  ;;  %v4723_v17 = vld [vmem:[#allocation13_spill] sm:$0xff]  ;;  %v4728_v25 = vld [vmem:[#allocation19_spill] sm:$0xff] }
  0xdb   : > { %2301 = vrsqrt.f32 %v888_v30  ;;  %v630_v57 = vadd.f32 %v629_v12, %v527_v8  ;;  %v692_v40 = vadd.f32 %v691_v15, %v529_v4  ;;  %v543_v22 = vmul.f32 %v4720_v7, %v4720_v7  ;;  %v4722_v30 = vld [vmem:[#allocation41_spill] sm:$0xff]  ;;  %v4724_v15 = vld [vmem:[#allocation16_spill] sm:$0xff]  ;;  %1536 = vmatprep.mubr.f32.mxu0 %v1026_v39 }
  0xdc   : > { %2303 = vrsqrt.f32 %v890_v24  ;;  %v545_v8 = vmul.f32 %v4721_v46, %v4721_v46  ;;  %v547_v4 = vmul.f32 %v3137_v28, %v3137_v28  ;;  %v549_v24 = vmul.f32 %v4722_v30, %v4722_v30  ;;  %v4729_v18 = vld [vmem:[#allocation44_spill] sm:$0xff] }
  0xdd   : > { %v631_v41 = vadd.f32 %v630_v57, %v531_v10  ;;  %v693_v37 = vadd.f32 %v692_v40, %v533_v54  ;;  %v760_v10 = vsub.f32 %v4723_v17, %v3313_v27  ;;  %v392_v54 = vadd.f32 %v391_v14, %v3384_v26  ;;  %v3410_v57 = vld [vmem:[%s2811_s6 + $0x380] sm:$0xff]  ;;  %v3413_v40 = vld [vmem:[%s2811_s6 + $0x390] sm:$0xff] }
  0xde   : > { %v454_v12 = vadd.f32 %v453_v59, %v3387_v45  ;;  %v824_v44 = vsub.f32 %v4724_v15, %v3313_v27  ;;  %v762_v28 = vsub.f32 %v4725_v48, %v3315_v13  ;;  %4726 = vst [vmem:[#allocation33_spill] sm:$0xff] %v3410_v57  ;;  %4727 = vst [vmem:[#allocation34_spill] sm:$0xff] %v3413_v40  ;;  %v3435_v17 = vld [vmem:[%s2811_s6 + $0x3a0] sm:$0xff]  ;;  %v4734_v15 = vld [vmem:[#allocation48_spill] sm:$0xff] }
  0xdf   : > { %v632_v21 = vadd.f32 %v631_v41, %v535_v3  ;;  %v694_v32 = vadd.f32 %v693_v37, %v537_v58  ;;  %v826_v14 = vsub.f32 %v4728_v25, %v3315_v13  ;;  %v551_v59 = vmul.f32 %v3157_v60, %v3157_v60  ;;  %4732 = vst [vmem:[#allocation41_spill] sm:$0xff] %v3435_v17 }
  0xe0   : > { %v553_v41 = vmul.f32 %v4729_v18, %v4729_v18  ;;  %v555_v20 = vmul.f32 %v3174_v6, %v3174_v6  ;;  %v455_v60 = vadd.f32 %v454_v12, %v3413_v40  ;;  %v3438_v6 = vld [vmem:[%s2811_s6 + $0x3b0] sm:$0xff]  ;;  %v565_v18 = vmul.f32 %v3219_v43, %v3219_v43 }
  0xe1   : > { %v633_v3 = vadd.f32 %v632_v21, %v539_v33  ;;  %v695_v58 = vadd.f32 %v694_v32, %v541_v23  ;;  %v557_v33 = vmul.f32 %v3177_v49, %v3177_v49  ;;  %v393_v21 = vadd.f32 %v392_v54, %v3410_v57  ;;  %4733 = vst [vmem:[#allocation13_spill] sm:$0xff] %v3438_v6  ;;  %v4735_v54 = vld [vmem:[#allocation49_spill] sm:$0xff] }
  0xe2   : > { %v561_v12 = vmul.f32 %v4735_v54, %v4735_v54  ;;  %v456_v25 = vadd.f32 %v455_v60, %v3438_v6 }
  0xe3   : > { %v634_v7 = vadd.f32 %v633_v3, %v543_v22  ;;  %v696_v23 = vadd.f32 %v695_v58, %v545_v8  ;;  %v394_v58 = vadd.f32 %v393_v21, %v3435_v17 }
  0xe5   : > { %v3421_v37 = vpop.eup %2301  ;;  %v635_v49 = vadd.f32 %v634_v7, %v547_v4  ;;  %v697_v22 = vadd.f32 %v696_v23, %v549_v24  ;;  %v563_v4 = vmul.f32 %v3216_v42, %v3216_v42  ;;  %v3450_v24 = vld [vmem:[%s2811_s6 + $0x3c0] sm:$0xff]  ;;  %v4738_v7 = vld [vmem:[#allocation50_spill] sm:$0xff] }
  0xe6   : > { %4730 = vst [vmem:[#allocation37_spill] sm:$0xff] %v3421_v37  ;;  %v3427_v46 = vpop.eup %2303  ;;  %v896_v30 = vmul.f32 %v3421_v37, %v760_v10  ;;  %v960_v32 = vmul.f32 %v3421_v37, %v824_v44  ;;  %v559_v10 = vmul.f32 %v4734_v15, %v4734_v15  ;;  %4736 = vst [vmem:[#allocation16_spill] sm:$0xff] %v3450_v24 }
  0xe7   : > { %4731 = vst [vmem:[#allocation38_spill] sm:$0xff] %v3427_v46  ;;  %v898_v39 = vmul.f32 %v3427_v46, %v762_v28  ;;  %v962_v8 = vmul.f32 %v3427_v46, %v826_v14  ;;  %v636_v44 = vadd.f32 %v635_v49, %v551_v59  ;;  %v698_v3 = vadd.f32 %v697_v22, %v553_v41  ;;  %v3453_v14 = vld [vmem:[%s2811_s6 + $0x3d0] sm:$0xff]  ;;  %v4740_v22 = vld [vmem:[#allocation52_spill] sm:$0xff] }
  0xe8   : > { %4737 = vst [vmem:[#allocation14_spill] sm:$0xff] %v3453_v14  ;;  %v567_v23 = vmul.f32 %v4738_v7, %v4738_v7  ;;  %v457_v49 = vadd.f32 %v456_v25, %v3453_v14  ;;  %v581_v25 = vmul.f32 %v3287_v19, %v3287_v19  ;;  %v587_v46 = vmul.f32 %v3320_v1, %v3320_v1 }
  0xe9   : > { %v1939_v48 = vpack.c.bf16 %v898_v39, %v896_v30  ;;  %v2003_v28 = vpack.c.bf16 %v962_v8, %v960_v32  ;;  %v637_v59 = vadd.f32 %v636_v44, %v555_v20  ;;  %v699_v41 = vadd.f32 %v698_v3, %v557_v33  ;;  %v4739_v30 = vld [vmem:[#allocation51_spill] sm:$0xff]  ;;  %v3468_v33 = vld [vmem:[%s2811_s6 + $0x3e0] sm:$0xff] }
  0xea   : > { %v569_v21 = vmul.f32 %v4739_v30, %v4739_v30  ;;  %v395_v39 = vadd.f32 %v394_v58, %v3450_v24  ;;  %v571_v8 = vmul.f32 %v4740_v22, %v4740_v22  ;;  %4742 = vst [vmem:[#allocation19_spill] sm:$0xff] %v3468_v33  ;;  %v3471_v44 = vld [vmem:[%s2811_s6 + $0x3f0] sm:$0xff]  ;;  %v575_v3 = vmul.f32 %v3270_v34, %v3270_v34 }
  0xeb   : > { %1940 = vmatprep.subr.bf16.mxu1 %v1939_v48  ;;  %2004 = vmatprep.subr.bf16.mxu0 %v2003_v28  ;;  %v638_v60 = vadd.f32 %v637_v59, %v559_v10  ;;  %v700_v32 = vadd.f32 %v699_v41, %v561_v12  ;;  %v4741_v48 = vld [vmem:[#allocation53_spill] sm:$0xff]  ;;  %4743 = vst [vmem:[#allocation44_spill] sm:$0xff] %v3471_v44 }
  0xec   : > { %v573_v20 = vmul.f32 %v4741_v48, %v4741_v48  ;;  %v577_v10 = vmul.f32 %v3273_v47, %v3273_v47  ;;  %v579_v58 = vmul.f32 %v3284_v0, %v3284_v0  ;;  %v583_v59 = vmul.f32 %v3296_v2, %v3296_v2 }
  0xed   : > { %v639_v12 = vadd.f32 %v638_v60, %v563_v4  ;;  %v701_v28 = vadd.f32 %v700_v32, %v565_v18  ;;  %v585_v41 = vmul.f32 %v3299_v29, %v3299_v29  ;;  %v589_v37 = vmul.f32 %v3323_v35, %v3323_v35 }
  0xee   : > { %v396_v60 = vadd.f32 %v395_v39, %v3468_v33  ;;  %v458_v32 = vadd.f32 %v457_v49, %v3471_v44  ;;  %v591_v19 = vmul.f32 %v3340_v51, %v3340_v51  ;;  %v593_v2 = vmul.f32 %v3343_v53, %v3343_v53 }
  0xef   : > { %v640_v4 = vadd.f32 %v639_v12, %v567_v23  ;;  %v702_v18 = vadd.f32 %v701_v28, %v569_v21  ;;  %v595_v29 = vmul.f32 %v3356_v31, %v3356_v31  ;;  %v597_v1 = vmul.f32 %v3359_v9, %v3359_v9  ;;  %v2315_v9 = vld [vmem:[%s2811_s6 + $0x88] sm:$0xff] }
  0xf0   : > { %v599_v23 = vmul.f32 %v3370_v52, %v3370_v52  ;;  %v601_v21 = vmul.f32 %v3373_v50, %v3373_v50  ;;  %v3505_v39 = vmul.f32 %v3384_v26, %v3384_v26  ;;  %v3509_v49 = vmul.f32 %v3387_v45, %v3387_v45  ;;  %v2314_v52 = vld [vmem:[%s2811_s6 + $0x78] sm:$0xff] }
  0xf1   : > { %v641_v0 = vadd.f32 %v640_v4, %v571_v8  ;;  %v703_v35 = vadd.f32 %v702_v18, %v573_v20  ;;  %v3513_v12 = vmul.f32 %v3410_v57, %v3410_v57  ;;  %v3517_v8 = vmul.f32 %v3413_v40, %v3413_v40 }
  0xf2   : > { %v3519_v4 = vmul.f32 0.03125, %v396_v60  ;;  %v3521_v18 = vmul.f32 0.03125, %v458_v32  ;;  %v3525_v26 = vmul.f32 %v3435_v17, %v3435_v17  ;;  %v3529_v45 = vmul.f32 %v3438_v6, %v3438_v6  ;;  %v3548_v32 = vld [vmem:[%s2811_s6 + $0x28] sm:$0xff]  ;;  %v3553_v17 = vld [vmem:[%s2811_s6 + $0x38] sm:$0xff] }
  0xf3   : > { %v642_v20 = vadd.f32 %v641_v0, %v575_v3  ;;  %v704_v28 = vadd.f32 %v703_v35, %v577_v10  ;;  %v3533_v57 = vmul.f32 %v3450_v24, %v3450_v24  ;;  %v3537_v0 = vmul.f32 %v3453_v14, %v3453_v14  ;;  %v3570_v24 = vld [vmem:[%s2811_s6 + $0x48] sm:$0xff]  ;;  %v4747_v14 = vld [vmem:[#allocation23_spill] sm:$0xff] }
  0xf4   : > { %v3541_v10 = vmul.f32 %v3468_v33, %v3468_v33  ;;  %v3545_v60 = vmul.f32 %v3471_v44, %v3471_v44  ;;  %v4745_v33 = vld [vmem:[#allocation21_spill] sm:$0xff]  ;;  %v3563_v44 = vmul.f32 %v3519_v4, %v3519_v4  ;;  %v3567_v6 = vmul.f32 %v3521_v18, %v3521_v18 }
  0xf5   : > { %v643_v35 = vadd.f32 %v642_v20, %v579_v58  ;;  %v705_v3 = vadd.f32 %v704_v28, %v581_v25  ;;  %v4744_v28 = vld [vmem:[#allocation20_spill] sm:$0xff]  ;;  %v2313_v58 = vld [vmem:[%s2811_s6 + $0x68] sm:$0xff] }
  0xf6   : > { %v828_v40 = vsub.f32 %v4744_v28, %v3313_v27 }
  0xf7   : > { %v644_v20 = vadd.f32 %v643_v35, %v583_v59  ;;  %v706_v25 = vadd.f32 %v705_v3, %v585_v41  ;;  %v768_v59 = vsub.f32 %v3570_v24, %v3313_v27  ;;  %v2312_v41 = vld [vmem:[%s2811_s6 + $0x58] sm:$0xff]  ;;  %v4746_v24 = vld [vmem:[#allocation22_spill] sm:$0xff] }
  0xf8   : > { %v770_v35 = vsub.f32 %v2312_v41, %v3315_v13  ;;  %v832_v50 = vsub.f32 %v4746_v24, %v3313_v27  ;;  %v772_v41 = vsub.f32 %v2313_v58, %v3313_v27  ;;  %v776_v24 = vsub.f32 %v2315_v9, %v3313_v27  ;;  %v4751_v58 = vld [vmem:[#allocation27_spill] sm:$0xff] }
  0xf9   : > { %v645_v3 = vadd.f32 %v644_v20, %v587_v46  ;;  %v707_v28 = vadd.f32 %v706_v25, %v589_v37  ;;  %v834_v37 = vsub.f32 %v4747_v14, %v3315_v13  ;;  %v774_v25 = vsub.f32 %v2314_v52, %v3315_v13 }
  0xfa   : > { %v842_v48 = vsub.f32 %v4751_v58, %v3315_v13  ;;  %v4753_v58 = vld [vmem:[#allocation37_spill] sm:$0xff] }
  0xfb   : > { %v646_v46 = vadd.f32 %v645_v3, %v591_v19  ;;  %v708_v20 = vadd.f32 %v707_v28, %v593_v2  ;;  %v4749_v3 = vld [vmem:[#allocation25_spill] sm:$0xff]  ;;  %v3651_v9 = vmul.f32 %v4753_v58, %v828_v40  ;;  %v4758_v40 = vsub.f32 %v4745_v33, %v3315_v13  ;;  %v4759_v33 = vld [vmem:[#allocation28_spill] sm:$0xff] }
  0xfc   : > { %v838_v28 = vsub.f32 %v4749_v3, %v3315_v13  ;;  %v2318_v3 = vld [vmem:[%s2811_s6 + $0xb8] sm:$0xff] }
  0xfd   : > { %v647_v19 = vadd.f32 %v646_v46, %v595_v29  ;;  %v709_v2 = vadd.f32 %v708_v20, %v597_v1  ;;  %v4748_v46 = vld [vmem:[#allocation24_spill] sm:$0xff] }
  0xfe   : > { %v836_v20 = vsub.f32 %v4748_v46, %v3313_v27  ;;  %v2316_v29 = vld [vmem:[%s2811_s6 + $0x98] sm:$0xff]  ;;  %v4750_v46 = vld [vmem:[#allocation26_spill] sm:$0xff] }
  0xff   : > { %v648_v1 = vadd.f32 %v647_v19, %v599_v23  ;;  %v710_v14 = vadd.f32 %v709_v2, %v601_v21  ;;  %v778_v23 = vsub.f32 %v2316_v29, %v3315_v13  ;;  %v840_v52 = vsub.f32 %v4750_v46, %v3313_v27 }
 0x100   : > { %v782_v2 = vsub.f32 %v2318_v3, %v3315_v13  ;;  %v4752_v46 = vsub.f32 %v3548_v32, %v3313_v27  ;;  %v4756_v3 = vsub.f32 %v3553_v17, %v3315_v13  ;;  %v4757_v32 = vld [vmem:[#allocation38_spill] sm:$0xff] }
 0x101   : > { %v649_v21 = vadd.f32 %v648_v1, %v3505_v39  ;;  %v711_v19 = vadd.f32 %v710_v14, %v3509_v49  ;;  %v2317_v1 = vld [vmem:[%s2811_s6 + $0xa8] sm:$0xff]  ;;  %v4754_v39 = vld [vmem:[#allocation17_spill] sm:$0xff] }
 0x102   : > { %v780_v14 = vsub.f32 %v2317_v1, %v3313_v27  ;;  %v3648_v38 = vmul.f32 %v4753_v58, %v4752_v46  ;;  %v3663_v47 = vmul.f32 %v4757_v32, %v4756_v3  ;;  %v3669_v46 = vmul.f32 %v4757_v32, %v4758_v40  ;;  %v4760_v3 = vld [vmem:[#allocation31_spill] sm:$0xff] }
 0x103   : > { %v650_v49 = vadd.f32 %v649_v21, %v3513_v12  ;;  %v712_v29 = vadd.f32 %v711_v19, %v3517_v8  ;;  %v4755_v8 = vld [vmem:[#allocation18_spill] sm:$0xff]  ;;  %v3672_v12 = vmul.f32 %v4753_v58, %v768_v59  ;;  %v3675_v21 = vmul.f32 %v4757_v32, %v770_v35 }
 0x104   : > { %v846_v59 = vsub.f32 %v4760_v3, %v3315_v13  ;;  %v3690_v40 = vmul.f32 %v4753_v58, %v772_v41  ;;  %v3693_v35 = vmul.f32 %v4757_v32, %v774_v25  ;;  %v3707_v41 = vmul.f32 %v4757_v32, %v778_v23  ;;  %v2319_v3 = vld [vmem:[%s2811_s6 + $0xc8] sm:$0xff]  ;;  %v4773_v25 = vld [vmem:[#allocation39_spill] sm:$0xff] }
 0x105   : > { %v651_v19 = vadd.f32 %v650_v49, %v3525_v26  ;;  %v713_v1 = vadd.f32 %v712_v29, %v3529_v45  ;;  %v3678_v26 = vmul.f32 %v4753_v58, %v832_v50  ;;  %v3681_v45 = vmul.f32 %v4757_v32, %v834_v37 }
 0x106   : > { %v844_v29 = vsub.f32 %v4759_v33, %v3313_v27  ;;  %v3696_v50 = vmul.f32 %v4753_v58, %v836_v20  ;;  %v3699_v37 = vmul.f32 %v4757_v32, %v838_v28  ;;  %v3721_v23 = vmul.f32 %v4757_v32, %v842_v48  ;;  %v4770_v20 = vld [vmem:[#allocation55_spill] sm:$0xff]  ;;  %v4772_v48 = vld [vmem:[#allocation36_spill] sm:$0xff] }
 0x107   : > { %v652_v17 = vadd.f32 %v651_v19, %v3533_v57  ;;  %v714_v49 = vadd.f32 %v713_v1, %v3537_v0  ;;  %v3704_v19 = vmul.f32 %v4753_v58, %v776_v24  ;;  %v3718_v24 = vmul.f32 %v4753_v58, %v840_v52 }
 0x108   : > { %4763 = vst [vmem:[#allocation50_spill] sm:$0xff] %v3721_v23  ;;  %v3729_v33 = vmul.f32 %v4757_v32, %v782_v2  ;;  %v2320_v2 = vld [vmem:[%s2811_s6 + $0xd8] sm:$0xff] }
 0x109   : > { %v653_v57 = vadd.f32 %v652_v17, %v3541_v10  ;;  %v715_v0 = vadd.f32 %v714_v49, %v3545_v60  ;;  %4761 = vst [vmem:[#allocation48_spill] sm:$0xff] %v3704_v19  ;;  %4762 = vst [vmem:[#allocation49_spill] sm:$0xff] %v3718_v24  ;;  %v3726_v49 = vmul.f32 %v4753_v58, %v780_v14  ;;  %v3848_v19 = vld [vmem:[%s2811_s6 + $0x100] sm:$0xff] }
 0x10a   : > { %4765 = vst [vmem:[#allocation52_spill] sm:$0xff] %v3729_v33  ;;  %v784_v10 = vsub.f32 %v2319_v3, %v3313_v27  ;;  %v3740_v14 = vmul.f32 %v4753_v58, %v844_v29  ;;  %v786_v17 = vsub.f32 %v2320_v2, %v3315_v13  ;;  %v4767_v3 = vld [vmem:[#allocation32_spill] sm:$0xff]  ;;  %v852_v29 = vsub.f32 %v4772_v48, %v3313_v27  ;;  %v2323_v48 = vld [vmem:[%s2811_s6 + $0x108] sm:$0xff] }
 0x10b   : > { %v747_v60 = vmul.f32 0.03125, %v653_v57  ;;  %v749_v1 = vmul.f32 0.03125, %v715_v0  ;;  %4764 = vst [vmem:[#allocation51_spill] sm:$0xff] %v3726_v49  ;;  %v848_v28 = vsub.f32 %v4767_v3, %v3313_v27  ;;  %v3751_v0 = vmul.f32 %v4757_v32, %v846_v59 }
 0x10c   : > { %4766 = vst [vmem:[#allocation20_spill] sm:$0xff] %v3740_v14  ;;  %v3758_v3 = vmul.f32 %v4753_v58, %v784_v10  ;;  %v854_v49 = vsub.f32 %v4773_v25, %v3315_v13  ;;  %v3769_v10 = vmul.f32 %v4757_v32, %v786_v17  ;;  %v792_v24 = vsub.f32 %v2323_v48, %v3313_v27  ;;  %v2324_v25 = vld [vmem:[%s2811_s6 + $0x118] sm:$0xff]  ;;  %v3786_v17 = vld [vmem:[%s2811_s6 + $0xc0] sm:$0xff]  ;;  %v4787_v48 = vld [vmem:[#allocation42_spill] sm:$0xff] }
 0x10d   : > { %v755_v57 = vsub.f32 %v747_v60, %v3563_v44  ;;  %v757_v52 = vsub.f32 %v749_v1, %v3567_v6  ;;  %v4768_v44 = vld [vmem:[#allocation35_spill] sm:$0xff]  ;;  %4769 = vst [vmem:[#allocation21_spill] sm:$0xff] %v3751_v0  ;;  %v3772_v2 = vmul.f32 %v4753_v58, %v848_v28  ;;  %4778 = vst [vmem:[#allocation26_spill] sm:$0xff] %v3786_v17  ;;  %v4786_v0 = vld [vmem:[#allocation40_spill] sm:$0xff] }
 0x10e   : > { %v850_v60 = vsub.f32 %v4768_v44, %v3315_v13  ;;  %4771 = vst [vmem:[#allocation22_spill] sm:$0xff] %v3758_v3  ;;  %v2321_v44 = vld [vmem:[%s2811_s6 + $0xe8] sm:$0xff]  ;;  %4774 = vst [vmem:[#allocation23_spill] sm:$0xff] %v3769_v10  ;;  %v3806_v28 = vmul.f32 %v4753_v58, %v852_v29  ;;  %v3809_v17 = vmul.f32 %v4757_v32, %v854_v49  ;;  %v2328_v3 = vld [vmem:[%s2811_s6 + $0x138] sm:$0xff] }
 0x10f   : > { %v887_v6 = vadd.f32 1e-05, %v755_v57  ;;  %v889_v1 = vadd.f32 1e-05, %v757_v52  ;;  %v788_v57 = vsub.f32 %v2321_v44, %v3313_v27  ;;  %v2322_v52 = vld [vmem:[%s2811_s6 + $0xf8] sm:$0xff]  ;;  %4775 = vst [vmem:[#allocation24_spill] sm:$0xff] %v3772_v2  ;;  %v3820_v33 = vmul.f32 %v4753_v58, %v792_v24 }
 0x110   : > { %v790_v59 = vsub.f32 %v2322_v52, %v3315_v13  ;;  %v3775_v44 = vmul.f32 %v4757_v32, %v850_v60  ;;  %v4777_v52 = vld [vmem:[#allocation56_spill] sm:$0xff]  ;;  %v3791_v60 = vld [vmem:[%s2811_s6 + $0xd0] sm:$0xff]  ;;  %4784 = vst [vmem:[#allocation18_spill] sm:$0xff] %v3806_v28  ;;  %4785 = vst [vmem:[#allocation38_spill] sm:$0xff] %v3809_v17 }
 0x111   : > { %2305 = vrsqrt.f32 %v887_v6  ;;  %4779 = vst [vmem:[#allocation27_spill] sm:$0xff] %v3791_v60  ;;  %4788 = vst [vmem:[#allocation28_spill] sm:$0xff] %v3820_v33  ;;  %v2327_v29 = vld [vmem:[%s2811_s6 + $0x128] sm:$0xff]  ;;  %v798_v6 = vsub.f32 %v2328_v3, %v3315_v13  ;;  %v3830_v2 = vld [vmem:[%s2811_s6 + $0xe0] sm:$0xff]  ;;  %v4797_v60 = vsub.f32 %v2906_v55, %v3519_v4  ;;  %v4800_v3 = vsub.f32 %v3216_v42, %v3519_v4 }
 0x112   : > { %2307 = vrsqrt.f32 %v889_v1  ;;  %4776 = vst [vmem:[#allocation25_spill] sm:$0xff] %v3775_v44  ;;  %v794_v1 = vsub.f32 %v2324_v25, %v3315_v13  ;;  %v3800_v25 = vmul.f32 %v4753_v58, %v788_v57  ;;  %v3803_v23 = vmul.f32 %v4757_v32, %v790_v59  ;;  %4790 = vst [vmem:[#allocation32_spill] sm:$0xff] %v3830_v2  ;;  %v3835_v44 = vld [vmem:[%s2811_s6 + $0xf0] sm:$0xff]  ;;  %v4792_v10 = vld [vmem:[#allocation60_spill] sm:$0xff] }
 0x113   : > { %v856_v57 = vsub.f32 %v4786_v0, %v3313_v27  ;;  %v858_v59 = vsub.f32 %v4787_v48, %v3315_v13  ;;  %v796_v14 = vsub.f32 %v2327_v29, %v3313_v27  ;;  %v4791_v48 = vld [vmem:[#allocation59_spill] sm:$0xff]  ;;  %v4798_v0 = vsub.f32 %v4734_v15, %v3519_v4 }
 0x114   : > { %4782 = vst [vmem:[#allocation37_spill] sm:$0xff] %v3800_v25  ;;  %4783 = vst [vmem:[#allocation17_spill] sm:$0xff] %v3803_v23  ;;  %v3823_v49 = vmul.f32 %v4757_v32, %v794_v1  ;;  %v3853_v2 = vld [vmem:[%s2811_s6 + $0x110] sm:$0xff]  ;;  %v4801_v55 = vsub.f32 %v2909_v56, %v3521_v18  ;;  %v4802_v15 = vsub.f32 %v4735_v54, %v3521_v18 }
 0x115   : > { %4793 = vst [vmem:[#allocation35_spill] sm:$0xff] %v3853_v2  ;;  %v3858_v24 = vmul.f32 %v4753_v58, %v856_v57  ;;  %v3861_v29 = vmul.f32 %v4757_v32, %v858_v59  ;;  %v3872_v1 = vmul.f32 %v4753_v58, %v796_v14  ;;  %v3875_v57 = vmul.f32 %v4757_v32, %v798_v6  ;;  %v3878_v59 = vld [vmem:[%s2811_s6 + $0x120] sm:$0xff] }
 0x116   : > { %4789 = vst [vmem:[#allocation31_spill] sm:$0xff] %v3823_v49  ;;  %4796 = vst [vmem:[#allocation39_spill] sm:$0xff] %v3878_v59  ;;  %v4799_v6 = vsub.f32 %v2913_v61, %v3519_v4  ;;  %v4803_v61 = vsub.f32 %v2916_v62, %v3521_v18  ;;  %v4804_v42 = vsub.f32 %v3219_v43, %v3521_v18  ;;  %v3919_v59 = vld [vmem:[%s2811_s6 + $0x130] sm:$0xff]  ;;  %v4806_v62 = vld [vmem:[#allocation45_spill] sm:$0xff] }
 0x117   : > { %4794 = vst [vmem:[#allocation55_spill] sm:$0xff] %v3858_v24  ;;  %4795 = vst [vmem:[#allocation36_spill] sm:$0xff] %v3861_v29  ;;  %v862_v23 = vsub.f32 %v4806_v62, %v3315_v13  ;;  %v859_v43 = vsub.f32 %v3356_v31, %v3519_v4  ;;  %v4807_v24 = vsub.f32 %v2919_v63, %v3519_v4 }
 0x11b   : > { %v3867_v28 = vpop.eup %2305 }
 0x11c   : > { %v3882_v17 = vpop.eup %2307  ;;  %v895_v25 = vmul.f32 %v3867_v28, %v4797_v60  ;;  %v959_v14 = vmul.f32 %v3867_v28, %v4798_v0  ;;  %v899_v33 = vmul.f32 %v3867_v28, %v4799_v6  ;;  %v963_v49 = vmul.f32 %v3867_v28, %v4800_v3 }
 0x11d   : > { %v897_v60 = vmul.f32 %v3882_v17, %v4801_v55  ;;  %v961_v0 = vmul.f32 %v3882_v17, %v4802_v15  ;;  %v901_v6 = vmul.f32 %v3882_v17, %v4803_v61  ;;  %v965_v3 = vmul.f32 %v3882_v17, %v4804_v42  ;;  %v4805_v55 = vld [vmem:[#allocation43_spill] sm:$0xff]  ;;  %v2335_v42 = vld [vmem:[%s2811_s6 + $0x148] sm:$0xff] }
 0x11e   : > { %v860_v15 = vsub.f32 %v4805_v55, %v3313_v27  ;;  %v800_v56 = vsub.f32 %v2335_v42, %v3313_v27  ;;  %v903_v54 = vmul.f32 %v3867_v28, %v4807_v24  ;;  %v4808_v55 = vsub.f32 %v2926_v5, %v3521_v18 }
 0x11f   : > { %v1941_v61 = vpack.c.bf16 %v897_v60, %v895_v25  ;;  %v2005_v2 = vpack.c.bf16 %v961_v0, %v959_v14  ;;  %v4809_v25 = vsub.f32 %v4738_v7, %v3519_v4  ;;  %v1945_v60 = vpack.c.bf16 %v901_v6, %v899_v33  ;;  %v2336_v33 = vld [vmem:[%s2811_s6 + $0x158] sm:$0xff] }
 0x120   : > { %v905_v29 = vmul.f32 %v3882_v17, %v4808_v55  ;;  %v2009_v63 = vpack.c.bf16 %v965_v3, %v963_v49  ;;  %v4810_v24 = vsub.f32 %v4739_v30, %v3521_v18  ;;  %v4811_v0 = vpack.c.bf16 %v3663_v47, %v3648_v38  ;;  %v4813_v49 = vld [vmem:[#allocation61_spill] sm:$0xff] }
 0x121   : > { %v967_v31 = vmul.f32 %v3867_v28, %v4809_v25  ;;  %1942 = vmatpush1.bf16.msra.mxu1 %v1941_v61  ;;  %2006 = vmatpush1.bf16.msra.mxu0 %v2005_v2  ;;  %v4812_v7 = vpack.c.bf16 %v3669_v46, %v3651_v9  ;;  %v3956_v62 = vmul.f32 %v4753_v58, %v860_v15  ;;  %v3969_v47 = vld [vmem:[%s2811_s6 + $0x140] sm:$0xff]  ;;  %v4814_v46 = vld [vmem:[#allocation46_spill] sm:$0xff] }
 0x122   : > { %v969_v5 = vmul.f32 %v3882_v17, %v4810_v24  ;;  %1944 = vmatprep.subr.bf16.mxu1 %v4811_v0  ;;  %v3959_v2 = vmul.f32 %v4757_v32, %v862_v23  ;;  %v802_v30 = vsub.f32 %v2336_v33, %v3315_v13  ;;  %v861_v6 = vsub.f32 %v4813_v49, %v3521_v18  ;;  %v4818_v25 = vld [vmem:[#allocation53_spill] sm:$0xff]  ;;  %v3992_v33 = vld [vmem:[%s2811_s6 + $0x150] sm:$0xff] }
 0x123   : > { %2008 = vmatprep.subr.bf16.mxu0 %v4812_v7  ;;  %v3966_v38 = vmul.f32 %v4753_v58, %v800_v56  ;;  %v864_v3 = vsub.f32 %v4814_v46, %v3313_v27  ;;  %v4815_v23 = vsub.f32 %v2937_v11, %v3519_v4  ;;  %v4816_v61 = vsub.f32 %v2940_v16, %v3521_v18  ;;  %v4855_v46 = vld [vmem:[#allocation52_spill] sm:$0xff] }
 0x124   : > { %v4817_v56 = vsub.f32 %v4740_v22, %v3519_v4  ;;  %v4819_v24 = vsub.f32 %v4818_v25, %v3521_v18  ;;  %v1949_v11 = vpack.c.bf16 %v905_v29, %v903_v54  ;;  %v2013_v7 = vpack.c.bf16 %v969_v5, %v967_v31  ;;  %v4822_v29 = vld [vmem:[#allocation47_spill] sm:$0xff]  ;;  %v4859_v16 = vld [vmem:[#allocation20_spill] sm:$0xff] }
 0x125   : > { %v907_v15 = vmul.f32 %v3867_v28, %v4815_v23  ;;  %v909_v42 = vmul.f32 %v3882_v17, %v4816_v61  ;;  %1946 = vmatpush1.bf16.msra.mxu1 %v1945_v60  ;;  %2010 = vmatpush1.bf16.msra.mxu0 %v2009_v63  ;;  %v4820_v49 = vpack.c.bf16 %v3675_v21, %v3672_v12  ;;  %v4824_v21 = vld [vmem:[#allocation62_spill] sm:$0xff]  ;;  %v4826_v61 = vld [vmem:[#allocation15_spill] sm:$0xff] }
 0x126   : > { %v971_v55 = vmul.f32 %v3867_v28, %v4817_v56  ;;  %v973_v0 = vmul.f32 %v3882_v17, %v4819_v24  ;;  %v4821_v22 = vpack.c.bf16 %v3681_v45, %v3678_v26  ;;  %v4005_v60 = vmul.f32 %v4757_v32, %v802_v30  ;;  %v4825_v45 = vld [vmem:[#allocation63_spill] sm:$0xff]  ;;  %v4829_v24 = vld [vmem:[#allocation54_spill] sm:$0xff] }
 0x127   : > { %1948 = vmatprep.subr.bf16.mxu1 %v4820_v49  ;;  %v866_v54 = vsub.f32 %v4822_v29, %v3315_v13  ;;  %v4823_v31 = vsub.f32 %v2957_v36, %v3519_v4  ;;  %v4014_v12 = vmul.f32 %v4753_v58, %v864_v3  ;;  %v863_v26 = vsub.f32 %v4824_v21, %v3519_v4  ;;  %v4060_v21 = vld [vmem:[%s2811_s6 + $0x178] sm:$0xff] }
 0x128   : > { %2012 = vmatprep.subr.bf16.mxu0 %v4821_v22  ;;  %v865_v5 = vsub.f32 %v4825_v45, %v3521_v18  ;;  %v1953_v30 = vpack.c.bf16 %v909_v42, %v907_v15  ;;  %v2017_v23 = vpack.c.bf16 %v973_v0, %v971_v55  ;;  %v4827_v56 = vsub.f32 %v4826_v61, %v3521_v18 }
 0x129   : > { %v911_v63 = vmul.f32 %v3867_v28, %v4823_v31  ;;  %v4828_v25 = vsub.f32 %v3270_v34, %v3519_v4  ;;  %1950 = vmatpush1.bf16.msra.mxu1 %v1949_v11  ;;  %2014 = vmatpush1.bf16.msra.mxu0 %v2013_v7  ;;  %v4830_v49 = vsub.f32 %v4829_v24, %v3521_v18  ;;  %v4055_v31 = vld [vmem:[%s2811_s6 + $0x168] sm:$0xff] }
 0x12a   : > { %v913_v36 = vmul.f32 %v3882_v17, %v4827_v56  ;;  %v4831_v15 = vsub.f32 %v3340_v51, %v3519_v4  ;;  %v4832_v55 = vsub.f32 %v3343_v53, %v3521_v18  ;;  %v4833_v0 = vpack.c.bf16 %v3693_v35, %v3690_v40 }
 0x12b   : > { %v975_v3 = vmul.f32 %v3867_v28, %v4828_v25  ;;  %v977_v22 = vmul.f32 %v3882_v17, %v4830_v49  ;;  %v4834_v11 = vpack.c.bf16 %v3699_v37, %v3696_v50  ;;  %v4835_v51 = vsub.f32 %v4754_v39, %v3519_v4 }
 0x12c   : > { %v4036_v42 = vmul.f32 %v3867_v28, %v4831_v15  ;;  %v4042_v34 = vmul.f32 %v3882_v17, %v4832_v55  ;;  %1952 = vmatprep.subr.bf16.mxu1 %v4833_v0  ;;  %v804_v53 = vsub.f32 %v4055_v31, %v3313_v27  ;;  %v806_v40 = vsub.f32 %v4060_v21, %v3315_v13  ;;  %v4882_v31 = vld [vmem:[#allocation29_spill] sm:$0xff] }
 0x12d   : > { %2016 = vmatprep.subr.bf16.mxu0 %v4834_v11  ;;  %v915_v7 = vmul.f32 %v3867_v28, %v4835_v51  ;;  %v4836_v35 = vsub.f32 %v4755_v8, %v3521_v18  ;;  %v4071_v37 = vmul.f32 %v3867_v28, %v859_v43  ;;  %v4074_v45 = vmul.f32 %v3882_v17, %v861_v6  ;;  %v2342_v51 = vld [vmem:[%s2811_s6 + $0x1d0] sm:$0xff] }
 0x12e   : > { %v1957_v61 = vpack.c.bf16 %v913_v36, %v911_v63  ;;  %v4837_v56 = vsub.f32 %v4770_v20, %v3519_v4  ;;  %v4081_v8 = vmul.f32 %v3867_v28, %v863_v26  ;;  %v4084_v24 = vmul.f32 %v3882_v17, %v865_v5  ;;  %1954 = vmatpush1.bf16.msra.mxu1 %v1953_v30  ;;  %v4839_v36 = vld [vmem:[#allocation48_spill] sm:$0xff]  ;;  %v4841_v26 = vld [vmem:[#allocation50_spill] sm:$0xff]  ;;  %v4842_v5 = vld [vmem:[#allocation49_spill] sm:$0xff] }
 0x12f   : > { %v917_v50 = vmul.f32 %v3882_v17, %v4836_v35  ;;  %2018 = vmatpush1.bf16.msra.mxu0 %v2017_v23  ;;  %v2021_v43 = vpack.c.bf16 %v977_v22, %v975_v3  ;;  %v4838_v6 = vsub.f32 %v4777_v52, %v3521_v18  ;;  %v4840_v49 = vpack.c.bf16 %v3707_v41, %v4839_v36  ;;  %v4844_v30 = vld [vmem:[#allocation26_spill] sm:$0xff]  ;;  %v4846_v3 = vld [vmem:[#allocation27_spill] sm:$0xff]  ;;  %v2341_v41 = vld [vmem:[%s2811_s6 + $0x1c0] sm:$0xff] }
 0x130   : > { %v979_v25 = vmul.f32 %v3867_v28, %v4837_v56  ;;  %v4843_v15 = vpack.c.bf16 %v4841_v26, %v4842_v5  ;;  %v4845_v23 = vsub.f32 %v4844_v30, %v3519_v4  ;;  %v4847_v22 = vsub.f32 %v4846_v3, %v3521_v18  ;;  %v4848_v56 = vld [vmem:[#allocation16_spill] sm:$0xff]  ;;  %v4849_v36 = vld [vmem:[#allocation14_spill] sm:$0xff]  ;;  %v4850_v26 = vld [vmem:[#allocation57_spill] sm:$0xff] }
 0x131   : > { %v981_v63 = vmul.f32 %v3882_v17, %v4838_v6  ;;  %1956 = vmatprep.subr.bf16.mxu1 %v4840_v49  ;;  %v815_v11 = vsub.f32 %v2341_v41, %v3519_v4  ;;  %v817_v35 = vsub.f32 %v2342_v51, %v3521_v18  ;;  %v879_v6 = vsub.f32 %v4848_v56, %v3519_v4  ;;  %v4852_v30 = vld [vmem:[#allocation58_spill] sm:$0xff]  ;;  %v2344_v51 = vld [vmem:[%s2811_s6 + $0x1f0] sm:$0xff] }
 0x132   : > { %2020 = vmatprep.subr.bf16.mxu0 %v4843_v15  ;;  %v919_v52 = vmul.f32 %v3867_v28, %v4845_v23  ;;  %v921_v55 = vmul.f32 %v3882_v17, %v4847_v22  ;;  %v881_v49 = vsub.f32 %v4849_v36, %v3521_v18  ;;  %v4851_v5 = vsub.f32 %v4850_v26, %v3519_v4  ;;  %v2343_v22 = vld [vmem:[%s2811_s6 + $0x1e0] sm:$0xff]  ;;  %v4854_v20 = vld [vmem:[#allocation19_spill] sm:$0xff] }
 0x133   : > { %v4853_v23 = vsub.f32 %v4852_v30, %v3521_v18  ;;  %v819_v41 = vsub.f32 %v2343_v22, %v3519_v4  ;;  %v821_v0 = vsub.f32 %v2344_v51, %v3521_v18  ;;  %1958 = vmatpush1.bf16.msra.mxu1 %v1957_v61  ;;  %2022 = vmatpush1.bf16.msra.mxu0 %v2021_v43  ;;  %v4858_v30 = vld [vmem:[#allocation21_spill] sm:$0xff]  ;;  %v4861_v22 = vld [vmem:[#allocation32_spill] sm:$0xff] }
 0x134   : > { %v983_v15 = vmul.f32 %v3867_v28, %v4851_v5  ;;  %v1961_v56 = vpack.c.bf16 %v917_v50, %v915_v7  ;;  %v2025_v36 = vpack.c.bf16 %v981_v63, %v979_v25  ;;  %v883_v26 = vsub.f32 %v4854_v20, %v3519_v4  ;;  %v4856_v5 = vld [vmem:[#allocation51_spill] sm:$0xff]  ;;  %v4863_v7 = vld [vmem:[#allocation44_spill] sm:$0xff] }
 0x135   : > { %v985_v3 = vmul.f32 %v3882_v17, %v4853_v23  ;;  %v4857_v14 = vpack.c.bf16 %v4855_v46, %v4856_v5  ;;  %v4860_v23 = vpack.c.bf16 %v4858_v30, %v4859_v16  ;;  %v1965_v9 = vpack.c.bf16 %v921_v55, %v919_v52  ;;  %v2345_v5 = vld [vmem:[%s2811_s6 + $0x368] sm:$0xff] }
 0x136   : > { %v4862_v39 = vsub.f32 %v4861_v22, %v3519_v4  ;;  %v885_v50 = vsub.f32 %v4863_v7, %v3521_v18  ;;  %v4864_v25 = vsub.f32 %v3835_v44, %v3521_v18  ;;  %v4150_v16 = vmul.f32 %v3882_v17, %v817_v35 }
 0x137   : > { %1960 = vmatprep.subr.bf16.mxu1 %v4857_v14  ;;  %2024 = vmatprep.subr.bf16.mxu0 %v4860_v23  ;;  %v4147_v14 = vmul.f32 %v3867_v28, %v815_v11  ;;  %v4153_v46 = vmul.f32 %v3867_v28, %v879_v6  ;;  %v2029_v63 = vpack.c.bf16 %v985_v3, %v983_v15  ;;  %v4867_v6 = vld [vmem:[#allocation23_spill] sm:$0xff]  ;;  %v4870_v3 = vld [vmem:[#allocation25_spill] sm:$0xff]  ;;  %v2346_v23 = vld [vmem:[%s2811_s6 + $0x378] sm:$0xff] }
 0x138   : > { %v923_v61 = vmul.f32 %v3867_v28, %v4862_v39  ;;  %v925_v43 = vmul.f32 %v3882_v17, %v4864_v25  ;;  %v4865_v39 = vsub.f32 %v4791_v48, %v3519_v4  ;;  %v4160_v44 = vmul.f32 %v3882_v17, %v881_v49  ;;  %1962 = vmatpush1.bf16.msra.mxu1 %v1961_v56  ;;  %v4868_v49 = vld [vmem:[#allocation22_spill] sm:$0xff] }
 0x139   : > { %v4163_v52 = vmul.f32 %v3867_v28, %v819_v41  ;;  %2026 = vmatpush1.bf16.msra.mxu0 %v2025_v36  ;;  %v4866_v55 = vsub.f32 %v4792_v10, %v3521_v18  ;;  %v1997_v48 = vpack.c.bf16 %v4150_v16, %v4147_v14  ;;  %v4172_v35 = vmul.f32 %v3882_v17, %v821_v0  ;;  %v4871_v41 = vld [vmem:[#allocation24_spill] sm:$0xff]  ;;  %v2347_v25 = vld [vmem:[%s2811_s6 + $0x188] sm:$0xff]  ;;  %v1027_v14 = vld [vmem:[#allocation5 + $0x20] sm:$0xff] }
 0x13a   : > { %v987_v20 = vmul.f32 %v3867_v28, %v4865_v39  ;;  %v4869_v15 = vpack.c.bf16 %v4867_v6, %v4868_v49  ;;  %v4872_v51 = vpack.c.bf16 %v4870_v3, %v4871_v41  ;;  %v2061_v10 = vpack.c.bf16 %v4160_v44, %v4153_v46  ;;  %v4876_v41 = vld [vmem:[#allocation17_spill] sm:$0xff]  ;;  %v1029_v16 = vld [vmem:[#allocation5 + $0x30] sm:$0xff]  ;;  %v1032_v46 = vld [vmem:[#allocation5 + $0x48] sm:$0xff] }
 0x13b   : > { %v989_v11 = vmul.f32 %v3882_v17, %v4866_v55  ;;  %v4183_v56 = vmul.f32 %v3867_v28, %v883_v26  ;;  %v4186_v36 = vmul.f32 %v3882_v17, %v885_v50  ;;  %v4192_v0 = vmul.f32 %v4757_v32, %v866_v54  ;;  %v2348_v54 = vld [vmem:[%s2811_s6 + $0x198] sm:$0xff] }
 0x13c   : > { %1964 = vmatprep.subr.bf16.mxu1 %v4869_v15  ;;  %2028 = vmatprep.subr.bf16.mxu0 %v4872_v51  ;;  %v868_v30 = vsub.f32 %v2345_v5, %v3313_v27  ;;  %v870_v22 = vsub.f32 %v2346_v23, %v3315_v13  ;;  %v2001_v7 = vpack.c.bf16 %v4172_v35, %v4163_v52  ;;  %v4874_v15 = vld [vmem:[#allocation35_spill] sm:$0xff]  ;;  %v4877_v51 = vld [vmem:[#allocation37_spill] sm:$0xff]  ;;  %v4879_v23 = vld [vmem:[#allocation38_spill] sm:$0xff] }
 0x13d   : > { %v4873_v26 = vsub.f32 %v3848_v19, %v3519_v4  ;;  %v808_v29 = vsub.f32 %v2347_v25, %v3313_v27  ;;  %v810_v39 = vsub.f32 %v2348_v54, %v3315_v13  ;;  %v2065_v55 = vpack.c.bf16 %v4186_v36, %v4183_v56  ;;  %1966 = vmatpush1.bf16.msra.mxu1 %v1965_v9  ;;  %v1034_v44 = vld [vmem:[#allocation5 + $0x58] sm:$0xff]  ;;  %v1031_v52 = vld [vmem:[#allocation5 + $0x40] sm:$0xff]  ;;  %v1036_v35 = vld [vmem:[#allocation5 + $0x68] sm:$0xff] }
 0x13e   : > { %2030 = vmatpush1.bf16.msra.mxu0 %v2029_v63  ;;  %v1969_v6 = vpack.c.bf16 %v925_v43, %v923_v61  ;;  %v2033_v49 = vpack.c.bf16 %v989_v11, %v987_v20  ;;  %v4875_v19 = vsub.f32 %v4874_v15, %v3521_v18  ;;  %v4878_v5 = vpack.c.bf16 %v4876_v41, %v4877_v51  ;;  %v2349_v63 = vld [vmem:[%s2811_s6 + $0x160] sm:$0xff]  ;;  %v2350_v11 = vld [vmem:[%s2811_s6 + $0x170] sm:$0xff] }
 0x13f   : > { %v927_v50 = vmul.f32 %v3867_v28, %v4873_v26  ;;  %v4880_v26 = vld [vmem:[#allocation18_spill] sm:$0xff]  ;;  %v1979_v54 = vpack.c.bf16 %v4005_v60, %v3966_v38  ;;  %v4226_v9 = vmul.f32 %v4753_v58, %v804_v53  ;;  %v4232_v61 = vmul.f32 %v4757_v32, %v806_v40  ;;  %v4883_v41 = vld [vmem:[#allocation39_spill] sm:$0xff]  ;;  %v1035_v56 = vld [vmem:[#allocation5 + $0x60] sm:$0xff] }
 0x140   : > { %v929_v3 = vmul.f32 %v3882_v17, %v4875_v19  ;;  %1968 = vmatprep.subr.bf16.mxu1 %v4878_v5  ;;  %v4881_v25 = vpack.c.bf16 %v4879_v23, %v4880_v26  ;;  %v2043_v43 = vpack.c.bf16 %v4192_v0, %v4014_v12  ;;  %v803_v20 = vsub.f32 %v2349_v63, %v3519_v4  ;;  %v4887_v23 = vld [vmem:[#allocation28_spill] sm:$0xff]  ;;  %v2351_v63 = vld [vmem:[%s2811_s6 + $0x388] sm:$0xff]  ;;  %v1037_v36 = vld [vmem:[#allocation5 + $0x70] sm:$0xff] }
 0x141   : > { %v805_v15 = vsub.f32 %v2350_v11, %v3521_v18  ;;  %v867_v53 = vsub.f32 %v4882_v31, %v3519_v4  ;;  %v4243_v19 = vmul.f32 %v4753_v58, %v868_v30  ;;  %v4246_v21 = vmul.f32 %v4757_v32, %v870_v22  ;;  %1970 = vmatpush1.bf16.msra.mxu1 %v1969_v6  ;;  %v2352_v11 = vld [vmem:[%s2811_s6 + $0x180] sm:$0xff]  ;;  %v2363_v38 = vld [vmem:[%s2811_s6 + $0x3c8] sm:$0xff] }
 0x142   : > { %2032 = vmatprep.subr.bf16.mxu0 %v4881_v25  ;;  %v4249_v12 = vmul.f32 %v4753_v58, %v808_v29  ;;  %v4252_v40 = vmul.f32 %v4757_v32, %v810_v39  ;;  %v1973_v0 = vpack.c.bf16 %v929_v3, %v927_v50  ;;  %v4884_v51 = vsub.f32 %v4883_v41, %v3519_v4  ;;  %v4886_v29 = vld [vmem:[#allocation31_spill] sm:$0xff]  ;;  %v4889_v39 = vld [vmem:[#allocation36_spill] sm:$0xff] }
 0x143   : > { %2034 = vmatpush1.bf16.msra.mxu0 %v2033_v49  ;;  %v4885_v22 = vsub.f32 %v3919_v59, %v3521_v18  ;;  %v4888_v26 = vpack.c.bf16 %v4886_v29, %v4887_v23  ;;  %v4890_v25 = vld [vmem:[#allocation55_spill] sm:$0xff]  ;;  %v1983_v50 = vpack.c.bf16 %v4232_v61, %v4226_v9  ;;  %v4892_v49 = vld [vmem:[#allocation30_spill] sm:$0xff]  ;;  %v872_v59 = vsub.f32 %v2351_v63, %v3313_v27  ;;  %v2356_v63 = vld [vmem:[%s2811_s6 + $0x1b8] sm:$0xff] }
 0x144   : > { %v931_v30 = vmul.f32 %v3867_v28, %v4884_v51  ;;  %v4891_v6 = vpack.c.bf16 %v4889_v39, %v4890_v25  ;;  %v869_v3 = vsub.f32 %v4892_v49, %v3521_v18  ;;  %v807_v31 = vsub.f32 %v2352_v11, %v3519_v4  ;;  %v2353_v41 = vld [vmem:[%s2811_s6 + $0x190] sm:$0xff]  ;;  %v2355_v23 = vld [vmem:[%s2811_s6 + $0x1a8] sm:$0xff] }
 0x145   : > { %v933_v5 = vmul.f32 %v3882_v17, %v4885_v22  ;;  %1972 = vmatprep.subr.bf16.mxu1 %v4888_v26  ;;  %v809_v51 = vsub.f32 %v2353_v41, %v3521_v18  ;;  %v2354_v22 = vld [vmem:[%s2811_s6 + $0x398] sm:$0xff]  ;;  %v812_v26 = vsub.f32 %v2355_v23, %v3313_v27  ;;  %v2047_v39 = vpack.c.bf16 %v4246_v21, %v4243_v19 }
 0x146   : > { %2036 = vmatprep.subr.bf16.mxu0 %v4891_v6  ;;  %v874_v29 = vsub.f32 %v2354_v22, %v3315_v13  ;;  %v1987_v25 = vpack.c.bf16 %v4252_v40, %v4249_v12  ;;  %v4893_v6 = vld [vmem:[#allocation33_spill] sm:$0xff]  ;;  %v814_v11 = vsub.f32 %v2356_v63, %v3315_v13  ;;  %1974 = vmatpush1.bf16.msra.mxu1 %v1973_v0 }
 0x147   : > { %v871_v49 = vsub.f32 %v4893_v6, %v3519_v4  ;;  %v4894_v41 = vpack.c.bf16 %v4042_v34, %v4036_v42  ;;  %v1977_v22 = vpack.c.bf16 %v933_v5, %v931_v30  ;;  %v4895_v19 = vsub.f32 %v3969_v47, %v3519_v4  ;;  %v4899_v47 = vld [vmem:[#allocation34_spill] sm:$0xff] }
 0x148   : > { %v4896_v23 = vsub.f32 %v3992_v33, %v3521_v18  ;;  %v4897_v63 = vpack.c.bf16 %v3875_v57, %v3872_v1  ;;  %v4898_v42 = vpack.c.bf16 %v3959_v2, %v3956_v62  ;;  %v1008_v34 = vmul.f32 %v4753_v58, %v872_v59  ;;  %v2357_v30 = vld [vmem:[%s2811_s6 + $0x3a8] sm:$0xff]  ;;  %v2358_v1 = vld [vmem:[%s2811_s6 + $0x1a0] sm:$0xff] }
 0x149   : > { %2038 = vmatpush1.bf16.msra.mxu0 %v4894_v41  ;;  %v935_v21 = vmul.f32 %v3867_v28, %v4895_v19  ;;  %v873_v0 = vsub.f32 %v4899_v47, %v3521_v18  ;;  %v876_v5 = vsub.f32 %v2357_v30, %v3313_v27  ;;  %v1010_v33 = vmul.f32 %v4757_v32, %v874_v29  ;;  %v2359_v19 = vld [vmem:[%s2811_s6 + $0x3b8] sm:$0xff]  ;;  %v2361_v30 = vld [vmem:[%s2811_s6 + $0x1c8] sm:$0xff] }
 0x14a   : > { %v937_v6 = vmul.f32 %v3882_v17, %v4896_v23  ;;  %1976 = vmatprep.subr.bf16.mxu1 %v4897_v63  ;;  %2040 = vmatprep.subr.bf16.mxu0 %v4898_v42  ;;  %v4314_v41 = vmul.f32 %v4753_v58, %v812_v26  ;;  %v811_v57 = vsub.f32 %v2358_v1, %v3519_v4  ;;  %v2360_v63 = vld [vmem:[%s2811_s6 + $0x1b0] sm:$0xff] }
 0x14b   : > { %v878_v62 = vsub.f32 %v2359_v19, %v3315_v13  ;;  %v939_v2 = vmul.f32 %v3867_v28, %v803_v20  ;;  %v941_v59 = vmul.f32 %v3882_v17, %v805_v15  ;;  %v4323_v23 = vmul.f32 %v4757_v32, %v814_v11  ;;  %1978 = vmatpush1.bf16.msra.mxu1 %v1977_v22  ;;  %v4901_v11 = vld [vmem:[#allocation41_spill] sm:$0xff] }
 0x14c   : > { %v813_v29 = vsub.f32 %v2360_v63, %v3521_v18  ;;  %v4900_v26 = vpack.c.bf16 %v4074_v45, %v4071_v37  ;;  %v1981_v42 = vpack.c.bf16 %v937_v6, %v935_v21  ;;  %v1003_v47 = vmul.f32 %v3867_v28, %v867_v53  ;;  %1980 = vmatprep.subr.bf16.mxu1 %v1979_v54  ;;  %v4902_v53 = vld [vmem:[#allocation13_spill] sm:$0xff] }
 0x14d   : > { %v1005_v20 = vmul.f32 %v3882_v17, %v869_v3  ;;  %v1012_v15 = vmul.f32 %v4753_v58, %v876_v5  ;;  %v875_v22 = vsub.f32 %v4901_v11, %v3519_v4  ;;  %v816_v37 = vsub.f32 %v2361_v30, %v3313_v27  ;;  %v2362_v3 = vld [vmem:[%s2811_s6 + $0x1d8] sm:$0xff] }
 0x14e   : > { %2042 = vmatpush1.bf16.msra.mxu0 %v4900_v26  ;;  %v1014_v45 = vmul.f32 %v4757_v32, %v878_v62  ;;  %v877_v21 = vsub.f32 %v4902_v53, %v3521_v18  ;;  %v818_v6 = vsub.f32 %v2362_v3, %v3315_v13  ;;  %v880_v60 = vsub.f32 %v2363_v38, %v3313_v27  ;;  %v2364_v4 = vld [vmem:[%s2811_s6 + $0x3d8] sm:$0xff]  ;;  %v1044_v53 = vld [vmem:[#allocation5 + $0xa8] sm:$0xff]  ;;  %v1043_v3 = vld [vmem:[#allocation5 + $0xa0] sm:$0xff] }
 0x14f   : > { %2044 = vmatprep.subr.bf16.mxu0 %v2043_v43  ;;  %v1985_v54 = vpack.c.bf16 %v941_v59, %v939_v2  ;;  %v943_v43 = vmul.f32 %v3867_v28, %v807_v31  ;;  %v945_v5 = vmul.f32 %v3882_v17, %v809_v51  ;;  %v882_v1 = vsub.f32 %v2364_v4, %v3315_v13  ;;  %v1030_v30 = vld [vmem:[#allocation5 + $0x38] sm:$0xff]  ;;  %v1048_v38 = vld [vmem:[#allocation5 + $0xc8] sm:$0xff] }
 0x150   : > { %1982 = vmatpush1.bf16.msra.mxu1 %v1981_v42  ;;  %v4903_v19 = vpack.c.bf16 %v4084_v24, %v4081_v8  ;;  %v2049_v18 = vpack.c.bf16 %v1005_v20, %v1003_v47  ;;  %v1007_v62 = vmul.f32 %v3867_v28, %v871_v49  ;;  %v1009_v63 = vmul.f32 %v3882_v17, %v873_v0  ;;  %v2365_v49 = vld [vmem:[%s2811_s6 + $0x1e8] sm:$0xff]  ;;  %v2368_v42 = vld [vmem:[%s2811_s6 + $0x3f8] sm:$0xff] }
 0x151   : > { %1984 = vmatprep.subr.bf16.mxu1 %v1983_v50  ;;  %v2051_v31 = vpack.c.bf16 %v1010_v33, %v1008_v34  ;;  %v1991_v51 = vpack.c.bf16 %v4323_v23, %v4314_v41  ;;  %v952_v2 = vmul.f32 %v4753_v58, %v816_v37  ;;  %v2055_v59 = vpack.c.bf16 %v1014_v45, %v1012_v15  ;;  %v2366_v23 = vld [vmem:[%s2811_s6 + $0x1f8] sm:$0xff]  ;;  %v1039_v37 = vld [vmem:[#allocation5 + $0x80] sm:$0xff]  ;;  %v1041_v45 = vld [vmem:[#allocation5 + $0x90] sm:$0xff] }
 0x152   : > { %2046 = vmatpush1.bf16.msra.mxu0 %v4903_v19  ;;  %v954_v8 = vmul.f32 %v4757_v32, %v818_v6  ;;  %v1016_v24 = vmul.f32 %v4753_v58, %v880_v60  ;;  %v820_v0 = vsub.f32 %v2365_v49, %v3313_v27  ;;  %v1989_v9 = vpack.c.bf16 %v945_v5, %v943_v43  ;;  %v1045_v6 = vld [vmem:[#allocation5 + $0xb0] sm:$0xff]  ;;  %v1050_v60 = vld [vmem:[#allocation5 + $0xd8] sm:$0xff]  ;;  %v1052_v5 = vld [vmem:[#allocation5 + $0xe8] sm:$0xff] }
 0x153   : > { %2048 = vmatprep.subr.bf16.mxu0 %v2047_v39  ;;  %v947_v61 = vmul.f32 %v3867_v28, %v811_v57  ;;  %v949_v50 = vmul.f32 %v3882_v17, %v813_v29  ;;  %v1018_v39 = vmul.f32 %v4757_v32, %v882_v1  ;;  %v2053_v34 = vpack.c.bf16 %v1009_v63, %v1007_v62  ;;  %v2367_v57 = vld [vmem:[%s2811_s6 + $0x3e8] sm:$0xff]  ;;  %v1049_v43 = vld [vmem:[#allocation5 + $0xd0] sm:$0xff]  ;;  %v1054_v4 = vld [vmem:[#allocation5 + $0xf8] sm:$0xff] }
 0x154   : > { %1986 = vmatpush1.bf16.msra.mxu1 %v1985_v54  ;;  %v1011_v33 = vmul.f32 %v3867_v28, %v875_v22  ;;  %v1013_v41 = vmul.f32 %v3882_v17, %v877_v21  ;;  %v822_v26 = vsub.f32 %v2366_v23, %v3315_v13  ;;  %v884_v29 = vsub.f32 %v2367_v57, %v3313_v27  ;;  %v1028_v22 = vld [vmem:[#allocation5 + $0x28] sm:$0xff]  ;;  %v1046_v21 = vld [vmem:[#allocation5 + $0xb8] sm:$0xff]  ;;  %v1047_v54 = vld [vmem:[#allocation5 + $0xc0] sm:$0xff] }
 0x155   : > { %1988 = vmatprep.subr.bf16.mxu1 %v1987_v25  ;;  %v886_v47 = vsub.f32 %v2368_v42, %v3315_v13  ;;  %v1995_v20 = vpack.c.bf16 %v954_v8, %v952_v2  ;;  %v956_v15 = vmul.f32 %v4753_v58, %v820_v0  ;;  %v1993_v17 = vpack.c.bf16 %v949_v50, %v947_v61  ;;  %v1051_v1 = vld [vmem:[#allocation5 + $0xe0] sm:$0xff]  ;;  %v1053_v19 = vld [vmem:[#allocation5 + $0xf0] sm:$0xff]  ;;  %v1058_v62 = vld [vmem:[#allocation5 + $0x118] sm:$0xff] }
 0x156   : > { %2050 = vmatpush1.bf16.msra.mxu0 %v2049_v18  ;;  %v2057_v28 = vpack.c.bf16 %v1013_v41, %v1011_v33  ;;  %v2059_v11 = vpack.c.bf16 %v1018_v39, %v1016_v24  ;;  %v958_v12 = vmul.f32 %v4757_v32, %v822_v26  ;;  %v1020_v40 = vmul.f32 %v4753_v58, %v884_v29  ;;  %v1023_v58 = vld [vmem:[#allocation5] sm:$0xff]  ;;  %v1056_v18 = vld [vmem:[#allocation5 + $0x108] sm:$0xff]  ;;  %v1062_v2 = vld [vmem:[#allocation5 + $0x138] sm:$0xff] }
 0x157   : > { %2052 = vmatprep.subr.bf16.mxu0 %v2051_v31  ;;  %v1022_v25 = vmul.f32 %v4757_v32, %v886_v47  ;;  %v1025_v32 = vld [vmem:[#allocation5 + $0x10] sm:$0xff]  ;;  %v1055_v63 = vld [vmem:[#allocation5 + $0x100] sm:$0xff]  ;;  %v1064_v24 = vld [vmem:[#allocation5 + $0x148] sm:$0xff] }
 0x158   : > { %1990 = vmatpush1.bf16.msra.mxu1 %v1989_v9  ;;  %v1999_v27 = vpack.c.bf16 %v958_v12, %v956_v15  ;;  %v1057_v31 = vld [vmem:[#allocation5 + $0x110] sm:$0xff]  ;;  %v1066_v49 = vld [vmem:[#allocation5 + $0x158] sm:$0xff]  ;;  %v1063_v0 = vld [vmem:[#allocation5 + $0x140] sm:$0xff] }
 0x159   : > { %1992 = vmatprep.subr.bf16.mxu1 %v1991_v51  ;;  %v2063_v13 = vpack.c.bf16 %v1022_v25, %v1020_v40  ;;  %v1060_v51 = vld [vmem:[#allocation5 + $0x128] sm:$0xff]  ;;  %v1061_v8 = vld [vmem:[#allocation5 + $0x130] sm:$0xff]  ;;  %v1070_v50 = vld [vmem:[#allocation5 + $0x178] sm:$0xff] }
 0x15a   : > { %2054 = vmatpush1.bf16.msra.mxu0 %v2053_v34  ;;  %v1065_v9 = vld [vmem:[#allocation5 + $0x150] sm:$0xff]  ;;  %v1068_v61 = vld [vmem:[#allocation5 + $0x168] sm:$0xff]  ;;  %v1067_v39 = vld [vmem:[#allocation5 + $0x160] sm:$0xff] }
 0x15b   : > { %2056 = vmatprep.subr.bf16.mxu0 %v2055_v59  ;;  %v1059_v59 = vld [vmem:[#allocation5 + $0x120] sm:$0xff]  ;;  %v1069_v34 = vld [vmem:[#allocation5 + $0x170] sm:$0xff]  ;;  %v1072_v33 = vld [vmem:[#allocation5 + $0x188] sm:$0xff] }
 0x15c   : > { %1994 = vmatpush1.bf16.msra.mxu1 %v1993_v17  ;;  %v1074_v41 = vld [vmem:[#allocation5 + $0x198] sm:$0xff]  ;;  %v1071_v23 = vld [vmem:[#allocation5 + $0x180] sm:$0xff]  ;;  %v1073_v26 = vld [vmem:[#allocation5 + $0x190] sm:$0xff] }
 0x15d   : > { %1996 = vmatprep.subr.bf16.mxu1 %v1995_v20  ;;  %v1076_v57 = vld [vmem:[#allocation5 + $0x1a8] sm:$0xff]  ;;  %v1078_v29 = vld [vmem:[#allocation5 + $0x1b8] sm:$0xff]  ;;  %v1075_v42 = vld [vmem:[#allocation5 + $0x1a0] sm:$0xff] }
 0x15e   : > { %2058 = vmatpush1.bf16.msra.mxu0 %v2057_v28  ;;  %v1077_v47 = vld [vmem:[#allocation5 + $0x1b0] sm:$0xff]  ;;  %v1080_v20 = vld [vmem:[#allocation5 + $0x1c8] sm:$0xff]  ;;  %v1082_v15 = vld [vmem:[#allocation5 + $0x1d8] sm:$0xff] }
 0x15f   : > { %2060 = vmatprep.subr.bf16.mxu0 %v2059_v11  ;;  %v1079_v17 = vld [vmem:[#allocation5 + $0x1c0] sm:$0xff]  ;;  %v1081_v28 = vld [vmem:[#allocation5 + $0x1d0] sm:$0xff]  ;;  %v1084_v11 = vld [vmem:[#allocation5 + $0x1e8] sm:$0xff] }
 0x160   : > { %1998 = vmatpush1.bf16.msra.mxu1 %v1997_v48  ;;  %v1033_v48 = vld [vmem:[#allocation5 + $0x50] sm:$0xff]  ;;  %v1086_v12 = vld [vmem:[#allocation5 + $0x1f8] sm:$0xff]  ;;  %v1083_v40 = vld [vmem:[#allocation5 + $0x1e0] sm:$0xff] }
 0x161   : > { %2000 = vmatprep.subr.bf16.mxu1 %v1999_v27  ;;  %v1085_v25 = vld [vmem:[#allocation5 + $0x1f0] sm:$0xff]  ;;  %v1088_v27 = vld [vmem:[#allocation5 + $0x208] sm:$0xff] }
 0x162   : > { %2062 = vmatpush1.bf16.msra.mxu0 %v2061_v10  ;;  %v1038_v10 = vld [vmem:[#allocation5 + $0x78] sm:$0xff] }
 0x163   : > { %2064 = vmatprep.subr.bf16.mxu0 %v2063_v13  ;;  %v1090_v13 = vld [vmem:[#allocation5 + $0x218] sm:$0xff] }
 0x164   : > { %2002 = vmatpush1.bf16.msra.mxu1 %v2001_v7  ;;  %v1040_v7 = vld [vmem:[#allocation5 + $0x88] sm:$0xff] }
 0x166   : > { %2066 = vmatpush1.bf16.msra.mxu0 %v2065_v55  ;;  %v1042_v55 = vld [vmem:[#allocation5 + $0x98] sm:$0xff] }
 0x167   : > { %1280 = vmatmul.mubr.f32.vlgmr.msra.gmra.mrb[0].mxu1 %v1023_v58  ;;  %v1087_v58 = vld [vmem:[#allocation5 + $0x200] sm:$0xff] }
 0x168   : > { %1285 = vmatprep.mubr.f32.mxu1 %v1028_v22  ;;  %v1092_v22 = vld [vmem:[#allocation5 + $0x228] sm:$0xff] }
 0x169   : > { %1537 = vmatmul.mubr.f32.vlgmr.msra.gmra.mrb[0].mxu0 %v1025_v32  ;;  %v1089_v32 = vld [vmem:[#allocation5 + $0x210] sm:$0xff] }
 0x16a   : > { %1542 = vmatprep.mubr.f32.mxu0 %v1030_v30  ;;  %v1094_v30 = vld [vmem:[#allocation5 + $0x238] sm:$0xff] }
 0x16b   : > { %1286 = vmatmul.mubr.f32.gmra.mrb[2].mxu1 %v1027_v14  ;;  %v1091_v14 = vld [vmem:[#allocation5 + $0x220] sm:$0xff] }
 0x16c   : > { %1291 = vmatprep.mubr.f32.mxu1 %v1032_v46  ;;  %v1096_v46 = vld [vmem:[#allocation5 + $0x248] sm:$0xff] }
 0x16d   : > { %1543 = vmatmul.mubr.f32.gmra.mrb[2].mxu0 %v1029_v16  ;;  %v1093_v16 = vld [vmem:[#allocation5 + $0x230] sm:$0xff] }
 0x16e   : > { %1548 = vmatprep.mubr.f32.mxu0 %v1034_v44  ;;  %v1098_v44 = vld [vmem:[#allocation5 + $0x258] sm:$0xff] }
 0x16f   : > { %1292 = vmatmul.mubr.f32.gmra.mrb[4].mxu1 %v1031_v52  ;;  %v1095_v52 = vld [vmem:[#allocation5 + $0x240] sm:$0xff] }
 0x170   : > { %1297 = vmatprep.mubr.f32.mxu1 %v1036_v35  ;;  %v1100_v35 = vld [vmem:[#allocation5 + $0x268] sm:$0xff] }
 0x171   : > { %1549 = vmatmul.mubr.f32.gmra.mrb[4].mxu0 %v1033_v48  ;;  %v1097_v48 = vld [vmem:[#allocation5 + $0x250] sm:$0xff] }
 0x172   : > { %1554 = vmatprep.mubr.f32.mxu0 %v1038_v10  ;;  %v1102_v10 = vld [vmem:[#allocation5 + $0x278] sm:$0xff] }
 0x173   : > { %1298 = vmatmul.mubr.f32.gmra.mrb[6].mxu1 %v1035_v56  ;;  %v1099_v56 = vld [vmem:[#allocation5 + $0x260] sm:$0xff] }
 0x174   : > { %1303 = vmatprep.mubr.f32.mxu1 %v1040_v7  ;;  %v1104_v7 = vld [vmem:[#allocation5 + $0x288] sm:$0xff] }
 0x175   : > { %1555 = vmatmul.mubr.f32.gmra.mrb[6].mxu0 %v1037_v36  ;;  %v1101_v36 = vld [vmem:[#allocation5 + $0x270] sm:$0xff] }
 0x176   : > { %1560 = vmatprep.mubr.f32.mxu0 %v1042_v55  ;;  %v1106_v55 = vld [vmem:[#allocation5 + $0x298] sm:$0xff] }
 0x177   : > { %1304 = vmatmul.mubr.f32.gmra.mrb[8].mxu1 %v1039_v37  ;;  %v1103_v37 = vld [vmem:[#allocation5 + $0x280] sm:$0xff] }
 0x178   : > { %1309 = vmatprep.mubr.f32.mxu1 %v1044_v53  ;;  %v1108_v53 = vld [vmem:[#allocation5 + $0x2a8] sm:$0xff] }
 0x179   : > { %1561 = vmatmul.mubr.f32.gmra.mrb[8].mxu0 %v1041_v45  ;;  %v1105_v45 = vld [vmem:[#allocation5 + $0x290] sm:$0xff] }
 0x17a   : > { %1566 = vmatprep.mubr.f32.mxu0 %v1046_v21  ;;  %v1110_v21 = vld [vmem:[#allocation5 + $0x2b8] sm:$0xff] }
 0x17b   : > { %1310 = vmatmul.mubr.f32.gmra.mrb[10].mxu1 %v1043_v3  ;;  %v1107_v3 = vld [vmem:[#allocation5 + $0x2a0] sm:$0xff] }
 0x17c   : > { %1315 = vmatprep.mubr.f32.mxu1 %v1048_v38  ;;  %v1112_v38 = vld [vmem:[#allocation5 + $0x2c8] sm:$0xff] }
 0x17d   : > { %1567 = vmatmul.mubr.f32.gmra.mrb[10].mxu0 %v1045_v6  ;;  %v1109_v6 = vld [vmem:[#allocation5 + $0x2b0] sm:$0xff] }
 0x17e   : > { %1572 = vmatprep.mubr.f32.mxu0 %v1050_v60  ;;  %v1114_v60 = vld [vmem:[#allocation5 + $0x2d8] sm:$0xff] }
 0x17f   : > { %1316 = vmatmul.mubr.f32.gmra.mrb[12].mxu1 %v1047_v54  ;;  %v1111_v54 = vld [vmem:[#allocation5 + $0x2c0] sm:$0xff] }
 0x180   : > { %1321 = vmatprep.mubr.f32.mxu1 %v1052_v5  ;;  %v1116_v5 = vld [vmem:[#allocation5 + $0x2e8] sm:$0xff] }
 0x181   : > { %1573 = vmatmul.mubr.f32.gmra.mrb[12].mxu0 %v1049_v43  ;;  %v1113_v43 = vld [vmem:[#allocation5 + $0x2d0] sm:$0xff] }
 0x182   : > { %1578 = vmatprep.mubr.f32.mxu0 %v1054_v4  ;;  %v1118_v4 = vld [vmem:[#allocation5 + $0x2f8] sm:$0xff] }
 0x183   : > { %1322 = vmatmul.mubr.f32.gmra.mrb[14].mxu1 %v1051_v1  ;;  %v1115_v1 = vld [vmem:[#allocation5 + $0x2e0] sm:$0xff] }
 0x184   : > { %1327 = vmatprep.mubr.f32.mxu1 %v1056_v18  ;;  %v1120_v18 = vld [vmem:[#allocation5 + $0x308] sm:$0xff] }
 0x185   : > { %1579 = vmatmul.mubr.f32.gmra.mrb[14].mxu0 %v1053_v19  ;;  %v1117_v19 = vld [vmem:[#allocation5 + $0x2f0] sm:$0xff] }
 0x186   : > { %1584 = vmatprep.mubr.f32.mxu0 %v1058_v62  ;;  %v1122_v62 = vld [vmem:[#allocation5 + $0x318] sm:$0xff] }
 0x187   : > { %1328 = vmatmul.mubr.f32.gmra.mrb[16].mxu1 %v1055_v63  ;;  %v1119_v63 = vld [vmem:[#allocation5 + $0x300] sm:$0xff] }
 0x188   : > { %1333 = vmatprep.mubr.f32.mxu1 %v1060_v51  ;;  %v1124_v51 = vld [vmem:[#allocation5 + $0x328] sm:$0xff] }
 0x189   : > { %1585 = vmatmul.mubr.f32.gmra.mrb[16].mxu0 %v1057_v31  ;;  %v1121_v31 = vld [vmem:[#allocation5 + $0x310] sm:$0xff] }
 0x18a   : > { %1590 = vmatprep.mubr.f32.mxu0 %v1062_v2  ;;  %v1126_v2 = vld [vmem:[#allocation5 + $0x338] sm:$0xff] }
 0x18b   : > { %1334 = vmatmul.mubr.f32.gmra.mrb[18].mxu1 %v1059_v59  ;;  %v1123_v59 = vld [vmem:[#allocation5 + $0x320] sm:$0xff] }
 0x18c   : > { %1339 = vmatprep.mubr.f32.mxu1 %v1064_v24  ;;  %v1128_v24 = vld [vmem:[#allocation5 + $0x348] sm:$0xff] }
 0x18d   : > { %1591 = vmatmul.mubr.f32.gmra.mrb[18].mxu0 %v1061_v8  ;;  %v1125_v8 = vld [vmem:[#allocation5 + $0x330] sm:$0xff] }
 0x18e   : > { %1596 = vmatprep.mubr.f32.mxu0 %v1066_v49  ;;  %v1130_v49 = vld [vmem:[#allocation5 + $0x358] sm:$0xff] }
 0x18f   : > { %1340 = vmatmul.mubr.f32.gmra.mrb[20].mxu1 %v1063_v0  ;;  %v1127_v0 = vld [vmem:[#allocation5 + $0x340] sm:$0xff] }
 0x190   : > { %1345 = vmatprep.mubr.f32.mxu1 %v1068_v61  ;;  %v1132_v61 = vld [vmem:[#allocation5 + $0x368] sm:$0xff] }
 0x191   : > { %1597 = vmatmul.mubr.f32.gmra.mrb[20].mxu0 %v1065_v9  ;;  %v1129_v9 = vld [vmem:[#allocation5 + $0x350] sm:$0xff] }
 0x192   : > { %1602 = vmatprep.mubr.f32.mxu0 %v1070_v50  ;;  %v1134_v50 = vld [vmem:[#allocation5 + $0x378] sm:$0xff] }
 0x193   : > { %1346 = vmatmul.mubr.f32.gmra.mrb[22].mxu1 %v1067_v39  ;;  %v1131_v39 = vld [vmem:[#allocation5 + $0x360] sm:$0xff] }
 0x194   : > { %1351 = vmatprep.mubr.f32.mxu1 %v1072_v33  ;;  %v1136_v33 = vld [vmem:[#allocation5 + $0x388] sm:$0xff] }
 0x195   : > { %1603 = vmatmul.mubr.f32.gmra.mrb[22].mxu0 %v1069_v34  ;;  %v1133_v34 = vld [vmem:[#allocation5 + $0x370] sm:$0xff] }
 0x196   : > { %1608 = vmatprep.mubr.f32.mxu0 %v1074_v41  ;;  %v1138_v41 = vld [vmem:[#allocation5 + $0x398] sm:$0xff] }
 0x197   : > { %1352 = vmatmul.mubr.f32.gmra.mrb[24].mxu1 %v1071_v23  ;;  %v1135_v23 = vld [vmem:[#allocation5 + $0x380] sm:$0xff] }
 0x198   : > { %1357 = vmatprep.mubr.f32.mxu1 %v1076_v57  ;;  %v1140_v57 = vld [vmem:[#allocation5 + $0x3a8] sm:$0xff] }
 0x199   : > { %1609 = vmatmul.mubr.f32.gmra.mrb[24].mxu0 %v1073_v26  ;;  %v1137_v26 = vld [vmem:[#allocation5 + $0x390] sm:$0xff] }
 0x19a   : > { %1614 = vmatprep.mubr.f32.mxu0 %v1078_v29  ;;  %v1142_v29 = vld [vmem:[#allocation5 + $0x3b8] sm:$0xff] }
 0x19b   : > { %1358 = vmatmul.mubr.f32.gmra.mrb[26].mxu1 %v1075_v42  ;;  %v1139_v42 = vld [vmem:[#allocation5 + $0x3a0] sm:$0xff] }
 0x19c   : > { %1363 = vmatprep.mubr.f32.mxu1 %v1080_v20  ;;  %v1144_v20 = vld [vmem:[#allocation5 + $0x3c8] sm:$0xff] }
 0x19d   : > { %1615 = vmatmul.mubr.f32.gmra.mrb[26].mxu0 %v1077_v47  ;;  %v1141_v47 = vld [vmem:[#allocation5 + $0x3b0] sm:$0xff] }
 0x19e   : > { %1620 = vmatprep.mubr.f32.mxu0 %v1082_v15  ;;  %v1146_v15 = vld [vmem:[#allocation5 + $0x3d8] sm:$0xff] }
 0x19f   : > { %1364 = vmatmul.mubr.f32.gmra.mrb[28].mxu1 %v1079_v17  ;;  %v1143_v17 = vld [vmem:[#allocation5 + $0x3c0] sm:$0xff] }
 0x1a0   : > { %1369 = vmatprep.mubr.f32.mxu1 %v1084_v11  ;;  %v1148_v11 = vld [vmem:[#allocation5 + $0x3e8] sm:$0xff] }
 0x1a1   : > { %1621 = vmatmul.mubr.f32.gmra.mrb[28].mxu0 %v1081_v28  ;;  %v1145_v28 = vld [vmem:[#allocation5 + $0x3d0] sm:$0xff] }
 0x1a2   : > { %1626 = vmatprep.mubr.f32.mxu0 %v1086_v12  ;;  %v1150_v12 = vld [vmem:[#allocation5 + $0x3f8] sm:$0xff] }
 0x1a3   : > { %1370 = vmatmul.mubr.f32.gmra.mrb[30].mxu1 %v1083_v40  ;;  %v1147_v40 = vld [vmem:[#allocation5 + $0x3e0] sm:$0xff] }
 0x1a4   : > { %1375 = vmatprep.mubr.f32.mxu1 %v1088_v27  ;;  %v1151_v27 = vld [vmem:[#allocation7] sm:$0xff] }
 0x1a5   : > { %1627 = vmatmul.mubr.f32.gmra.mrb[30].mxu0 %v1085_v25  ;;  %v1149_v25 = vld [vmem:[#allocation5 + $0x3f0] sm:$0xff] }
 0x1a6   : > { %1632 = vmatprep.mubr.f32.mxu0 %v1090_v13  ;;  %v1152_v13 = vld [vmem:[#allocation7 + $0x8] sm:$0xff] }
 0x1a7   : > { %1376 = vmatmul.mubr.f32.gmra.mrb[32].mxu1 %v1087_v58 }
 0x1a8   : > { %1381 = vmatprep.mubr.f32.mxu1 %v1092_v22 }
 0x1a9   : > { %1633 = vmatmul.mubr.f32.gmra.mrb[32].mxu0 %v1089_v32 }
 0x1aa   : > { %1638 = vmatprep.mubr.f32.mxu0 %v1094_v30 }
 0x1ab   : > { %1382 = vmatmul.mubr.f32.gmra.mrb[34].mxu1 %v1091_v14 }
 0x1ac   : > { %1387 = vmatprep.mubr.f32.mxu1 %v1096_v46  ;;  %v1153_v46 = vld [vmem:[#allocation7 + $0x10] sm:$0xff] }
 0x1ad   : > { %1639 = vmatmul.mubr.f32.gmra.mrb[34].mxu0 %v1093_v16 }
 0x1ae   : > { %1644 = vmatprep.mubr.f32.mxu0 %v1098_v44 }
 0x1af   : > { %1388 = vmatmul.mubr.f32.gmra.mrb[36].mxu1 %v1095_v52  ;;  %v1154_v52 = vld [vmem:[#allocation7 + $0x18] sm:$0xff] }
 0x1b0   : > { %1393 = vmatprep.mubr.f32.mxu1 %v1100_v35 }
 0x1b1   : > { %1645 = vmatmul.mubr.f32.gmra.mrb[36].mxu0 %v1097_v48 }
 0x1b2   : > { %1650 = vmatprep.mubr.f32.mxu0 %v1102_v10 }
 0x1b3   : > { %1394 = vmatmul.mubr.f32.gmra.mrb[38].mxu1 %v1099_v56 }
 0x1b4   : > { %1399 = vmatprep.mubr.f32.mxu1 %v1104_v7 }
 0x1b5   : > { %1651 = vmatmul.mubr.f32.gmra.mrb[38].mxu0 %v1101_v36 }
 0x1b6   : > { %1656 = vmatprep.mubr.f32.mxu0 %v1106_v55 }
 0x1b7   : > { %1400 = vmatmul.mubr.f32.gmra.mrb[40].mxu1 %v1103_v37  ;;  %v1155_v37 = vld [vmem:[#allocation7 + $0x20] sm:$0xff] }
 0x1b8   : > { %1405 = vmatprep.mubr.f32.mxu1 %v1108_v53  ;;  %v1156_v53 = vld [vmem:[#allocation7 + $0x28] sm:$0xff] }
 0x1b9   : > { %1657 = vmatmul.mubr.f32.gmra.mrb[40].mxu0 %v1105_v45 }
 0x1ba   : > { %1662 = vmatprep.mubr.f32.mxu0 %v1110_v21 }
 0x1bb   : > { %1406 = vmatmul.mubr.f32.gmra.mrb[42].mxu1 %v1107_v3 }
 0x1bc   : > { %1411 = vmatprep.mubr.f32.mxu1 %v1112_v38 }
 0x1bd   : > { %1663 = vmatmul.mubr.f32.gmra.mrb[42].mxu0 %v1109_v6 }
 0x1be   : > { %1668 = vmatprep.mubr.f32.mxu0 %v1114_v60 }
 0x1bf   : > { %1412 = vmatmul.mubr.f32.gmra.mrb[44].mxu1 %v1111_v54 }
 0x1c0   : > { %1417 = vmatprep.mubr.f32.mxu1 %v1116_v5  ;;  %v1157_v5 = vld [vmem:[#allocation7 + $0x30] sm:$0xff] }
 0x1c1   : > { %1669 = vmatmul.mubr.f32.gmra.mrb[44].mxu0 %v1113_v43 }
 0x1c2   : > { %1674 = vmatprep.mubr.f32.mxu0 %v1118_v4 }
 0x1c3   : > { %1418 = vmatmul.mubr.f32.gmra.mrb[46].mxu1 %v1115_v1  ;;  %v1158_v1 = vld [vmem:[#allocation7 + $0x38] sm:$0xff] }
 0x1c4   : > { %1423 = vmatprep.mubr.f32.mxu1 %v1120_v18 }
 0x1c5   : > { %1675 = vmatmul.mubr.f32.gmra.mrb[46].mxu0 %v1117_v19 }
 0x1c6   : > { %1680 = vmatprep.mubr.f32.mxu0 %v1122_v62 }
 0x1c7   : > { %1424 = vmatmul.mubr.f32.gmra.mrb[48].mxu1 %v1119_v63 }
 0x1c8   : > { %1429 = vmatprep.mubr.f32.mxu1 %v1124_v51 }
 0x1c9   : > { %1681 = vmatmul.mubr.f32.gmra.mrb[48].mxu0 %v1121_v31 }
 0x1ca   : > { %1686 = vmatprep.mubr.f32.mxu0 %v1126_v2 }
 0x1cb   : > { %1430 = vmatmul.mubr.f32.gmra.mrb[50].mxu1 %v1123_v59  ;;  %v1159_v59 = vld [vmem:[#allocation7 + $0x40] sm:$0xff] }
 0x1cc   : > { %1435 = vmatprep.mubr.f32.mxu1 %v1128_v24  ;;  %v1160_v24 = vld [vmem:[#allocation7 + $0x48] sm:$0xff] }
 0x1cd   : > { %1687 = vmatmul.mubr.f32.gmra.mrb[50].mxu0 %v1125_v8 }
 0x1ce   : > { %1692 = vmatprep.mubr.f32.mxu0 %v1130_v49 }
 0x1cf   : > { %1436 = vmatmul.mubr.f32.gmra.mrb[52].mxu1 %v1127_v0 }
 0x1d0   : > { %1441 = vmatprep.mubr.f32.mxu1 %v1132_v61 }
 0x1d1   : > { %1693 = vmatmul.mubr.f32.gmra.mrb[52].mxu0 %v1129_v9 }
 0x1d2   : > { %1698 = vmatprep.mubr.f32.mxu0 %v1134_v50 }
 0x1d3   : > { %1442 = vmatmul.mubr.f32.gmra.mrb[54].mxu1 %v1131_v39 }
 0x1d4   : > { %1447 = vmatprep.mubr.f32.mxu1 %v1136_v33  ;;  %v1161_v33 = vld [vmem:[#allocation7 + $0x50] sm:$0xff] }
 0x1d5   : > { %1699 = vmatmul.mubr.f32.gmra.mrb[54].mxu0 %v1133_v34 }
 0x1d6   : > { %1704 = vmatprep.mubr.f32.mxu0 %v1138_v41 }
 0x1d7   : > { %1448 = vmatmul.mubr.f32.gmra.mrb[56].mxu1 %v1135_v23  ;;  %v1162_v23 = vld [vmem:[#allocation7 + $0x58] sm:$0xff] }
 0x1d8   : > { %1453 = vmatprep.mubr.f32.mxu1 %v1140_v57 }
 0x1d9   : > { %1705 = vmatmul.mubr.f32.gmra.mrb[56].mxu0 %v1137_v26 }
 0x1da   : > { %1710 = vmatprep.mubr.f32.mxu0 %v1142_v29 }
 0x1db   : > { %1454 = vmatmul.mubr.f32.gmra.mrb[58].mxu1 %v1139_v42 }
 0x1dc   : > { %1459 = vmatprep.mubr.f32.mxu1 %v1144_v20 }
 0x1dd   : > { %1711 = vmatmul.mubr.f32.gmra.mrb[58].mxu0 %v1141_v47 }
 0x1de   : > { %1716 = vmatprep.mubr.f32.mxu0 %v1146_v15 }
 0x1df   : > { %1460 = vmatmul.mubr.f32.gmra.mrb[60].mxu1 %v1143_v17  ;;  %v1163_v17 = vld [vmem:[#allocation7 + $0x60] sm:$0xff] }
 0x1e0   : > { %1465 = vmatprep.mubr.f32.mxu1 %v1148_v11  ;;  %v1164_v11 = vld [vmem:[#allocation7 + $0x68] sm:$0xff] }
 0x1e1   : > { %1717 = vmatmul.mubr.f32.gmra.mrb[60].mxu0 %v1145_v28 }
 0x1e2   : > { %1722 = vmatprep.mubr.f32.mxu0 %v1150_v12 }
 0x1e3   : > { %1466 = vmatmul.mubr.f32.gmra.mrb[62].mxu1 %v1147_v40 }
 0x1e5   : > { %1723 = vmatmul.mubr.f32.gmra.mrb[62].mxu0 %v1149_v25 }
 0x23a   : > { %v1281_v58 = vpop.f32.mrb[0].mxu1 }
 0x23b   : > { %v1282_v22 = vadd.f32 %v1281_v58, %v1151_v27  ;;  %v1283_v30 = vpop.f32.mrb[1].mxu1 }
 0x23c   : > { %v1538_v32 = vpop.f32.mrb[0].mxu0  ;;  %v1284_v16 = vadd.f32 %v1283_v30, %v1152_v13 }
 0x23d   : > { %v1540_v14 = vpop.f32.mrb[1].mxu0  ;;  %v1539_v44 = vadd.f32 %v1538_v32, %v1282_v22  ;;  %v1165_v22 = vld [vmem:[#allocation7 + $0x70] sm:$0xff] }
 0x23e   : > { %v1541_v48 = vadd.f32 %v1540_v14, %v1284_v16  ;;  %v1287_v35 = vpop.f32.mrb[2].mxu1  ;;  %v1166_v14 = vld [vmem:[#allocation7 + $0x78] sm:$0xff] }
 0x23f   : > { %1729 = vst [vmem:[%s4397_s23] sm:$0xff] %v1539_v44  ;;  %v1288_v56 = vadd.f32 %v1287_v35, %v1153_v46  ;;  %v1289_v36 = vpop.f32.mrb[3].mxu1 }
 0x240   : > { %v1544_v10 = vpop.f32.mrb[2].mxu0  ;;  %1730 = vst [vmem:[%s4397_s23 + $0x8] sm:$0xff] %v1541_v48  ;;  %v1290_v55 = vadd.f32 %v1289_v36, %v1154_v52 }
 0x241   : > { %v1546_v7 = vpop.f32.mrb[3].mxu0  ;;  %v1545_v45 = vadd.f32 %v1544_v10, %v1288_v56  ;;  %v1167_v56 = vld [vmem:[#allocation7 + $0x80] sm:$0xff] }
 0x242   : > { %v1547_v21 = vadd.f32 %v1546_v7, %v1290_v55  ;;  %v1293_v3 = vpop.f32.mrb[4].mxu1  ;;  %v1168_v7 = vld [vmem:[#allocation7 + $0x88] sm:$0xff] }
 0x243   : > { %1731 = vst [vmem:[%s4397_s23 + $0x10] sm:$0xff] %v1545_v45  ;;  %v1294_v38 = vadd.f32 %v1293_v3, %v1155_v37  ;;  %v1295_v60 = vpop.f32.mrb[5].mxu1 }
 0x244   : > { %v1550_v6 = vpop.f32.mrb[4].mxu0  ;;  %1732 = vst [vmem:[%s4397_s23 + $0x18] sm:$0xff] %v1547_v21  ;;  %v1296_v43 = vadd.f32 %v1295_v60, %v1156_v53 }
 0x245   : > { %v1552_v54 = vpop.f32.mrb[5].mxu0  ;;  %v1551_v4 = vadd.f32 %v1550_v6, %v1294_v38  ;;  %v1169_v38 = vld [vmem:[#allocation7 + $0x90] sm:$0xff] }
 0x246   : > { %v1553_v19 = vadd.f32 %v1552_v54, %v1296_v43  ;;  %v1299_v18 = vpop.f32.mrb[6].mxu1  ;;  %v1170_v54 = vld [vmem:[#allocation7 + $0x98] sm:$0xff] }
 0x247   : > { %1733 = vst [vmem:[%s4397_s23 + $0x20] sm:$0xff] %v1551_v4  ;;  %v1300_v63 = vadd.f32 %v1299_v18, %v1157_v5  ;;  %v1301_v31 = vpop.f32.mrb[7].mxu1 }
 0x248   : > { %v1556_v62 = vpop.f32.mrb[6].mxu0  ;;  %1734 = vst [vmem:[%s4397_s23 + $0x28] sm:$0xff] %v1553_v19  ;;  %v1302_v2 = vadd.f32 %v1301_v31, %v1158_v1 }
 0x249   : > { %v1558_v51 = vpop.f32.mrb[7].mxu0  ;;  %v1557_v8 = vadd.f32 %v1556_v62, %v1300_v63  ;;  %v1171_v63 = vld [vmem:[#allocation7 + $0xa0] sm:$0xff] }
 0x24a   : > { %v1559_v49 = vadd.f32 %v1558_v51, %v1302_v2  ;;  %v1305_v0 = vpop.f32.mrb[8].mxu1  ;;  %v1172_v51 = vld [vmem:[#allocation7 + $0xa8] sm:$0xff] }
 0x24b   : > { %1735 = vst [vmem:[%s4397_s23 + $0x30] sm:$0xff] %v1557_v8  ;;  %v1306_v61 = vadd.f32 %v1305_v0, %v1159_v59  ;;  %v1307_v50 = vpop.f32.mrb[9].mxu1 }
 0x24c   : > { %v1562_v9 = vpop.f32.mrb[8].mxu0  ;;  %1736 = vst [vmem:[%s4397_s23 + $0x38] sm:$0xff] %v1559_v49  ;;  %v1308_v34 = vadd.f32 %v1307_v50, %v1160_v24 }
 0x24d   : > { %v1564_v39 = vpop.f32.mrb[9].mxu0  ;;  %v1563_v41 = vadd.f32 %v1562_v9, %v1306_v61  ;;  %v1173_v61 = vld [vmem:[#allocation7 + $0xb0] sm:$0xff] }
 0x24e   : > { %v1565_v26 = vadd.f32 %v1564_v39, %v1308_v34  ;;  %v1311_v57 = vpop.f32.mrb[10].mxu1  ;;  %v1174_v39 = vld [vmem:[#allocation7 + $0xb8] sm:$0xff] }
 0x24f   : > { %1737 = vst [vmem:[%s4397_s23 + $0x40] sm:$0xff] %v1563_v41  ;;  %v1312_v42 = vadd.f32 %v1311_v57, %v1161_v33  ;;  %v1313_v47 = vpop.f32.mrb[11].mxu1 }
 0x250   : > { %v1568_v29 = vpop.f32.mrb[10].mxu0  ;;  %1738 = vst [vmem:[%s4397_s23 + $0x48] sm:$0xff] %v1565_v26  ;;  %v1314_v15 = vadd.f32 %v1313_v47, %v1162_v23 }
 0x251   : > { %v1570_v20 = vpop.f32.mrb[11].mxu0  ;;  %v1569_v28 = vadd.f32 %v1568_v29, %v1312_v42  ;;  %v1175_v42 = vld [vmem:[#allocation7 + $0xc0] sm:$0xff] }
 0x252   : > { %v1571_v12 = vadd.f32 %v1570_v20, %v1314_v15  ;;  %v1317_v40 = vpop.f32.mrb[12].mxu1  ;;  %v1176_v20 = vld [vmem:[#allocation7 + $0xc8] sm:$0xff] }
 0x253   : > { %1739 = vst [vmem:[%s4397_s23 + $0x50] sm:$0xff] %v1569_v28  ;;  %v1318_v27 = vadd.f32 %v1317_v40, %v1163_v17  ;;  %v1319_v13 = vpop.f32.mrb[13].mxu1 }
 0x254   : > { %v1574_v25 = vpop.f32.mrb[12].mxu0  ;;  %1740 = vst [vmem:[%s4397_s23 + $0x58] sm:$0xff] %v1571_v12  ;;  %v1320_v32 = vadd.f32 %v1319_v13, %v1164_v11 }
 0x255   : > { %v1576_v58 = vpop.f32.mrb[13].mxu0  ;;  %v1575_v30 = vadd.f32 %v1574_v25, %v1318_v27  ;;  %v1177_v27 = vld [vmem:[#allocation7 + $0xd0] sm:$0xff] }
 0x256   : > { %v1577_v16 = vadd.f32 %v1576_v58, %v1320_v32  ;;  %v1323_v46 = vpop.f32.mrb[14].mxu1  ;;  %v1178_v58 = vld [vmem:[#allocation7 + $0xd8] sm:$0xff] }
 0x257   : > { %1741 = vst [vmem:[%s4397_s23 + $0x60] sm:$0xff] %v1575_v30  ;;  %v1324_v52 = vadd.f32 %v1323_v46, %v1165_v22  ;;  %v1325_v48 = vpop.f32.mrb[15].mxu1 }
 0x258   : > { %v1580_v44 = vpop.f32.mrb[14].mxu0  ;;  %1742 = vst [vmem:[%s4397_s23 + $0x68] sm:$0xff] %v1577_v16  ;;  %v1326_v10 = vadd.f32 %v1325_v48, %v1166_v14 }
 0x259   : > { %v1582_v35 = vpop.f32.mrb[15].mxu0  ;;  %v1581_v36 = vadd.f32 %v1580_v44, %v1324_v52  ;;  %v1179_v52 = vld [vmem:[#allocation7 + $0xe0] sm:$0xff] }
 0x25a   : > { %v1583_v55 = vadd.f32 %v1582_v35, %v1326_v10  ;;  %v1329_v37 = vpop.f32.mrb[16].mxu1  ;;  %v1180_v35 = vld [vmem:[#allocation7 + $0xe8] sm:$0xff] }
 0x25b   : > { %1743 = vst [vmem:[%s4397_s23 + $0x70] sm:$0xff] %v1581_v36  ;;  %v1330_v53 = vadd.f32 %v1329_v37, %v1167_v56  ;;  %v1331_v21 = vpop.f32.mrb[17].mxu1 }
 0x25c   : > { %v1586_v45 = vpop.f32.mrb[16].mxu0  ;;  %1744 = vst [vmem:[%s4397_s23 + $0x78] sm:$0xff] %v1583_v55  ;;  %v1332_v6 = vadd.f32 %v1331_v21, %v1168_v7 }
 0x25d   : > { %v1588_v3 = vpop.f32.mrb[17].mxu0  ;;  %v1587_v60 = vadd.f32 %v1586_v45, %v1330_v53  ;;  %v1181_v53 = vld [vmem:[#allocation7 + $0xf0] sm:$0xff] }
 0x25e   : > { %v1589_v43 = vadd.f32 %v1588_v3, %v1332_v6  ;;  %v1335_v5 = vpop.f32.mrb[18].mxu1  ;;  %v1182_v3 = vld [vmem:[#allocation7 + $0xf8] sm:$0xff] }
 0x25f   : > { %1745 = vst [vmem:[%s4397_s23 + $0x80] sm:$0xff] %v1587_v60  ;;  %v1336_v1 = vadd.f32 %v1335_v5, %v1169_v38  ;;  %v1337_v19 = vpop.f32.mrb[19].mxu1 }
 0x260   : > { %v1592_v4 = vpop.f32.mrb[18].mxu0  ;;  %1746 = vst [vmem:[%s4397_s23 + $0x88] sm:$0xff] %v1589_v43  ;;  %v1338_v62 = vadd.f32 %v1337_v19, %v1170_v54 }
 0x261   : > { %v1594_v18 = vpop.f32.mrb[19].mxu0  ;;  %v1593_v31 = vadd.f32 %v1592_v4, %v1336_v1  ;;  %v1183_v1 = vld [vmem:[#allocation7 + $0x100] sm:$0xff] }
 0x262   : > { %v1595_v2 = vadd.f32 %v1594_v18, %v1338_v62  ;;  %v1341_v59 = vpop.f32.mrb[20].mxu1  ;;  %v1184_v18 = vld [vmem:[#allocation7 + $0x108] sm:$0xff] }
 0x263   : > { %1747 = vst [vmem:[%s4397_s23 + $0x90] sm:$0xff] %v1593_v31  ;;  %v1342_v24 = vadd.f32 %v1341_v59, %v1171_v63  ;;  %v1343_v49 = vpop.f32.mrb[21].mxu1 }
 0x264   : > { %v1598_v8 = vpop.f32.mrb[20].mxu0  ;;  %1748 = vst [vmem:[%s4397_s23 + $0x98] sm:$0xff] %v1595_v2  ;;  %v1344_v9 = vadd.f32 %v1343_v49, %v1172_v51 }
 0x265   : > { %v1600_v0 = vpop.f32.mrb[21].mxu0  ;;  %v1599_v50 = vadd.f32 %v1598_v8, %v1342_v24  ;;  %v1185_v24 = vld [vmem:[#allocation7 + $0x110] sm:$0xff] }
 0x266   : > { %v1601_v34 = vadd.f32 %v1600_v0, %v1344_v9  ;;  %v1347_v33 = vpop.f32.mrb[22].mxu1  ;;  %v1186_v0 = vld [vmem:[#allocation7 + $0x118] sm:$0xff] }
 0x267   : > { %1749 = vst [vmem:[%s4397_s23 + $0xa0] sm:$0xff] %v1599_v50  ;;  %v1348_v23 = vadd.f32 %v1347_v33, %v1173_v61  ;;  %v1349_v26 = vpop.f32.mrb[23].mxu1 }
 0x268   : > { %v1604_v41 = vpop.f32.mrb[22].mxu0  ;;  %1750 = vst [vmem:[%s4397_s23 + $0xa8] sm:$0xff] %v1601_v34  ;;  %v1350_v29 = vadd.f32 %v1349_v26, %v1174_v39 }
 0x269   : > { %v1606_v57 = vpop.f32.mrb[23].mxu0  ;;  %v1605_v47 = vadd.f32 %v1604_v41, %v1348_v23  ;;  %v1187_v23 = vld [vmem:[#allocation7 + $0x120] sm:$0xff] }
 0x26a   : > { %v1607_v15 = vadd.f32 %v1606_v57, %v1350_v29  ;;  %v1353_v17 = vpop.f32.mrb[24].mxu1  ;;  %v1188_v57 = vld [vmem:[#allocation7 + $0x128] sm:$0xff] }
 0x26b   : > { %1751 = vst [vmem:[%s4397_s23 + $0xb0] sm:$0xff] %v1605_v47  ;;  %v1354_v11 = vadd.f32 %v1353_v17, %v1175_v42  ;;  %v1355_v12 = vpop.f32.mrb[25].mxu1 }
 0x26c   : > { %v1610_v28 = vpop.f32.mrb[24].mxu0  ;;  %1752 = vst [vmem:[%s4397_s23 + $0xb8] sm:$0xff] %v1607_v15  ;;  %v1356_v25 = vadd.f32 %v1355_v12, %v1176_v20 }
 0x26d   : > { %v1612_v40 = vpop.f32.mrb[25].mxu0  ;;  %v1611_v13 = vadd.f32 %v1610_v28, %v1354_v11  ;;  %v1189_v11 = vld [vmem:[#allocation7 + $0x130] sm:$0xff] }
 0x26e   : > { %v1613_v32 = vadd.f32 %v1612_v40, %v1356_v25  ;;  %v1359_v22 = vpop.f32.mrb[26].mxu1  ;;  %v1190_v40 = vld [vmem:[#allocation7 + $0x138] sm:$0xff] }
 0x26f   : > { %1753 = vst [vmem:[%s4397_s23 + $0xc0] sm:$0xff] %v1611_v13  ;;  %v1360_v14 = vadd.f32 %v1359_v22, %v1177_v27  ;;  %v1361_v16 = vpop.f32.mrb[27].mxu1 }
 0x270   : > { %v1616_v30 = vpop.f32.mrb[26].mxu0  ;;  %1754 = vst [vmem:[%s4397_s23 + $0xc8] sm:$0xff] %v1613_v32  ;;  %v1362_v44 = vadd.f32 %v1361_v16, %v1178_v58 }
 0x271   : > { %v1618_v46 = vpop.f32.mrb[27].mxu0  ;;  %v1617_v48 = vadd.f32 %v1616_v30, %v1360_v14  ;;  %v1191_v14 = vld [vmem:[#allocation7 + $0x140] sm:$0xff] }
 0x272   : > { %v1619_v10 = vadd.f32 %v1618_v46, %v1362_v44  ;;  %v1365_v56 = vpop.f32.mrb[28].mxu1  ;;  %v1192_v46 = vld [vmem:[#allocation7 + $0x148] sm:$0xff] }
 0x273   : > { %1755 = vst [vmem:[%s4397_s23 + $0xd0] sm:$0xff] %v1617_v48  ;;  %v1366_v7 = vadd.f32 %v1365_v56, %v1179_v52  ;;  %v1367_v55 = vpop.f32.mrb[29].mxu1 }
 0x274   : > { %v1622_v36 = vpop.f32.mrb[28].mxu0  ;;  %1756 = vst [vmem:[%s4397_s23 + $0xd8] sm:$0xff] %v1619_v10  ;;  %v1368_v45 = vadd.f32 %v1367_v55, %v1180_v35 }
 0x275   : > { %v1624_v37 = vpop.f32.mrb[29].mxu0  ;;  %v1623_v21 = vadd.f32 %v1622_v36, %v1366_v7  ;;  %v1193_v7 = vld [vmem:[#allocation7 + $0x150] sm:$0xff] }
 0x276   : > { %v1625_v6 = vadd.f32 %v1624_v37, %v1368_v45  ;;  %v1371_v38 = vpop.f32.mrb[30].mxu1  ;;  %v1194_v37 = vld [vmem:[#allocation7 + $0x158] sm:$0xff] }
 0x277   : > { %1757 = vst [vmem:[%s4397_s23 + $0xe0] sm:$0xff] %v1623_v21  ;;  %v1372_v54 = vadd.f32 %v1371_v38, %v1181_v53  ;;  %v1373_v43 = vpop.f32.mrb[31].mxu1 }
 0x278   : > { %v1628_v60 = vpop.f32.mrb[30].mxu0  ;;  %1758 = vst [vmem:[%s4397_s23 + $0xe8] sm:$0xff] %v1625_v6  ;;  %v1374_v4 = vadd.f32 %v1373_v43, %v1182_v3 }
 0x279   : > { %v1630_v5 = vpop.f32.mrb[31].mxu0  ;;  %v1629_v19 = vadd.f32 %v1628_v60, %v1372_v54  ;;  %v1195_v54 = vld [vmem:[#allocation7 + $0x160] sm:$0xff] }
 0x27a   : > { %v1631_v62 = vadd.f32 %v1630_v5, %v1374_v4  ;;  %v1377_v63 = vpop.f32.mrb[32].mxu1  ;;  %v1196_v5 = vld [vmem:[#allocation7 + $0x168] sm:$0xff] }
 0x27b   : > { %1759 = vst [vmem:[%s4397_s23 + $0xf0] sm:$0xff] %v1629_v19  ;;  %v1378_v51 = vadd.f32 %v1377_v63, %v1183_v1  ;;  %v1379_v2 = vpop.f32.mrb[33].mxu1 }
 0x27c   : > { %v1634_v31 = vpop.f32.mrb[32].mxu0  ;;  %1760 = vst [vmem:[%s4397_s23 + $0xf8] sm:$0xff] %v1631_v62  ;;  %v1380_v8 = vadd.f32 %v1379_v2, %v1184_v18 }
 0x27d   : > { %v1636_v59 = vpop.f32.mrb[33].mxu0  ;;  %v1635_v49 = vadd.f32 %v1634_v31, %v1378_v51  ;;  %v1197_v51 = vld [vmem:[#allocation7 + $0x170] sm:$0xff] }
 0x27e   : > { %v1637_v9 = vadd.f32 %v1636_v59, %v1380_v8  ;;  %v1383_v61 = vpop.f32.mrb[34].mxu1  ;;  %v1198_v59 = vld [vmem:[#allocation7 + $0x178] sm:$0xff] }
 0x27f   : > { %1761 = vst [vmem:[%s4397_s23 + $0x100] sm:$0xff] %v1635_v49  ;;  %v1384_v39 = vadd.f32 %v1383_v61, %v1185_v24  ;;  %v1385_v34 = vpop.f32.mrb[35].mxu1 }
 0x280   : > { %v1640_v50 = vpop.f32.mrb[34].mxu0  ;;  %1762 = vst [vmem:[%s4397_s23 + $0x108] sm:$0xff] %v1637_v9  ;;  %v1386_v41 = vadd.f32 %v1385_v34, %v1186_v0 }
 0x281   : > { %v1642_v33 = vpop.f32.mrb[35].mxu0  ;;  %v1641_v26 = vadd.f32 %v1640_v50, %v1384_v39  ;;  %v1199_v39 = vld [vmem:[#allocation7 + $0x180] sm:$0xff] }
 0x282   : > { %v1643_v29 = vadd.f32 %v1642_v33, %v1386_v41  ;;  %v1389_v42 = vpop.f32.mrb[36].mxu1  ;;  %v1200_v33 = vld [vmem:[#allocation7 + $0x188] sm:$0xff] }
 0x283   : > { %1763 = vst [vmem:[%s4397_s23 + $0x110] sm:$0xff] %v1641_v26  ;;  %v1390_v20 = vadd.f32 %v1389_v42, %v1187_v23  ;;  %v1391_v15 = vpop.f32.mrb[37].mxu1 }
 0x284   : > { %v1646_v47 = vpop.f32.mrb[36].mxu0  ;;  %1764 = vst [vmem:[%s4397_s23 + $0x118] sm:$0xff] %v1643_v29  ;;  %v1392_v28 = vadd.f32 %v1391_v15, %v1188_v57 }
 0x285   : > { %v1648_v17 = vpop.f32.mrb[37].mxu0  ;;  %v1647_v12 = vadd.f32 %v1646_v47, %v1390_v20  ;;  %v1201_v20 = vld [vmem:[#allocation7 + $0x190] sm:$0xff] }
 0x286   : > { %v1649_v25 = vadd.f32 %v1648_v17, %v1392_v28  ;;  %v1395_v27 = vpop.f32.mrb[38].mxu1  ;;  %v1202_v17 = vld [vmem:[#allocation7 + $0x198] sm:$0xff] }
 0x287   : > { %1765 = vst [vmem:[%s4397_s23 + $0x120] sm:$0xff] %v1647_v12  ;;  %v1396_v58 = vadd.f32 %v1395_v27, %v1189_v11  ;;  %v1397_v32 = vpop.f32.mrb[39].mxu1 }
 0x288   : > { %v1652_v13 = vpop.f32.mrb[38].mxu0  ;;  %1766 = vst [vmem:[%s4397_s23 + $0x128] sm:$0xff] %v1649_v25  ;;  %v1398_v30 = vadd.f32 %v1397_v32, %v1190_v40 }
 0x289   : > { %v1654_v22 = vpop.f32.mrb[39].mxu0  ;;  %v1653_v16 = vadd.f32 %v1652_v13, %v1396_v58  ;;  %v1203_v58 = vld [vmem:[#allocation7 + $0x1a0] sm:$0xff] }
 0x28a   : > { %v1655_v44 = vadd.f32 %v1654_v22, %v1398_v30  ;;  %v1401_v52 = vpop.f32.mrb[40].mxu1  ;;  %v1204_v22 = vld [vmem:[#allocation7 + $0x1a8] sm:$0xff] }
 0x28b   : > { %1767 = vst [vmem:[%s4397_s23 + $0x130] sm:$0xff] %v1653_v16  ;;  %v1402_v35 = vadd.f32 %v1401_v52, %v1191_v14  ;;  %v1403_v10 = vpop.f32.mrb[41].mxu1 }
 0x28c   : > { %v1658_v48 = vpop.f32.mrb[40].mxu0  ;;  %1768 = vst [vmem:[%s4397_s23 + $0x138] sm:$0xff] %v1655_v44  ;;  %v1404_v36 = vadd.f32 %v1403_v10, %v1192_v46 }
 0x28d   : > { %v1660_v56 = vpop.f32.mrb[41].mxu0  ;;  %v1659_v55 = vadd.f32 %v1658_v48, %v1402_v35  ;;  %v1205_v35 = vld [vmem:[#allocation7 + $0x1b0] sm:$0xff] }
 0x28e   : > { %v1661_v45 = vadd.f32 %v1660_v56, %v1404_v36  ;;  %v1407_v53 = vpop.f32.mrb[42].mxu1  ;;  %v1206_v56 = vld [vmem:[#allocation7 + $0x1b8] sm:$0xff] }
 0x28f   : > { %1769 = vst [vmem:[%s4397_s23 + $0x140] sm:$0xff] %v1659_v55  ;;  %v1408_v3 = vadd.f32 %v1407_v53, %v1193_v7  ;;  %v1409_v6 = vpop.f32.mrb[43].mxu1 }
 0x290   : > { %v1664_v21 = vpop.f32.mrb[42].mxu0  ;;  %1770 = vst [vmem:[%s4397_s23 + $0x148] sm:$0xff] %v1661_v45  ;;  %v1410_v60 = vadd.f32 %v1409_v6, %v1194_v37 }
 0x291   : > { %v1666_v38 = vpop.f32.mrb[43].mxu0  ;;  %v1665_v43 = vadd.f32 %v1664_v21, %v1408_v3  ;;  %v1207_v3 = vld [vmem:[#allocation7 + $0x1c0] sm:$0xff] }
 0x292   : > { %v1667_v4 = vadd.f32 %v1666_v38, %v1410_v60  ;;  %v1413_v1 = vpop.f32.mrb[44].mxu1  ;;  %v1208_v38 = vld [vmem:[#allocation7 + $0x1c8] sm:$0xff] }
 0x293   : > { %1771 = vst [vmem:[%s4397_s23 + $0x150] sm:$0xff] %v1665_v43  ;;  %v1414_v18 = vadd.f32 %v1413_v1, %v1195_v54  ;;  %v1415_v62 = vpop.f32.mrb[45].mxu1 }
 0x294   : > { %v1670_v19 = vpop.f32.mrb[44].mxu0  ;;  %1772 = vst [vmem:[%s4397_s23 + $0x158] sm:$0xff] %v1667_v4  ;;  %v1416_v31 = vadd.f32 %v1415_v62, %v1196_v5 }
 0x295   : > { %v1672_v63 = vpop.f32.mrb[45].mxu0  ;;  %v1671_v2 = vadd.f32 %v1670_v19, %v1414_v18  ;;  %v1209_v18 = vld [vmem:[#allocation7 + $0x1d0] sm:$0xff] }
 0x296   : > { %v1673_v8 = vadd.f32 %v1672_v63, %v1416_v31  ;;  %v1419_v24 = vpop.f32.mrb[46].mxu1  ;;  %v1210_v63 = vld [vmem:[#allocation7 + $0x1d8] sm:$0xff] }
 0x297   : > { %1773 = vst [vmem:[%s4397_s23 + $0x160] sm:$0xff] %v1671_v2  ;;  %v1420_v0 = vadd.f32 %v1419_v24, %v1197_v51  ;;  %v1421_v9 = vpop.f32.mrb[47].mxu1 }
 0x298   : > { %v1676_v49 = vpop.f32.mrb[46].mxu0  ;;  %1774 = vst [vmem:[%s4397_s23 + $0x168] sm:$0xff] %v1673_v8  ;;  %v1422_v50 = vadd.f32 %v1421_v9, %v1198_v59 }
 0x299   : > { %v1678_v61 = vpop.f32.mrb[47].mxu0  ;;  %v1677_v34 = vadd.f32 %v1676_v49, %v1420_v0  ;;  %v1211_v0 = vld [vmem:[#allocation7 + $0x1e0] sm:$0xff] }
 0x29a   : > { %v1679_v41 = vadd.f32 %v1678_v61, %v1422_v50  ;;  %v1425_v23 = vpop.f32.mrb[48].mxu1  ;;  %v1212_v61 = vld [vmem:[#allocation7 + $0x1e8] sm:$0xff] }
 0x29b   : > { %1775 = vst [vmem:[%s4397_s23 + $0x170] sm:$0xff] %v1677_v34  ;;  %v1426_v57 = vadd.f32 %v1425_v23, %v1199_v39  ;;  %v1427_v29 = vpop.f32.mrb[49].mxu1 }
 0x29c   : > { %v1682_v26 = vpop.f32.mrb[48].mxu0  ;;  %1776 = vst [vmem:[%s4397_s23 + $0x178] sm:$0xff] %v1679_v41  ;;  %v1428_v47 = vadd.f32 %v1427_v29, %v1200_v33 }
 0x29d   : > { %v1684_v42 = vpop.f32.mrb[49].mxu0  ;;  %v1683_v15 = vadd.f32 %v1682_v26, %v1426_v57  ;;  %v1213_v57 = vld [vmem:[#allocation7 + $0x1f0] sm:$0xff] }
 0x29e   : > { %v1685_v28 = vadd.f32 %v1684_v42, %v1428_v47  ;;  %v1431_v11 = vpop.f32.mrb[50].mxu1  ;;  %v1214_v42 = vld [vmem:[#allocation7 + $0x1f8] sm:$0xff] }
 0x29f   : > { %1777 = vst [vmem:[%s4397_s23 + $0x180] sm:$0xff] %v1683_v15  ;;  %v1432_v40 = vadd.f32 %v1431_v11, %v1201_v20  ;;  %v1433_v25 = vpop.f32.mrb[51].mxu1 }
 0x2a0   : > { %v1688_v12 = vpop.f32.mrb[50].mxu0  ;;  %1778 = vst [vmem:[%s4397_s23 + $0x188] sm:$0xff] %v1685_v28  ;;  %v1434_v13 = vadd.f32 %v1433_v25, %v1202_v17 }
 0x2a1   : > { %v1690_v27 = vpop.f32.mrb[51].mxu0  ;;  %v1689_v32 = vadd.f32 %v1688_v12, %v1432_v40 }
 0x2a2   : > { %v1691_v30 = vadd.f32 %v1690_v27, %v1434_v13  ;;  %v1437_v14 = vpop.f32.mrb[52].mxu1 }
 0x2a3   : > { %1779 = vst [vmem:[%s4397_s23 + $0x190] sm:$0xff] %v1689_v32  ;;  %v1438_v46 = vadd.f32 %v1437_v14, %v1203_v58  ;;  %v1439_v44 = vpop.f32.mrb[53].mxu1 }
 0x2a4   : > { %v1694_v16 = vpop.f32.mrb[52].mxu0  ;;  %1780 = vst [vmem:[%s4397_s23 + $0x198] sm:$0xff] %v1691_v30  ;;  %v1440_v48 = vadd.f32 %v1439_v44, %v1204_v22 }
 0x2a5   : > { %v1696_v52 = vpop.f32.mrb[53].mxu0  ;;  %v1695_v10 = vadd.f32 %v1694_v16, %v1438_v46 }
 0x2a6   : > { %v1697_v36 = vadd.f32 %v1696_v52, %v1440_v48  ;;  %v1443_v7 = vpop.f32.mrb[54].mxu1 }
 0x2a7   : > { %1781 = vst [vmem:[%s4397_s23 + $0x1a0] sm:$0xff] %v1695_v10  ;;  %v1444_v37 = vadd.f32 %v1443_v7, %v1205_v35  ;;  %v1445_v45 = vpop.f32.mrb[55].mxu1 }
 0x2a8   : > { %v1700_v55 = vpop.f32.mrb[54].mxu0  ;;  %1782 = vst [vmem:[%s4397_s23 + $0x1a8] sm:$0xff] %v1697_v36  ;;  %v1446_v21 = vadd.f32 %v1445_v45, %v1206_v56 }
 0x2a9   : > { %v1702_v53 = vpop.f32.mrb[55].mxu0  ;;  %v1701_v6 = vadd.f32 %v1700_v55, %v1444_v37 }
 0x2aa   : > { %v1703_v60 = vadd.f32 %v1702_v53, %v1446_v21  ;;  %v1449_v54 = vpop.f32.mrb[56].mxu1 }
 0x2ab   : > { %1783 = vst [vmem:[%s4397_s23 + $0x1b0] sm:$0xff] %v1701_v6  ;;  %v1450_v5 = vadd.f32 %v1449_v54, %v1207_v3  ;;  %v1451_v4 = vpop.f32.mrb[57].mxu1 }
 0x2ac   : > { %v1706_v43 = vpop.f32.mrb[56].mxu0  ;;  %1784 = vst [vmem:[%s4397_s23 + $0x1b8] sm:$0xff] %v1703_v60  ;;  %v1452_v19 = vadd.f32 %v1451_v4, %v1208_v38 }
 0x2ad   : > { %v1708_v1 = vpop.f32.mrb[57].mxu0  ;;  %v1707_v62 = vadd.f32 %v1706_v43, %v1450_v5 }
 0x2ae   : > { %v1709_v31 = vadd.f32 %v1708_v1, %v1452_v19  ;;  %v1455_v51 = vpop.f32.mrb[58].mxu1 }
 0x2af   : > { %1785 = vst [vmem:[%s4397_s23 + $0x1c0] sm:$0xff] %v1707_v62  ;;  %v1456_v59 = vadd.f32 %v1455_v51, %v1209_v18  ;;  %v1457_v8 = vpop.f32.mrb[59].mxu1 }
 0x2b0   : > { %v1712_v2 = vpop.f32.mrb[58].mxu0  ;;  %1786 = vst [vmem:[%s4397_s23 + $0x1c8] sm:$0xff] %v1709_v31  ;;  %v1458_v49 = vadd.f32 %v1457_v8, %v1210_v63 }
 0x2b1   : > { %v1714_v24 = vpop.f32.mrb[59].mxu0  ;;  %v1713_v9 = vadd.f32 %v1712_v2, %v1456_v59 }
 0x2b2   : > { %v1715_v50 = vadd.f32 %v1714_v24, %v1458_v49  ;;  %v1461_v39 = vpop.f32.mrb[60].mxu1 }
 0x2b3   : > { %1787 = vst [vmem:[%s4397_s23 + $0x1d0] sm:$0xff] %v1713_v9  ;;  %v1462_v33 = vadd.f32 %v1461_v39, %v1211_v0  ;;  %v1463_v41 = vpop.f32.mrb[61].mxu1 }
 0x2b4   : > { %v1718_v34 = vpop.f32.mrb[60].mxu0  ;;  %1788 = vst [vmem:[%s4397_s23 + $0x1d8] sm:$0xff] %v1715_v50  ;;  %v1464_v26 = vadd.f32 %v1463_v41, %v1212_v61 }
 0x2b5   : > { %v1720_v23 = vpop.f32.mrb[61].mxu0  ;;  %v1719_v29 = vadd.f32 %v1718_v34, %v1462_v33 }
 0x2b6   : > { %v1721_v47 = vadd.f32 %v1720_v23, %v1464_v26  ;;  %v1467_v20 = vpop.f32.mrb[62].mxu1 }
 0x2b7   : > { %1789 = vst [vmem:[%s4397_s23 + $0x1e0] sm:$0xff] %v1719_v29  ;;  %v1468_v17 = vadd.f32 %v1467_v20, %v1213_v57  ;;  %v1469_v28 = vpop.f32.mrb[63].mxu1 }
 0x2b8   : > { %v1724_v15 = vpop.f32.mrb[62].mxu0  ;;  %1790 = vst [vmem:[%s4397_s23 + $0x1e8] sm:$0xff] %v1721_v47  ;;  %v1470_v12 = vadd.f32 %v1469_v28, %v1214_v42 }
 0x2b9   : > { %v1726_v11 = vpop.f32.mrb[63].mxu0  ;;  %v1725_v40 = vadd.f32 %v1724_v15, %v1468_v17 }
 0x2ba   : > { %v1727_v25 = vadd.f32 %v1726_v11, %v1470_v12 }
 0x2bb   : > { %1791 = vst [vmem:[%s4397_s23 + $0x1f0] sm:$0xff] %v1725_v40 }
 0x2bc   : > { %1792 = vst [vmem:[%s4397_s23 + $0x1f8] sm:$0xff] %v1727_v25 }
 0x2bd   : > { %2468 = shalt.err (!%p2465_p5)
}
 0x2be   : > { %s2469_s30 = scalar_lea.hbm %s4467_s8, 8192  ;;  %s2473_s2 = scalar_lea.hbm %s4528_s3, 32768 }
 0x2bf   : > { %p2470_p0 = scmp.ne.s32.totalorder %s4467_s8, %s2469_s30  ;;  %p2474_p11 = scmp.lt.u32.totalorder %s4467_s8, %s4528_s3 }
 0x2c0   : > { %p2475_p1 = scmp.lt.u32.totalorder %s2473_s2, %s2469_s30  ;;  %p2477_p12 = scmp.lt.u32.totalorder %s2469_s30, %s4467_s8 }
 0x2c1   : > { %p2471_p4 = pnand %p2470_p0, %p4904_p13 }
 0x2c2   : > { %p2476_p2 = por %p2475_p1, %p2474_p11 }
 0x2c3   : > { %p2472_p10 = pneg %p2471_p4 }
 0x2c4   : > { %p2478_p3 = por %p2477_p12, %p2476_p2 }
 0x2c6   : > { %p2479_p7 = pnand %p2478_p3, %p2472_p10 }
 0x2c8   : > { %2482 = shalt.err (!%p2479_p7)
}
 0x2c9   : > { %s2567_s28 = smov 256   ;;  %s2568_s5 = smov 512  }
 0x2ca   : > { %s2569_s15 = smov 16  }
 0x2cb   : > { %2205 = dma.vmem_to_hbm [thread:$0]  (%p4904_p13), %s4469_s16, 8192, %s4467_s8, %s1794_s9, %s2567_s28, %s2568_s5, %s2569_s15  }
 0x2cc PF: > { %s4905_s22 = sld [smem:[#allocation12_spill]]  ;;  %p2227_p6 = scmp.ge.s32.totalorder %s2557_s19, 2 }
 0x2cd   : > { %s1824_s21 = sand.u32 1, %s2529_s12  }
 0x2ce   : > { %s1825_s4 = scalar_lea.sflag [#allocation4], %s1824_s21 }
 0x2d2   : > { %p4906_p8 = scmp.ne.s32.totalorder %s4905_s22, 0 }
 0x2d4   : > { %p2219_p9 = pnand %p2227_p6, %p4906_p8 }
 0x2d6   : > { %2524 = dma.done.wait (!%p2219_p9), %s1825_s4, 8192  }
 0x2d7   : > { %2526 = vsyncadd (!%p2219_p9), %s1825_s4, 4294959104  ;;  %s20_s19 = sadd.s32 1, %s2557_s19   ;;  %s4907_s12 = smov %s2533_s13 }
 0x2d8   : > { %p17_p5 = scmp.ge.s32.totalorder %s20_s19, 6   ;;  %s4908_s13 = smov %s2537_s14 }
 0x2d9   : > { %s4909_s14 = smov %s2802_s29  ;;  %s4910_s15 = smov %s2549_s17 }
 0x2da   : > { %s4911_s16 = smov %s2553_s18  ;;  %s4912_s17 = smov %s4915_s10 }
 0x2db   : > { %s4913_s18 = smov %s4919_s11  ;;  %19 = sbr.rel (!%p17_p5) target bundleno = 11 (0xb), region = 85 }
 0x2e2   :  { %1830 = vsyncpa [#allocation3], 1 }
 0x2e3   :  { %1832 = vsyncpa [#allocation3 + $0x1], 1 }
 0x2e4   :  { %1833 = vsyncpa [#allocation6], 1 }
 0x2e5   :  { %1834 = vsyncpa [#allocation4], 1 }
 0x2e6   :  { %1836 = vsyncpa [#allocation4 + $0x1], 1 }

</bundles_post_ra>
